<compile_context>
chip_gen: v7x
topology: tpu7x:2x2x1
jax: 0.10.0
libtpu: 0.0.40
codegen_flags: <defaults>
</compile_context>

<pallas_src>
import jax
import jax.numpy as jnp
from jax.experimental import pallas as pl
from jax.experimental.pallas import tpu as pltpu

D_IN = 784
D_H = 512
D_Z = 2


def _vae_kernel(x_ref, w1_ref, b1_ref, w2_ref, b2_ref, w3_ref, b3_ref,
                w4_ref, b4_ref, recon_ref, stats_ref):
    x = x_ref[...]                                     # (TB, 784) f32

    # encode: h1 = relu(x @ W1 + b1)        (MXU, f32 accumulate)
    w1 = w1_ref[...]
    h1 = jnp.dot(x.astype(w1.dtype), w1,
                 preferred_element_type=jnp.float32) + b1_ref[...]
    h1 = jnp.maximum(h1, 0.0)

    # fused heads: [mu || logvar] = h1 @ [W21 || W22] + [b21 || b22]
    stats = jnp.dot(h1, w2_ref[...],
                    preferred_element_type=jnp.float32) + b2_ref[...]
    stats_ref[...] = stats

    # reparameterize (eval mode): z = mu
    z0 = stats[:, 0:1]                                 # (TB, 1)
    z1 = stats[:, 1:2]                                 # (TB, 1)

    # decode, stage 1: K=2 contraction done on the VPU (broadcast mul-adds)
    # instead of a nearly-empty MXU pass.
    w3 = w3_ref[...]                                   # (2, 512)
    h3 = z0 * w3[0:1, :] + z1 * w3[1:2, :] + b3_ref[...]
    h3 = jnp.maximum(h3, 0.0)

    # decode, stage 2: recon = sigmoid(h3 @ W4 + b4)
    w4 = w4_ref[...]
    logits = jnp.dot(h3.astype(w4.dtype), w4,
                     preferred_element_type=jnp.float32) + b4_ref[...]
    # exp -> EUP; approx reciprocal -> EUP (frees VALU in the epilogue)
    recon_ref[...] = pl.reciprocal(1.0 + jnp.exp(-logits), approx=True)


def _round_up(n, m):
    return ((n + m - 1) // m) * m


def vae_forward(x_img, params, *, tb=128):
    """x_img: (B, 1, 28, 28) float32 (NCHW, like the PyTorch module's input)."""
    B = x_img.shape[0]
    x = x_img.reshape(B, D_IN).astype(jnp.float32)
    (w1, b1, w2, b2, w3, b3, w4, b4) = params

    # Pick a batch tile: at most `tb`, sublane-aligned; pad B up to a multiple.
    tb = min(tb, _round_up(B, 8))
    Bp = _round_up(B, tb)
    if Bp != B:
        x = jnp.pad(x, ((0, Bp - B), (0, 0)))
    grid = (Bp // tb,)

    act = lambda shape: pl.BlockSpec(shape, lambda i: (i, 0))   # streamed per tile
    res = lambda shape: pl.BlockSpec(shape, lambda i: (0, 0))   # resident in VMEM

    in_specs = [
        act((tb, D_IN)),          # x
        res((D_IN, D_H)),         # w1
        res((1, D_H)),            # b1
        res((D_H, 2 * D_Z)),      # w2 = [w21 || w22]
        res((1, 2 * D_Z)),        # b2 = [b21 || b22]
        res((D_Z, D_H)),          # w3
        res((1, D_H)),            # b3
        res((D_H, D_IN)),         # w4
        res((1, D_IN)),           # b4
    ]
    out_specs = [
        act((tb, D_IN)),          # recon
        act((tb, 2 * D_Z)),       # [mu || logvar]
    ]
    out_shape = [
        jax.ShapeDtypeStruct((Bp, D_IN), jnp.float32),
        jax.ShapeDtypeStruct((Bp, 2 * D_Z), jnp.float32),
    ]

    recon, stats = pl.pallas_call(
        _vae_kernel,
        grid=grid,
        in_specs=in_specs,
        out_specs=out_specs,
        out_shape=out_shape,
        compiler_params=pltpu.CompilerParams(
            dimension_semantics=("parallel",),
            vmem_limit_bytes=32 << 20,
        ),
    )(x, w1, b1, w2, b2, w3, b3, w4, b4)

    recon = recon[:B]
    mu = stats[:B, :D_Z]
    logvar = stats[:B, D_Z:]
    return recon, mu, logvar


def init_params(key, *, big_weight_dtype=jnp.float32):
    """Init mimicking nn.Linear's U(-1/sqrt(fan_in), 1/sqrt(fan_in)).

    Weights are stored as (in, out) — transpose of PyTorch's (out, in) — so the
    kernel computes x @ W + b. fc21/fc22 are fused into a single head. The two
    large weights (fc1, fc4) may be stored in bf16 to halve HBM traffic.
    """
    def linear(key, fan_in, fan_out):
        kw, kb = jax.random.split(key)
        bound = 1.0 / jnp.sqrt(float(fan_in))
        w = jax.random.uniform(kw, (fan_in, fan_out), jnp.float32, -bound, bound)
        b = jax.random.uniform(kb, (1, fan_out), jnp.float32, -bound, bound)
        return w, b

    k1, k2, k3, k4, k5 = jax.random.split(key, 5)
    w1, b1 = linear(k1, D_IN, D_H)     # fc1
    w21, b21 = linear(k2, D_H, D_Z)    # fc21
    w22, b22 = linear(k3, D_H, D_Z)    # fc22
    w3, b3 = linear(k4, D_Z, D_H)      # fc3
    w4, b4 = linear(k5, D_H, D_IN)     # fc4

    w2 = jnp.concatenate([w21, w22], axis=1)   # (512, 4) fused head
    b2 = jnp.concatenate([b21, b22], axis=1)   # (1, 4)
    return (w1.astype(big_weight_dtype), b1, w2, b2, w3, b3,
            w4.astype(big_weight_dtype), b4)


def vae_reference(x_img, params):
    """Pure-JAX reference of the same forward pass (weights cast back to f32)."""
    B = x_img.shape[0]
    x = x_img.reshape(B, D_IN).astype(jnp.float32)
    (w1, b1, w2, b2, w3, b3, w4, b4) = params
    h1 = jnp.maximum(x @ w1.astype(jnp.float32) + b1, 0.0)
    stats = h1 @ w2 + b2
    mu = stats[:, :D_Z]
    logvar = stats[:, D_Z:]
    h3 = jnp.maximum(mu @ w3 + b3, 0.0)
    recon = jax.nn.sigmoid(h3 @ w4.astype(jnp.float32) + b4)
    return recon, mu, logvar


if __name__ == "__main__":
    key = jax.random.PRNGKey(0)
    kx, kp = jax.random.split(key)

    # --- f32 weights: exact semantics of the PyTorch module ------------------
    B = 8
    x_img = jax.random.uniform(kx, (B, 1, 28, 28), jnp.float32)  # NCHW MNIST-like
    params = init_params(kp)

    recon, mu, logvar = vae_forward(x_img, params)
    jax.block_until_ready((recon, mu, logvar))

    recon_r, mu_r, logvar_r = vae_reference(x_img, params)
    assert recon.shape == (B, D_IN) and mu.shape == (B, D_Z) and logvar.shape == (B, D_Z)
    assert jnp.allclose(mu, mu_r, atol=1e-5), "mu mismatch"
    assert jnp.allclose(logvar, logvar_r, atol=1e-5), "logvar mismatch"
    # approx-reciprocal sigmoid -> slightly looser tolerance on recon
    assert jnp.allclose(recon, recon_r, atol=5e-3), "recon mismatch"

    # --- larger batch exercising the multi-tile grid + padding path ----------
    B2 = 200
    x2 = jax.random.uniform(jax.random.PRNGKey(1), (B2, 1, 28, 28), jnp.float32)
    recon2, mu2, logvar2 = vae_forward(x2, params)
    jax.block_until_ready((recon2, mu2, logvar2))
    recon2_r, mu2_r, logvar2_r = vae_reference(x2, params)
    assert recon2.shape == (B2, D_IN) and mu2.shape == (B2, D_Z)
    assert jnp.allclose(mu2, mu2_r, atol=1e-5), "mu mismatch (tiled)"
    assert jnp.allclose(logvar2, logvar2_r, atol=1e-5), "logvar mismatch (tiled)"
    assert jnp.allclose(recon2, recon2_r, atol=5e-3), "recon mismatch (tiled)"

    # --- bf16 big weights (halves dominant HBM traffic), looser tolerance ----
    params_bf16 = init_params(kp, big_weight_dtype=jnp.bfloat16)
    recon3, mu3, logvar3 = vae_forward(x_img, params_bf16)
    jax.block_until_ready((recon3, mu3, logvar3))
    recon3_r, mu3_r, logvar3_r = vae_reference(x_img, params_bf16)
    assert jnp.allclose(mu3, mu3_r, atol=3e-2), "mu mismatch (bf16)"
    assert jnp.allclose(logvar3, logvar3_r, atol=3e-2), "logvar mismatch (bf16)"
    assert jnp.allclose(recon3, recon3_r, atol=3e-2), "recon mismatch (bf16)"

    print("KERNEL_OK")
</pallas_src>

<mosaic_0001>
module attributes {stable_mosaic.version = 11 : i64} {
  func.func @_vae_kernel(%arg0: i32, %arg1: memref<8x784xf32, #tpu.memory_space<vmem>>, %arg2: memref<784x512xf32, #tpu.memory_space<vmem>>, %arg3: memref<1x512xf32, #tpu.memory_space<vmem>>, %arg4: memref<512x4xf32, #tpu.memory_space<vmem>>, %arg5: memref<1x4xf32, #tpu.memory_space<vmem>>, %arg6: memref<2x512xf32, #tpu.memory_space<vmem>>, %arg7: memref<1x512xf32, #tpu.memory_space<vmem>>, %arg8: memref<512x784xf32, #tpu.memory_space<vmem>>, %arg9: memref<1x784xf32, #tpu.memory_space<vmem>>, %arg10: memref<8x784xf32, #tpu.memory_space<vmem>>, %arg11: memref<8x4xf32, #tpu.memory_space<vmem>>) attributes {dimension_semantics = [#tpu.dimension_semantics<parallel>], iteration_bounds = array<i64: 1>, scalar_prefetch = 0 : i64, scratch_operands = 0 : i64, tpu.core_type = #tpu.core_type<tc>, window_params = [{transform_indices = @transform_0, window_bounds = array<i64: 8, 784>}, {pipeline_mode = #tpu.pipeline_mode<synchronous>, transform_indices = @transform_1, window_bounds = array<i64: 784, 512>}, {pipeline_mode = #tpu.pipeline_mode<synchronous>, transform_indices = @transform_2, window_bounds = array<i64: 1, 512>}, {pipeline_mode = #tpu.pipeline_mode<synchronous>, transform_indices = @transform_3, window_bounds = array<i64: 512, 4>}, {pipeline_mode = #tpu.pipeline_mode<synchronous>, transform_indices = @transform_4, window_bounds = array<i64: 1, 4>}, {pipeline_mode = #tpu.pipeline_mode<synchronous>, transform_indices = @transform_5, window_bounds = array<i64: 2, 512>}, {pipeline_mode = #tpu.pipeline_mode<synchronous>, transform_indices = @transform_6, window_bounds = array<i64: 1, 512>}, {pipeline_mode = #tpu.pipeline_mode<synchronous>, transform_indices = @transform_7, window_bounds = array<i64: 512, 784>}, {pipeline_mode = #tpu.pipeline_mode<synchronous>, transform_indices = @transform_8, window_bounds = array<i64: 1, 784>}, {transform_indices = @transform_9, window_bounds = array<i64: 8, 784>}, {transform_indices = @transform_10, window_bounds = array<i64: 8, 4>}]} {
    %c0 = arith.constant 0 : index
    %c0_0 = arith.constant 0 : index
    %0 = vector.load %arg1[%c0, %c0_0] : memref<8x784xf32, #tpu.memory_space<vmem>>, vector<8x784xf32>
    %c0_1 = arith.constant 0 : index
    %c0_2 = arith.constant 0 : index
    %1 = vector.load %arg2[%c0_1, %c0_2] : memref<784x512xf32, #tpu.memory_space<vmem>>, vector<784x512xf32>
    %cst = arith.constant dense<0.000000e+00> : vector<8x512xf32>
    %2 = tpu.matmul %0, %1, %cst {dimension_numbers = #tpu.dot_dimension_numbers<[1], [0], [0], [1], [0, 0, 1, 1], [], []>} : vector<8x784xf32>, vector<784x512xf32>, vector<8x512xf32> -> vector<8x512xf32>
    %c0_3 = arith.constant 0 : index
    %c0_4 = arith.constant 0 : index
    %3 = vector.load %arg3[%c0_3, %c0_4] : memref<1x512xf32, #tpu.memory_space<vmem>>, vector<1x512xf32>
    %4 = vector.broadcast %3 : vector<1x512xf32> to vector<8x512xf32>
    %5 = arith.addf %2, %4 : vector<8x512xf32>
    %cst_5 = arith.constant 0.000000e+00 : f32
    %6 = vector.broadcast %cst_5 : f32 to vector<8x512xf32>
    %7 = arith.maximumf %5, %6 : vector<8x512xf32>
    %c0_6 = arith.constant 0 : index
    %c0_7 = arith.constant 0 : index
    %8 = vector.load %arg4[%c0_6, %c0_7] : memref<512x4xf32, #tpu.memory_space<vmem>>, vector<512x4xf32>
    %cst_8 = arith.constant dense<0.000000e+00> : vector<8x4xf32>
    %9 = tpu.matmul %7, %8, %cst_8 {dimension_numbers = #tpu.dot_dimension_numbers<[1], [0], [0], [1], [0, 0, 1, 1], [], []>} : vector<8x512xf32>, vector<512x4xf32>, vector<8x4xf32> -> vector<8x4xf32>
    %c0_9 = arith.constant 0 : index
    %c0_10 = arith.constant 0 : index
    %10 = vector.load %arg5[%c0_9, %c0_10] : memref<1x4xf32, #tpu.memory_space<vmem>>, vector<1x4xf32>
    %11 = vector.broadcast %10 : vector<1x4xf32> to vector<8x4xf32>
    %12 = arith.addf %9, %11 : vector<8x4xf32>
    %c0_11 = arith.constant 0 : index
    %c0_12 = arith.constant 0 : index
    %13 = vector.load %arg11[%c0_11, %c0_12] : memref<8x4xf32, #tpu.memory_space<vmem>>, vector<8x4xf32>
    tpu.vector_store %arg11[%c0_11, %c0_12], %12 {strides = array<i32>} : memref<8x4xf32, #tpu.memory_space<vmem>>, vector<8x4xf32>,
    %14 = vector.extract_strided_slice %12 {offsets = [0, 0], sizes = [8, 1], strides = [1, 1]} : vector<8x4xf32> to vector<8x1xf32>
    %15 = vector.extract_strided_slice %12 {offsets = [0, 1], sizes = [8, 1], strides = [1, 1]} : vector<8x4xf32> to vector<8x1xf32>
    %c0_13 = arith.constant 0 : index
    %c0_14 = arith.constant 0 : index
    %16 = vector.load %arg6[%c0_13, %c0_14] : memref<2x512xf32, #tpu.memory_space<vmem>>, vector<2x512xf32>
    %17 = vector.extract_strided_slice %16 {offsets = [0, 0], sizes = [1, 512], strides = [1, 1]} : vector<2x512xf32> to vector<1x512xf32>
    %18 = vector.broadcast %14 : vector<8x1xf32> to vector<8x512xf32>
    %19 = vector.broadcast %17 : vector<1x512xf32> to vector<8x512xf32>
    %20 = arith.mulf %18, %19 : vector<8x512xf32>
    %21 = vector.extract_strided_slice %16 {offsets = [1, 0], sizes = [1, 512], strides = [1, 1]} : vector<2x512xf32> to vector<1x512xf32>
    %22 = vector.broadcast %15 : vector<8x1xf32> to vector<8x512xf32>
    %23 = vector.broadcast %21 : vector<1x512xf32> to vector<8x512xf32>
    %24 = arith.mulf %22, %23 : vector<8x512xf32>
    %25 = arith.addf %20, %24 : vector<8x512xf32>
    %c0_15 = arith.constant 0 : index
    %c0_16 = arith.constant 0 : index
    %26 = vector.load %arg7[%c0_15, %c0_16] : memref<1x512xf32, #tpu.memory_space<vmem>>, vector<1x512xf32>
    %27 = vector.broadcast %26 : vector<1x512xf32> to vector<8x512xf32>
    %28 = arith.addf %25, %27 : vector<8x512xf32>
    %cst_17 = arith.constant 0.000000e+00 : f32
    %29 = vector.broadcast %cst_17 : f32 to vector<8x512xf32>
    %30 = arith.maximumf %28, %29 : vector<8x512xf32>
    %c0_18 = arith.constant 0 : index
    %c0_19 = arith.constant 0 : index
    %31 = vector.load %arg8[%c0_18, %c0_19] : memref<512x784xf32, #tpu.memory_space<vmem>>, vector<512x784xf32>
    %cst_20 = arith.constant dense<0.000000e+00> : vector<8x784xf32>
    %32 = tpu.matmul %30, %31, %cst_20 {dimension_numbers = #tpu.dot_dimension_numbers<[1], [0], [0], [1], [0, 0, 1, 1], [], []>} : vector<8x512xf32>, vector<512x784xf32>, vector<8x784xf32> -> vector<8x784xf32>
    %c0_21 = arith.constant 0 : index
    %c0_22 = arith.constant 0 : index
    %33 = vector.load %arg9[%c0_21, %c0_22] : memref<1x784xf32, #tpu.memory_space<vmem>>, vector<1x784xf32>
    %34 = vector.broadcast %33 : vector<1x784xf32> to vector<8x784xf32>
    %35 = arith.addf %32, %34 : vector<8x784xf32>
    %cst_23 = arith.constant 0.000000e+00 : f32
    %36 = vector.broadcast %cst_23 : f32 to vector<8x784xf32>
    %37 = arith.subf %36, %35 : vector<8x784xf32>
    %38 = math.exp %37 : vector<8x784xf32>
    %cst_24 = arith.constant 1.000000e+00 : f32
    %39 = vector.broadcast %cst_24 : f32 to vector<8x784xf32>
    %40 = arith.addf %39, %38 : vector<8x784xf32>
    %41 = tpu.reciprocal %40 {approx = true} : vector<8x784xf32> -> vector<8x784xf32>
    %c0_25 = arith.constant 0 : index
    %c0_26 = arith.constant 0 : index
    %42 = vector.load %arg10[%c0_25, %c0_26] : memref<8x784xf32, #tpu.memory_space<vmem>>, vector<8x784xf32>
    tpu.vector_store %arg10[%c0_25, %c0_26], %41 {strides = array<i32>} : memref<8x784xf32, #tpu.memory_space<vmem>>, vector<8x784xf32>,
    return
  }
  func.func @transform_0(%arg0: i32) -> (i32, i32) {
    %c0_i32 = arith.constant 0 : i32
    %c0_i32_0 = arith.constant 0 : i32
    return %arg0, %c0_i32 : i32, i32
  }
  func.func @transform_1(%arg0: i32) -> (i32, i32) {
    %c0_i32 = arith.constant 0 : i32
    %c0_i32_0 = arith.constant 0 : i32
    %c0_i32_1 = arith.constant 0 : i32
    return %c0_i32, %c0_i32_0 : i32, i32
  }
  func.func @transform_2(%arg0: i32) -> (i32, i32) {
    %c0_i32 = arith.constant 0 : i32
    %c0_i32_0 = arith.constant 0 : i32
    %c0_i32_1 = arith.constant 0 : i32
    return %c0_i32, %c0_i32_0 : i32, i32
  }
  func.func @transform_3(%arg0: i32) -> (i32, i32) {
    %c0_i32 = arith.constant 0 : i32
    %c0_i32_0 = arith.constant 0 : i32
    %c0_i32_1 = arith.constant 0 : i32
    return %c0_i32, %c0_i32_0 : i32, i32
  }
  func.func @transform_4(%arg0: i32) -> (i32, i32) {
    %c0_i32 = arith.constant 0 : i32
    %c0_i32_0 = arith.constant 0 : i32
    %c0_i32_1 = arith.constant 0 : i32
    return %c0_i32, %c0_i32_0 : i32, i32
  }
  func.func @transform_5(%arg0: i32) -> (i32, i32) {
    %c0_i32 = arith.constant 0 : i32
    %c0_i32_0 = arith.constant 0 : i32
    %c0_i32_1 = arith.constant 0 : i32
    return %c0_i32, %c0_i32_0 : i32, i32
  }
  func.func @transform_6(%arg0: i32) -> (i32, i32) {
    %c0_i32 = arith.constant 0 : i32
    %c0_i32_0 = arith.constant 0 : i32
    %c0_i32_1 = arith.constant 0 : i32
    return %c0_i32, %c0_i32_0 : i32, i32
  }
  func.func @transform_7(%arg0: i32) -> (i32, i32) {
    %c0_i32 = arith.constant 0 : i32
    %c0_i32_0 = arith.constant 0 : i32
    %c0_i32_1 = arith.constant 0 : i32
    return %c0_i32, %c0_i32_0 : i32, i32
  }
  func.func @transform_8(%arg0: i32) -> (i32, i32) {
    %c0_i32 = arith.constant 0 : i32
    %c0_i32_0 = arith.constant 0 : i32
    %c0_i32_1 = arith.constant 0 : i32
    return %c0_i32, %c0_i32_0 : i32, i32
  }
  func.func @transform_9(%arg0: i32) -> (i32, i32) {
    %c0_i32 = arith.constant 0 : i32
    %c0_i32_0 = arith.constant 0 : i32
    return %arg0, %c0_i32 : i32, i32
  }
  func.func @transform_10(%arg0: i32) -> (i32, i32) {
    %c0_i32 = arith.constant 0 : i32
    %c0_i32_0 = arith.constant 0 : i32
    return %arg0, %c0_i32 : i32, i32
  }
}

</mosaic_0001>

<bundles_post_ra>
// kernel: tpu_custom_call.1
= control target key start
LH: loop header
LB: loop body
LE: loop exit
PB: predicated region body
PF: predicated region fallthrough
CT: control target
= control target key end

     0   :  { %s6538_s0 = inlined_call_operand.vmem [shape: f32[8,784], index: 0, kind: input, shape index: {}]   ;;  %s6539_s1 = inlined_call_operand.vmem [shape: f32[784,512], index: 1, kind: input, shape index: {}]   ;;  %s6540_s2 = inlined_call_operand.vmem [shape: f32[1,512], index: 2, kind: input, shape index: {}]   ;;  %s6541_s3 = inlined_call_operand.vmem [shape: f32[512,4], index: 3, kind: input, shape index: {}]   ;;  %s6542_s4 = inlined_call_operand.vmem [shape: f32[1,4], index: 4, kind: input, shape index: {}]   ;;  %s6543_s5 = inlined_call_operand.vmem [shape: f32[2,512], index: 5, kind: input, shape index: {}]   ;;  %s6544_s6 = inlined_call_operand.vmem [shape: f32[1,512], index: 6, kind: input, shape index: {}]   ;;  %s6545_s7 = inlined_call_operand.vmem [shape: f32[512,784], index: 7, kind: input, shape index: {}]   ;;  %s6546_s8 = inlined_call_operand.vmem [shape: f32[1,784], index: 8, kind: input, shape index: {}]   ;;  %s6547_s9 = inlined_call_operand.hbm [shape: f32[8,784], index: 9, kind: output, shape index: {0}]   ;;  %s6548_s10 = inlined_call_operand.vmem [shape: f32[8,4], index: 10, kind: output, shape index: {1}]  }
   0x1   :  { %v43_v0 = vld [vmem:[%s6539_s1 + $0x8] sm:$0xff]  ;;  %v45_v2 = vld [vmem:[%s6539_s1 + $0x18] sm:$0xff]  ;;  %v42_v5 = vld [vmem:[%s6539_s1] sm:$0xff] }
   0x2   :  { %v47_v1 = vld [vmem:[%s6539_s1 + $0x28] sm:$0xff]  ;;  %v49_v4 = vld [vmem:[%s6539_s1 + $0x38] sm:$0xff]  ;;  %v46_v6 = vld [vmem:[%s6539_s1 + $0x20] sm:$0xff] }
   0x3   :  { %v2624_v3 = vpack.c.bf16 %v47_v1, %v43_v0  ;;  %v2820_v7 = vpack.c.bf16 %v49_v4, %v45_v2  ;;  %v2626_v8 = vpack.c.bf16 %v46_v6, %v42_v5  ;;  %v44_v9 = vld [vmem:[%s6539_s1 + $0x10] sm:$0xff]  ;;  %v51_v11 = vld [vmem:[%s6539_s1 + $0x48] sm:$0xff]  ;;  %v53_v14 = vld [vmem:[%s6539_s1 + $0x58] sm:$0xff] }
   0x4   :  { %v48_v10 = vld [vmem:[%s6539_s1 + $0x30] sm:$0xff]  ;;  %v55_v13 = vld [vmem:[%s6539_s1 + $0x68] sm:$0xff]  ;;  %v57_v15 = vld [vmem:[%s6539_s1 + $0x78] sm:$0xff] }
   0x5   :  { %2625 = vmatprep.subr.bf16.mxu0 %v2624_v3  ;;  %v2822_v12 = vpack.c.bf16 %v48_v10, %v44_v9  ;;  %2821 = vmatprep.subr.bf16.mxu1 %v2820_v7  ;;  %v2628_v16 = vpack.c.bf16 %v55_v13, %v51_v11  ;;  %v2824_v17 = vpack.c.bf16 %v57_v15, %v53_v14  ;;  %v50_v18 = vld [vmem:[%s6539_s1 + $0x40] sm:$0xff]  ;;  %v52_v20 = vld [vmem:[%s6539_s1 + $0x50] sm:$0xff]  ;;  %v59_v23 = vld [vmem:[%s6539_s1 + $0x88] sm:$0xff] }
   0x6   :  { %2627 = vmatpush1.bf16.msra.mxu0 %v2626_v8  ;;  %v54_v19 = vld [vmem:[%s6539_s1 + $0x60] sm:$0xff]  ;;  %v56_v22 = vld [vmem:[%s6539_s1 + $0x70] sm:$0xff]  ;;  %v63_v24 = vld [vmem:[%s6539_s1 + $0xa8] sm:$0xff] }
   0x7   :  { %2823 = vmatpush1.bf16.msra.mxu1 %v2822_v12  ;;  %v2630_v21 = vpack.c.bf16 %v54_v19, %v50_v18  ;;  %2629 = vmatprep.subr.bf16.mxu0 %v2628_v16  ;;  %v2826_v25 = vpack.c.bf16 %v56_v22, %v52_v20  ;;  %v2632_v26 = vpack.c.bf16 %v63_v24, %v59_v23  ;;  %v61_v27 = vld [vmem:[%s6539_s1 + $0x98] sm:$0xff]  ;;  %v58_v29 = vld [vmem:[%s6539_s1 + $0x80] sm:$0xff]  ;;  %v60_v32 = vld [vmem:[%s6539_s1 + $0x90] sm:$0xff] }
   0x8   :  { %2825 = vmatprep.subr.bf16.mxu1 %v2824_v17  ;;  %v65_v28 = vld [vmem:[%s6539_s1 + $0xb8] sm:$0xff]  ;;  %v62_v31 = vld [vmem:[%s6539_s1 + $0xa0] sm:$0xff]  ;;  %v64_v33 = vld [vmem:[%s6539_s1 + $0xb0] sm:$0xff] }
   0x9   :  { %v2828_v30 = vpack.c.bf16 %v65_v28, %v61_v27  ;;  %v2634_v34 = vpack.c.bf16 %v62_v31, %v58_v29  ;;  %v67_v35 = vld [vmem:[%s6539_s1 + $0xc8] sm:$0xff]  ;;  %v69_v37 = vld [vmem:[%s6539_s1 + $0xd8] sm:$0xff]  ;;  %v2830_v38 = vpack.c.bf16 %v64_v33, %v60_v32  ;;  %v66_v41 = vld [vmem:[%s6539_s1 + $0xc0] sm:$0xff] }
   0xa   :  { %2631 = vmatpush1.bf16.msra.mxu0 %v2630_v21  ;;  %v71_v36 = vld [vmem:[%s6539_s1 + $0xe8] sm:$0xff]  ;;  %v73_v40 = vld [vmem:[%s6539_s1 + $0xf8] sm:$0xff]  ;;  %v70_v42 = vld [vmem:[%s6539_s1 + $0xe0] sm:$0xff] }
   0xb   :  { %2827 = vmatpush1.bf16.msra.mxu1 %v2826_v25  ;;  %2633 = vmatprep.subr.bf16.mxu0 %v2632_v26  ;;  %v2636_v39 = vpack.c.bf16 %v71_v36, %v67_v35  ;;  %v2832_v43 = vpack.c.bf16 %v73_v40, %v69_v37  ;;  %v68_v44 = vld [vmem:[%s6539_s1 + $0xd0] sm:$0xff]  ;;  %v75_v46 = vld [vmem:[%s6539_s1 + $0x108] sm:$0xff]  ;;  %v77_v48 = vld [vmem:[%s6539_s1 + $0x118] sm:$0xff]  ;;  %v2638_v50 = vpack.c.bf16 %v70_v42, %v66_v41 }
   0xc   :  { %2829 = vmatprep.subr.bf16.mxu1 %v2828_v30  ;;  %v72_v45 = vld [vmem:[%s6539_s1 + $0xf0] sm:$0xff]  ;;  %v79_v47 = vld [vmem:[%s6539_s1 + $0x128] sm:$0xff]  ;;  %v81_v49 = vld [vmem:[%s6539_s1 + $0x138] sm:$0xff] }
   0xd   :  { %v2834_v51 = vpack.c.bf16 %v72_v45, %v68_v44  ;;  %v2640_v52 = vpack.c.bf16 %v79_v47, %v75_v46  ;;  %v74_v53 = vld [vmem:[%s6539_s1 + $0x100] sm:$0xff]  ;;  %v76_v55 = vld [vmem:[%s6539_s1 + $0x110] sm:$0xff]  ;;  %v2836_v56 = vpack.c.bf16 %v81_v49, %v77_v48  ;;  %v83_v58 = vld [vmem:[%s6539_s1 + $0x148] sm:$0xff] }
   0xe   :  { %2635 = vmatpush1.bf16.msra.mxu0 %v2634_v34  ;;  %v78_v54 = vld [vmem:[%s6539_s1 + $0x120] sm:$0xff]  ;;  %v80_v57 = vld [vmem:[%s6539_s1 + $0x130] sm:$0xff]  ;;  %v87_v59 = vld [vmem:[%s6539_s1 + $0x168] sm:$0xff] }
   0xf   :  { %2831 = vmatpush1.bf16.msra.mxu1 %v2830_v38  ;;  %2637 = vmatprep.subr.bf16.mxu0 %v2636_v39  ;;  %v85_v60 = vld [vmem:[%s6539_s1 + $0x158] sm:$0xff]  ;;  %v2642_v62 = vpack.c.bf16 %v78_v54, %v74_v53  ;;  %v2838_v63 = vpack.c.bf16 %v80_v57, %v76_v55  ;;  %v2644_v0 = vpack.c.bf16 %v87_v59, %v83_v58  ;;  %v82_v1 = vld [vmem:[%s6539_s1 + $0x140] sm:$0xff]  ;;  %v84_v3 = vld [vmem:[%s6539_s1 + $0x150] sm:$0xff] }
  0x10   :  { %2833 = vmatprep.subr.bf16.mxu1 %v2832_v43  ;;  %v89_v61 = vld [vmem:[%s6539_s1 + $0x178] sm:$0xff]  ;;  %v86_v2 = vld [vmem:[%s6539_s1 + $0x160] sm:$0xff]  ;;  %v88_v5 = vld [vmem:[%s6539_s1 + $0x170] sm:$0xff] }
  0x11   :  { %v2840_v4 = vpack.c.bf16 %v89_v61, %v85_v60  ;;  %v91_v6 = vld [vmem:[%s6539_s1 + $0x188] sm:$0xff]  ;;  %v93_v8 = vld [vmem:[%s6539_s1 + $0x198] sm:$0xff]  ;;  %v2646_v10 = vpack.c.bf16 %v86_v2, %v82_v1  ;;  %v2842_v11 = vpack.c.bf16 %v88_v5, %v84_v3  ;;  %v90_v13 = vld [vmem:[%s6539_s1 + $0x180] sm:$0xff] }
  0x12   :  { %2639 = vmatpush1.bf16.msra.mxu0 %v2638_v50  ;;  %v95_v7 = vld [vmem:[%s6539_s1 + $0x1a8] sm:$0xff]  ;;  %v97_v9 = vld [vmem:[%s6539_s1 + $0x1b8] sm:$0xff]  ;;  %v94_v14 = vld [vmem:[%s6539_s1 + $0x1a0] sm:$0xff] }
  0x13   :  { %2835 = vmatpush1.bf16.msra.mxu1 %v2834_v51  ;;  %2641 = vmatprep.subr.bf16.mxu0 %v2640_v52  ;;  %v2648_v12 = vpack.c.bf16 %v95_v7, %v91_v6  ;;  %v92_v15 = vld [vmem:[%s6539_s1 + $0x190] sm:$0xff]  ;;  %v2844_v16 = vpack.c.bf16 %v97_v9, %v93_v8  ;;  %v99_v18 = vld [vmem:[%s6539_s1 + $0x1c8] sm:$0xff]  ;;  %v101_v20 = vld [vmem:[%s6539_s1 + $0x1d8] sm:$0xff]  ;;  %v2650_v22 = vpack.c.bf16 %v94_v14, %v90_v13 }
  0x14   :  { %2837 = vmatprep.subr.bf16.mxu1 %v2836_v56  ;;  %v96_v17 = vld [vmem:[%s6539_s1 + $0x1b0] sm:$0xff]  ;;  %v103_v19 = vld [vmem:[%s6539_s1 + $0x1e8] sm:$0xff]  ;;  %v105_v21 = vld [vmem:[%s6539_s1 + $0x1f8] sm:$0xff] }
  0x15   :  { %v2846_v23 = vpack.c.bf16 %v96_v17, %v92_v15  ;;  %v2652_v24 = vpack.c.bf16 %v103_v19, %v99_v18  ;;  %v98_v25 = vld [vmem:[%s6539_s1 + $0x1c0] sm:$0xff]  ;;  %v100_v27 = vld [vmem:[%s6539_s1 + $0x1d0] sm:$0xff]  ;;  %v2848_v28 = vpack.c.bf16 %v105_v21, %v101_v20  ;;  %v107_v30 = vld [vmem:[%s6539_s1 + $0x208] sm:$0xff] }
  0x16   :  { %2643 = vmatpush1.bf16.msra.mxu0 %v2642_v62  ;;  %v102_v26 = vld [vmem:[%s6539_s1 + $0x1e0] sm:$0xff]  ;;  %v104_v29 = vld [vmem:[%s6539_s1 + $0x1f0] sm:$0xff]  ;;  %v111_v31 = vld [vmem:[%s6539_s1 + $0x228] sm:$0xff] }
  0x17   :  { %2839 = vmatpush1.bf16.msra.mxu1 %v2838_v63  ;;  %2645 = vmatprep.subr.bf16.mxu0 %v2644_v0  ;;  %v109_v32 = vld [vmem:[%s6539_s1 + $0x218] sm:$0xff]  ;;  %v2654_v34 = vpack.c.bf16 %v102_v26, %v98_v25  ;;  %v2850_v35 = vpack.c.bf16 %v104_v29, %v100_v27  ;;  %v2656_v36 = vpack.c.bf16 %v111_v31, %v107_v30  ;;  %v106_v37 = vld [vmem:[%s6539_s1 + $0x200] sm:$0xff]  ;;  %v108_v39 = vld [vmem:[%s6539_s1 + $0x210] sm:$0xff] }
  0x18   :  { %2841 = vmatprep.subr.bf16.mxu1 %v2840_v4  ;;  %v113_v33 = vld [vmem:[%s6539_s1 + $0x238] sm:$0xff]  ;;  %v110_v38 = vld [vmem:[%s6539_s1 + $0x220] sm:$0xff]  ;;  %v112_v41 = vld [vmem:[%s6539_s1 + $0x230] sm:$0xff] }
  0x19   :  { %v2852_v40 = vpack.c.bf16 %v113_v33, %v109_v32  ;;  %v115_v42 = vld [vmem:[%s6539_s1 + $0x248] sm:$0xff]  ;;  %v117_v44 = vld [vmem:[%s6539_s1 + $0x258] sm:$0xff]  ;;  %v2658_v46 = vpack.c.bf16 %v110_v38, %v106_v37  ;;  %v2854_v47 = vpack.c.bf16 %v112_v41, %v108_v39  ;;  %v114_v49 = vld [vmem:[%s6539_s1 + $0x240] sm:$0xff] }
  0x1a   :  { %2647 = vmatpush1.bf16.msra.mxu0 %v2646_v10  ;;  %v119_v43 = vld [vmem:[%s6539_s1 + $0x268] sm:$0xff]  ;;  %v121_v45 = vld [vmem:[%s6539_s1 + $0x278] sm:$0xff]  ;;  %v118_v50 = vld [vmem:[%s6539_s1 + $0x260] sm:$0xff] }
  0x1b   :  { %2843 = vmatpush1.bf16.msra.mxu1 %v2842_v11  ;;  %2649 = vmatprep.subr.bf16.mxu0 %v2648_v12  ;;  %v2660_v48 = vpack.c.bf16 %v119_v43, %v115_v42  ;;  %v116_v51 = vld [vmem:[%s6539_s1 + $0x250] sm:$0xff]  ;;  %v2856_v52 = vpack.c.bf16 %v121_v45, %v117_v44  ;;  %v123_v54 = vld [vmem:[%s6539_s1 + $0x288] sm:$0xff]  ;;  %v125_v56 = vld [vmem:[%s6539_s1 + $0x298] sm:$0xff]  ;;  %v2662_v58 = vpack.c.bf16 %v118_v50, %v114_v49 }
  0x1c   :  { %2845 = vmatprep.subr.bf16.mxu1 %v2844_v16  ;;  %v120_v53 = vld [vmem:[%s6539_s1 + $0x270] sm:$0xff]  ;;  %v127_v55 = vld [vmem:[%s6539_s1 + $0x2a8] sm:$0xff]  ;;  %v129_v57 = vld [vmem:[%s6539_s1 + $0x2b8] sm:$0xff] }
  0x1d   :  { %v2858_v59 = vpack.c.bf16 %v120_v53, %v116_v51  ;;  %v2664_v60 = vpack.c.bf16 %v127_v55, %v123_v54  ;;  %v122_v61 = vld [vmem:[%s6539_s1 + $0x280] sm:$0xff]  ;;  %v124_v63 = vld [vmem:[%s6539_s1 + $0x290] sm:$0xff]  ;;  %v2860_v0 = vpack.c.bf16 %v129_v57, %v125_v56  ;;  %v131_v2 = vld [vmem:[%s6539_s1 + $0x2c8] sm:$0xff] }
  0x1e   :  { %2651 = vmatpush1.bf16.msra.mxu0 %v2650_v22  ;;  %v126_v62 = vld [vmem:[%s6539_s1 + $0x2a0] sm:$0xff]  ;;  %v128_v1 = vld [vmem:[%s6539_s1 + $0x2b0] sm:$0xff]  ;;  %v135_v3 = vld [vmem:[%s6539_s1 + $0x2e8] sm:$0xff] }
  0x1f   :  { %2847 = vmatpush1.bf16.msra.mxu1 %v2846_v23  ;;  %2653 = vmatprep.subr.bf16.mxu0 %v2652_v24  ;;  %v133_v4 = vld [vmem:[%s6539_s1 + $0x2d8] sm:$0xff]  ;;  %v2666_v6 = vpack.c.bf16 %v126_v62, %v122_v61  ;;  %v130_v7 = vld [vmem:[%s6539_s1 + $0x2c0] sm:$0xff]  ;;  %v2862_v8 = vpack.c.bf16 %v128_v1, %v124_v63  ;;  %v2668_v9 = vpack.c.bf16 %v135_v3, %v131_v2  ;;  %v132_v11 = vld [vmem:[%s6539_s1 + $0x2d0] sm:$0xff] }
  0x20   :  { %2849 = vmatprep.subr.bf16.mxu1 %v2848_v28  ;;  %v137_v5 = vld [vmem:[%s6539_s1 + $0x2f8] sm:$0xff]  ;;  %v134_v10 = vld [vmem:[%s6539_s1 + $0x2e0] sm:$0xff]  ;;  %v136_v12 = vld [vmem:[%s6539_s1 + $0x2f0] sm:$0xff] }
  0x21   :  { %v2864_v13 = vpack.c.bf16 %v137_v5, %v133_v4  ;;  %v139_v14 = vld [vmem:[%s6539_s1 + $0x308] sm:$0xff]  ;;  %v141_v17 = vld [vmem:[%s6539_s1 + $0x318] sm:$0xff]  ;;  %v2670_v19 = vpack.c.bf16 %v134_v10, %v130_v7  ;;  %v2866_v20 = vpack.c.bf16 %v136_v12, %v132_v11  ;;  %v138_v22 = vld [vmem:[%s6539_s1 + $0x300] sm:$0xff] }
  0x22   :  { %2655 = vmatpush1.bf16.msra.mxu0 %v2654_v34  ;;  %v143_v15 = vld [vmem:[%s6539_s1 + $0x328] sm:$0xff]  ;;  %v145_v18 = vld [vmem:[%s6539_s1 + $0x338] sm:$0xff]  ;;  %v142_v23 = vld [vmem:[%s6539_s1 + $0x320] sm:$0xff] }
  0x23   :  { %2851 = vmatpush1.bf16.msra.mxu1 %v2850_v35  ;;  %2657 = vmatprep.subr.bf16.mxu0 %v2656_v36  ;;  %v36_v16 = vld [vmem:[%s6538_s0 + $0x8] sm:$0xff]  ;;  %v2672_v21 = vpack.c.bf16 %v143_v15, %v139_v14  ;;  %v140_v24 = vld [vmem:[%s6539_s1 + $0x310] sm:$0xff]  ;;  %v2868_v25 = vpack.c.bf16 %v145_v18, %v141_v17  ;;  %v149_v29 = vld [vmem:[%s6539_s1 + $0x358] sm:$0xff]  ;;  %v2674_v31 = vpack.c.bf16 %v142_v23, %v138_v22 }
  0x24   :  { %2853 = vmatprep.subr.bf16.mxu1 %v2852_v40  ;;  %524 = vmatprep.mubr.f32.mxu0 %v36_v16  ;;  %v144_v26 = vld [vmem:[%s6539_s1 + $0x330] sm:$0xff]  ;;  %v147_v27 = vld [vmem:[%s6539_s1 + $0x348] sm:$0xff]  ;;  %v153_v30 = vld [vmem:[%s6539_s1 + $0x378] sm:$0xff] }
  0x25   :  { %808 = vmatprep.mubr.f32.mxu1 %v36_v16  ;;  %v151_v28 = vld [vmem:[%s6539_s1 + $0x368] sm:$0xff]  ;;  %v2870_v32 = vpack.c.bf16 %v144_v26, %v140_v24  ;;  %v146_v34 = vld [vmem:[%s6539_s1 + $0x340] sm:$0xff]  ;;  %v148_v36 = vld [vmem:[%s6539_s1 + $0x350] sm:$0xff]  ;;  %v2872_v37 = vpack.c.bf16 %v153_v30, %v149_v29 }
  0x26   :  { %2659 = vmatpush1.bf16.msra.mxu0 %v2658_v46  ;;  %v2676_v33 = vpack.c.bf16 %v151_v28, %v147_v27  ;;  %v150_v35 = vld [vmem:[%s6539_s1 + $0x360] sm:$0xff]  ;;  %v152_v38 = vld [vmem:[%s6539_s1 + $0x370] sm:$0xff]  ;;  %v155_v39 = vld [vmem:[%s6539_s1 + $0x388] sm:$0xff] }
  0x27   :  { %2855 = vmatpush1.bf16.msra.mxu1 %v2854_v47  ;;  %2661 = vmatprep.subr.bf16.mxu0 %v2660_v48  ;;  %v159_v40 = vld [vmem:[%s6539_s1 + $0x3a8] sm:$0xff]  ;;  %v157_v41 = vld [vmem:[%s6539_s1 + $0x398] sm:$0xff]  ;;  %v2678_v43 = vpack.c.bf16 %v150_v35, %v146_v34  ;;  %v2874_v44 = vpack.c.bf16 %v152_v38, %v148_v36  ;;  %v154_v46 = vld [vmem:[%s6539_s1 + $0x380] sm:$0xff] }
  0x28   :  { %2857 = vmatprep.subr.bf16.mxu1 %v2856_v52  ;;  %v161_v42 = vld [vmem:[%s6539_s1 + $0x3b8] sm:$0xff]  ;;  %v2680_v45 = vpack.c.bf16 %v159_v40, %v155_v39  ;;  %v158_v47 = vld [vmem:[%s6539_s1 + $0x3a0] sm:$0xff]  ;;  %v156_v48 = vld [vmem:[%s6539_s1 + $0x390] sm:$0xff] }
  0x29   :  { %v2876_v49 = vpack.c.bf16 %v161_v42, %v157_v41  ;;  %v160_v50 = vld [vmem:[%s6539_s1 + $0x3b0] sm:$0xff]  ;;  %v163_v51 = vld [vmem:[%s6539_s1 + $0x3c8] sm:$0xff]  ;;  %v165_v53 = vld [vmem:[%s6539_s1 + $0x3d8] sm:$0xff]  ;;  %v2682_v55 = vpack.c.bf16 %v158_v47, %v154_v46 }
  0x2a   :  { %2663 = vmatpush1.bf16.msra.mxu0 %v2662_v58  ;;  %v167_v52 = vld [vmem:[%s6539_s1 + $0x3e8] sm:$0xff]  ;;  %v169_v54 = vld [vmem:[%s6539_s1 + $0x3f8] sm:$0xff]  ;;  %v2878_v56 = vpack.c.bf16 %v160_v50, %v156_v48  ;;  %v162_v58 = vld [vmem:[%s6539_s1 + $0x3c0] sm:$0xff] }
  0x2b   :  { %2859 = vmatpush1.bf16.msra.mxu1 %v2858_v59  ;;  %2665 = vmatprep.subr.bf16.mxu0 %v2664_v60  ;;  %v2684_v57 = vpack.c.bf16 %v167_v52, %v163_v51  ;;  %v166_v59 = vld [vmem:[%s6539_s1 + $0x3e0] sm:$0xff]  ;;  %v164_v60 = vld [vmem:[%s6539_s1 + $0x3d0] sm:$0xff]  ;;  %v2880_v61 = vpack.c.bf16 %v169_v54, %v165_v53  ;;  %v171_v63 = vld [vmem:[%s6539_s1 + $0x408] sm:$0xff] }
  0x2c   :  { %2861 = vmatprep.subr.bf16.mxu1 %v2860_v0  ;;  %v168_v62 = vld [vmem:[%s6539_s1 + $0x3f0] sm:$0xff]  ;;  %v175_v0 = vld [vmem:[%s6539_s1 + $0x428] sm:$0xff]  ;;  %v173_v1 = vld [vmem:[%s6539_s1 + $0x418] sm:$0xff]  ;;  %v2686_v3 = vpack.c.bf16 %v166_v59, %v162_v58 }
  0x2d   :  { %v177_v2 = vld [vmem:[%s6539_s1 + $0x438] sm:$0xff]  ;;  %v2882_v4 = vpack.c.bf16 %v168_v62, %v164_v60  ;;  %v2688_v5 = vpack.c.bf16 %v175_v0, %v171_v63  ;;  %v174_v7 = vld [vmem:[%s6539_s1 + $0x420] sm:$0xff]  ;;  %v176_v10 = vld [vmem:[%s6539_s1 + $0x430] sm:$0xff] }
  0x2e   :  { %2667 = vmatpush1.bf16.msra.mxu0 %v2666_v6  ;;  %v170_v6 = vld [vmem:[%s6539_s1 + $0x400] sm:$0xff]  ;;  %v179_v11 = vld [vmem:[%s6539_s1 + $0x448] sm:$0xff]  ;;  %v185_v14 = vld [vmem:[%s6539_s1 + $0x478] sm:$0xff] }
  0x2f   :  { %2863 = vmatpush1.bf16.msra.mxu1 %v2862_v8  ;;  %2669 = vmatprep.subr.bf16.mxu0 %v2668_v9  ;;  %v172_v8 = vld [vmem:[%s6539_s1 + $0x410] sm:$0xff]  ;;  %v2884_v9 = vpack.c.bf16 %v177_v2, %v173_v1  ;;  %v183_v12 = vld [vmem:[%s6539_s1 + $0x468] sm:$0xff]  ;;  %v35_v15 = vld [vmem:[%s6538_s0] sm:$0xff]  ;;  %v2690_v16 = vpack.c.bf16 %v174_v7, %v170_v6 }
  0x30   :  { %2865 = vmatprep.subr.bf16.mxu1 %v2864_v13  ;;  %v181_v13 = vld [vmem:[%s6539_s1 + $0x458] sm:$0xff]  ;;  %v2886_v17 = vpack.c.bf16 %v176_v10, %v172_v8  ;;  %v2692_v18 = vpack.c.bf16 %v183_v12, %v179_v11  ;;  %v184_v23 = vld [vmem:[%s6539_s1 + $0x470] sm:$0xff]  ;;  %v187_v24 = vld [vmem:[%s6539_s1 + $0x488] sm:$0xff] }
  0x31   :  { %v2888_v22 = vpack.c.bf16 %v185_v14, %v181_v13  ;;  %v189_v26 = vld [vmem:[%s6539_s1 + $0x498] sm:$0xff]  ;;  %v192_v35 = vld [vmem:[%s6539_s1 + $0x4b0] sm:$0xff]  ;;  %v195_v36 = vld [vmem:[%s6539_s1 + $0x4c8] sm:$0xff] }
  0x32   :  { %2671 = vmatpush1.bf16.msra.mxu0 %v2670_v19  ;;  %v178_v19 = vld [vmem:[%s6539_s1 + $0x440] sm:$0xff]  ;;  %v193_v27 = vld [vmem:[%s6539_s1 + $0x4b8] sm:$0xff]  ;;  %v200_v47 = vld [vmem:[%s6539_s1 + $0x4f0] sm:$0xff] }
  0x33   :  { %2867 = vmatpush1.bf16.msra.mxu1 %v2866_v20  ;;  %2673 = vmatprep.subr.bf16.mxu0 %v2672_v21  ;;  %v182_v20 = vld [vmem:[%s6539_s1 + $0x460] sm:$0xff]  ;;  %v180_v21 = vld [vmem:[%s6539_s1 + $0x450] sm:$0xff]  ;;  %v2892_v34 = vpack.c.bf16 %v193_v27, %v189_v26  ;;  %v197_v38 = vld [vmem:[%s6539_s1 + $0x4d8] sm:$0xff] }
  0x34   :  { %2869 = vmatprep.subr.bf16.mxu1 %v2868_v25  ;;  %v191_v25 = vld [vmem:[%s6539_s1 + $0x4a8] sm:$0xff]  ;;  %v2694_v28 = vpack.c.bf16 %v182_v20, %v178_v19  ;;  %v2890_v29 = vpack.c.bf16 %v184_v23, %v180_v21  ;;  %v201_v39 = vld [vmem:[%s6539_s1 + $0x4f8] sm:$0xff]  ;;  %v208_v59 = vld [vmem:[%s6539_s1 + $0x530] sm:$0xff] }
  0x35   :  { %v2696_v30 = vpack.c.bf16 %v191_v25, %v187_v24  ;;  %v2896_v46 = vpack.c.bf16 %v201_v39, %v197_v38  ;;  %v203_v48 = vld [vmem:[%s6539_s1 + $0x508] sm:$0xff]  ;;  %v205_v50 = vld [vmem:[%s6539_s1 + $0x518] sm:$0xff]  ;;  %v216_v7 = vld [vmem:[%s6539_s1 + $0x570] sm:$0xff] }
  0x36   :  { %2675 = vmatpush1.bf16.msra.mxu0 %v2674_v31  ;;  %v186_v31 = vld [vmem:[%s6539_s1 + $0x480] sm:$0xff]  ;;  %v209_v51 = vld [vmem:[%s6539_s1 + $0x538] sm:$0xff]  ;;  %v211_v60 = vld [vmem:[%s6539_s1 + $0x548] sm:$0xff] }
  0x37   :  { %2871 = vmatpush1.bf16.msra.mxu1 %v2870_v32  ;;  %2677 = vmatprep.subr.bf16.mxu0 %v2676_v33  ;;  %v190_v32 = vld [vmem:[%s6539_s1 + $0x4a0] sm:$0xff]  ;;  %v188_v33 = vld [vmem:[%s6539_s1 + $0x490] sm:$0xff]  ;;  %v2900_v58 = vpack.c.bf16 %v209_v51, %v205_v50  ;;  %v213_v62 = vld [vmem:[%s6539_s1 + $0x558] sm:$0xff] }
  0x38   :  { %2873 = vmatprep.subr.bf16.mxu1 %v2872_v37  ;;  %v199_v37 = vld [vmem:[%s6539_s1 + $0x4e8] sm:$0xff]  ;;  %v2698_v40 = vpack.c.bf16 %v190_v32, %v186_v31  ;;  %v2894_v41 = vpack.c.bf16 %v192_v35, %v188_v33  ;;  %v217_v63 = vld [vmem:[%s6539_s1 + $0x578] sm:$0xff]  ;;  %v218_v13 = vld [vmem:[%s6539_s1 + $0x580] sm:$0xff] }
  0x39   :  { %v2700_v42 = vpack.c.bf16 %v199_v37, %v195_v36  ;;  %v2904_v6 = vpack.c.bf16 %v217_v63, %v213_v62  ;;  %v219_v8 = vld [vmem:[%s6539_s1 + $0x588] sm:$0xff]  ;;  %v221_v10 = vld [vmem:[%s6539_s1 + $0x598] sm:$0xff]  ;;  %v232_v32 = vld [vmem:[%s6539_s1 + $0x5f0] sm:$0xff] }
  0x3a   :  { %2679 = vmatpush1.bf16.msra.mxu0 %v2678_v43  ;;  %v194_v43 = vld [vmem:[%s6539_s1 + $0x4c0] sm:$0xff]  ;;  %v225_v11 = vld [vmem:[%s6539_s1 + $0x5b8] sm:$0xff]  ;;  %v227_v20 = vld [vmem:[%s6539_s1 + $0x5c8] sm:$0xff] }
  0x3b   :  { %2875 = vmatpush1.bf16.msra.mxu1 %v2874_v44  ;;  %2681 = vmatprep.subr.bf16.mxu0 %v2680_v45  ;;  %v198_v44 = vld [vmem:[%s6539_s1 + $0x4e0] sm:$0xff]  ;;  %v196_v45 = vld [vmem:[%s6539_s1 + $0x4d0] sm:$0xff]  ;;  %v2908_v19 = vpack.c.bf16 %v225_v11, %v221_v10  ;;  %v231_v21 = vld [vmem:[%s6539_s1 + $0x5e8] sm:$0xff] }
  0x3c   :  { %2877 = vmatprep.subr.bf16.mxu1 %v2876_v49  ;;  %v207_v49 = vld [vmem:[%s6539_s1 + $0x528] sm:$0xff]  ;;  %v2702_v52 = vpack.c.bf16 %v198_v44, %v194_v43  ;;  %v2898_v53 = vpack.c.bf16 %v200_v47, %v196_v45  ;;  %v229_v23 = vld [vmem:[%s6539_s1 + $0x5d8] sm:$0xff]  ;;  %v2716_v27 = vpack.c.bf16 %v231_v21, %v227_v20  ;;  %v240_v44 = vld [vmem:[%s6539_s1 + $0x630] sm:$0xff] }
  0x3d   :  { %v2704_v54 = vpack.c.bf16 %v207_v49, %v203_v48  ;;  %v233_v24 = vld [vmem:[%s6539_s1 + $0x5f8] sm:$0xff]  ;;  %v235_v33 = vld [vmem:[%s6539_s1 + $0x608] sm:$0xff] }
  0x3e   :  { %2683 = vmatpush1.bf16.msra.mxu0 %v2682_v55  ;;  %v202_v55 = vld [vmem:[%s6539_s1 + $0x500] sm:$0xff]  ;;  %v2912_v31 = vpack.c.bf16 %v233_v24, %v229_v23  ;;  %v237_v35 = vld [vmem:[%s6539_s1 + $0x618] sm:$0xff]  ;;  %v243_v45 = vld [vmem:[%s6539_s1 + $0x648] sm:$0xff] }
  0x3f   :  { %2879 = vmatpush1.bf16.msra.mxu1 %v2878_v56  ;;  %2685 = vmatprep.subr.bf16.mxu0 %v2684_v57  ;;  %v206_v56 = vld [vmem:[%s6539_s1 + $0x520] sm:$0xff]  ;;  %v204_v57 = vld [vmem:[%s6539_s1 + $0x510] sm:$0xff]  ;;  %v241_v36 = vld [vmem:[%s6539_s1 + $0x638] sm:$0xff] }
  0x40   :  { %2881 = vmatprep.subr.bf16.mxu1 %v2880_v61  ;;  %v215_v61 = vld [vmem:[%s6539_s1 + $0x568] sm:$0xff]  ;;  %v2706_v0 = vpack.c.bf16 %v206_v56, %v202_v55  ;;  %v2902_v1 = vpack.c.bf16 %v208_v59, %v204_v57  ;;  %v2916_v43 = vpack.c.bf16 %v241_v36, %v237_v35  ;;  %v245_v47 = vld [vmem:[%s6539_s1 + $0x658] sm:$0xff]  ;;  %v248_v56 = vld [vmem:[%s6539_s1 + $0x670] sm:$0xff] }
  0x41   :  { %v2708_v2 = vpack.c.bf16 %v215_v61, %v211_v60  ;;  %v249_v48 = vld [vmem:[%s6539_s1 + $0x678] sm:$0xff]  ;;  %v251_v57 = vld [vmem:[%s6539_s1 + $0x688] sm:$0xff]  ;;  %v266_v24 = vld [vmem:[%s6539_s1 + $0x700] sm:$0xff] }
  0x42   :  { %2687 = vmatpush1.bf16.msra.mxu0 %v2686_v3  ;;  %v210_v3 = vld [vmem:[%s6539_s1 + $0x540] sm:$0xff]  ;;  %v2920_v55 = vpack.c.bf16 %v249_v48, %v245_v47  ;;  %v253_v59 = vld [vmem:[%s6539_s1 + $0x698] sm:$0xff] }
  0x43   :  { %2883 = vmatpush1.bf16.msra.mxu1 %v2882_v4  ;;  %2689 = vmatprep.subr.bf16.mxu0 %v2688_v5  ;;  %v214_v4 = vld [vmem:[%s6539_s1 + $0x560] sm:$0xff]  ;;  %v212_v5 = vld [vmem:[%s6539_s1 + $0x550] sm:$0xff]  ;;  %v257_v60 = vld [vmem:[%s6539_s1 + $0x6b8] sm:$0xff] }
  0x44   :  { %2885 = vmatprep.subr.bf16.mxu1 %v2884_v9  ;;  %v223_v9 = vld [vmem:[%s6539_s1 + $0x5a8] sm:$0xff]  ;;  %v2710_v12 = vpack.c.bf16 %v214_v4, %v210_v3  ;;  %v2906_v14 = vpack.c.bf16 %v216_v7, %v212_v5  ;;  %v2924_v3 = vpack.c.bf16 %v257_v60, %v253_v59  ;;  %v256_v4 = vld [vmem:[%s6539_s1 + $0x6b0] sm:$0xff]  ;;  %v261_v7 = vld [vmem:[%s6539_s1 + $0x6d8] sm:$0xff] }
  0x45   :  { %525 = vmatmul.mubr.f32.vlgmr.msra.gmra.mrb[0].mxu0 %v35_v15  ;;  %v259_v5 = vld [vmem:[%s6539_s1 + $0x6c8] sm:$0xff]  ;;  %v273_v20 = vld [vmem:[%s6539_s1 + $0x738] sm:$0xff]  ;;  %v274_v36 = vld [vmem:[%s6539_s1 + $0x740] sm:$0xff] }
  0x46   :  { %2691 = vmatpush1.bf16.msra.mxu0 %v2690_v16  ;;  %809 = vmatmul.mubr.f32.vlgmr.msra.gmra.mrb[0].mxu1 %v35_v15  ;;  %v2712_v15 = vpack.c.bf16 %v223_v9, %v219_v8  ;;  %v222_v16 = vld [vmem:[%s6539_s1 + $0x5a0] sm:$0xff]  ;;  %v265_v8 = vld [vmem:[%s6539_s1 + $0x6f8] sm:$0xff] }
  0x47   :  { %2887 = vmatpush1.bf16.msra.mxu1 %v2886_v17  ;;  %2693 = vmatprep.subr.bf16.mxu0 %v2692_v18  ;;  %v220_v17 = vld [vmem:[%s6539_s1 + $0x590] sm:$0xff]  ;;  %v2714_v25 = vpack.c.bf16 %v222_v16, %v218_v13  ;;  %v262_v13 = vld [vmem:[%s6539_s1 + $0x6e0] sm:$0xff] }
  0x48   :  { %2889 = vmatprep.subr.bf16.mxu1 %v2888_v22  ;;  %v224_v18 = vld [vmem:[%s6539_s1 + $0x5b0] sm:$0xff]  ;;  %v38_v22 = vld [vmem:[%s6538_s0 + $0x18] sm:$0xff]  ;;  %v282_v48 = vld [vmem:[%s6539_s1 + $0x780] sm:$0xff] }
  0x49   :  { %595 = vmatprep.mubr.f32.mxu0 %v38_v22  ;;  %879 = vmatprep.mubr.f32.mxu1 %v38_v22  ;;  %v2910_v26 = vpack.c.bf16 %v224_v18, %v220_v17  ;;  %v264_v16 = vld [vmem:[%s6539_s1 + $0x6f0] sm:$0xff]  ;;  %v267_v17 = vld [vmem:[%s6539_s1 + $0x708] sm:$0xff]  ;;  %v290_v60 = vld [vmem:[%s6539_s1 + $0x7c0] sm:$0xff] }
  0x4a   :  { %2695 = vmatpush1.bf16.msra.mxu0 %v2694_v28  ;;  %v226_v28 = vld [vmem:[%s6539_s1 + $0x5c0] sm:$0xff]  ;;  %v271_v18 = vld [vmem:[%s6539_s1 + $0x728] sm:$0xff] }
  0x4b   :  { %2891 = vmatpush1.bf16.msra.mxu1 %v2890_v29  ;;  %2697 = vmatprep.subr.bf16.mxu0 %v2696_v30  ;;  %v230_v29 = vld [vmem:[%s6539_s1 + $0x5e0] sm:$0xff]  ;;  %v228_v30 = vld [vmem:[%s6539_s1 + $0x5d0] sm:$0xff]  ;;  %v2736_v23 = vpack.c.bf16 %v271_v18, %v267_v17 }
  0x4c   :  { %2893 = vmatprep.subr.bf16.mxu1 %v2892_v34  ;;  %v239_v34 = vld [vmem:[%s6539_s1 + $0x628] sm:$0xff]  ;;  %v2718_v37 = vpack.c.bf16 %v230_v29, %v226_v28  ;;  %v2914_v38 = vpack.c.bf16 %v232_v32, %v228_v30  ;;  %v272_v28 = vld [vmem:[%s6539_s1 + $0x730] sm:$0xff]  ;;  %v281_v32 = vld [vmem:[%s6539_s1 + $0x778] sm:$0xff] }
  0x4d   :  { %v2720_v39 = vpack.c.bf16 %v239_v34, %v235_v33  ;;  %v275_v29 = vld [vmem:[%s6539_s1 + $0x748] sm:$0xff]  ;;  %v37_v17 = vld [vmem:[%s6538_s0 + $0x10] sm:$0xff] }
  0x4e   :  { %2699 = vmatpush1.bf16.msra.mxu0 %v2698_v40  ;;  %v234_v40 = vld [vmem:[%s6539_s1 + $0x600] sm:$0xff]  ;;  %v279_v30 = vld [vmem:[%s6539_s1 + $0x768] sm:$0xff] }
  0x4f   :  { %2895 = vmatpush1.bf16.msra.mxu1 %v2894_v41  ;;  %2701 = vmatprep.subr.bf16.mxu0 %v2700_v42  ;;  %v238_v41 = vld [vmem:[%s6539_s1 + $0x620] sm:$0xff]  ;;  %v236_v42 = vld [vmem:[%s6539_s1 + $0x610] sm:$0xff]  ;;  %v2740_v35 = vpack.c.bf16 %v279_v30, %v275_v29  ;;  %v321_v29 = vld [vmem:[%s6539_s1 + $0x8b8] sm:$0xff] }
  0x50   :  { %2897 = vmatprep.subr.bf16.mxu1 %v2896_v46  ;;  %v247_v46 = vld [vmem:[%s6539_s1 + $0x668] sm:$0xff]  ;;  %v2722_v49 = vpack.c.bf16 %v238_v41, %v234_v40  ;;  %v2918_v50 = vpack.c.bf16 %v240_v44, %v236_v42  ;;  %v280_v40 = vld [vmem:[%s6539_s1 + $0x770] sm:$0xff]  ;;  %v289_v44 = vld [vmem:[%s6539_s1 + $0x7b8] sm:$0xff] }
  0x51   :  { %v2724_v51 = vpack.c.bf16 %v247_v46, %v243_v45  ;;  %v283_v41 = vld [vmem:[%s6539_s1 + $0x788] sm:$0xff] }
  0x52   :  { %2703 = vmatpush1.bf16.msra.mxu0 %v2702_v52  ;;  %v242_v52 = vld [vmem:[%s6539_s1 + $0x640] sm:$0xff]  ;;  %v287_v42 = vld [vmem:[%s6539_s1 + $0x7a8] sm:$0xff] }
  0x53   :  { %2899 = vmatpush1.bf16.msra.mxu1 %v2898_v53  ;;  %2705 = vmatprep.subr.bf16.mxu0 %v2704_v54  ;;  %v246_v53 = vld [vmem:[%s6539_s1 + $0x660] sm:$0xff]  ;;  %v244_v54 = vld [vmem:[%s6539_s1 + $0x650] sm:$0xff]  ;;  %v2744_v47 = vpack.c.bf16 %v287_v42, %v283_v41  ;;  %v40_v30 = vld [vmem:[%s6538_s0 + $0x28] sm:$0xff] }
  0x54   :  { %2901 = vmatprep.subr.bf16.mxu1 %v2900_v58  ;;  %v255_v58 = vld [vmem:[%s6539_s1 + $0x6a8] sm:$0xff]  ;;  %v2726_v61 = vpack.c.bf16 %v246_v53, %v242_v52  ;;  %v2922_v62 = vpack.c.bf16 %v248_v56, %v244_v54  ;;  %v288_v52 = vld [vmem:[%s6539_s1 + $0x7b0] sm:$0xff]  ;;  %v297_v56 = vld [vmem:[%s6539_s1 + $0x7f8] sm:$0xff] }
  0x55   :  { %v2728_v63 = vpack.c.bf16 %v255_v58, %v251_v57  ;;  %v291_v53 = vld [vmem:[%s6539_s1 + $0x7c8] sm:$0xff]  ;;  %v325_v41 = vld [vmem:[%s6539_s1 + $0x8d8] sm:$0xff] }
  0x56   :  { %2707 = vmatpush1.bf16.msra.mxu0 %v2706_v0  ;;  %v250_v0 = vld [vmem:[%s6539_s1 + $0x680] sm:$0xff]  ;;  %v295_v54 = vld [vmem:[%s6539_s1 + $0x7e8] sm:$0xff]  ;;  %v329_v42 = vld [vmem:[%s6539_s1 + $0x8f8] sm:$0xff] }
  0x57   :  { %2903 = vmatpush1.bf16.msra.mxu1 %v2902_v1  ;;  %2709 = vmatprep.subr.bf16.mxu0 %v2708_v2  ;;  %v254_v1 = vld [vmem:[%s6539_s1 + $0x6a0] sm:$0xff]  ;;  %v252_v2 = vld [vmem:[%s6539_s1 + $0x690] sm:$0xff]  ;;  %v2748_v59 = vpack.c.bf16 %v295_v54, %v291_v53  ;;  %v333_v53 = vld [vmem:[%s6539_s1 + $0x918] sm:$0xff] }
  0x58   :  { %2905 = vmatprep.subr.bf16.mxu1 %v2904_v6  ;;  %v263_v6 = vld [vmem:[%s6539_s1 + $0x6e8] sm:$0xff]  ;;  %v2730_v9 = vpack.c.bf16 %v254_v1, %v250_v0  ;;  %v2926_v10 = vpack.c.bf16 %v256_v4, %v252_v2  ;;  %v296_v0 = vld [vmem:[%s6539_s1 + $0x7f0] sm:$0xff]  ;;  %v305_v4 = vld [vmem:[%s6539_s1 + $0x838] sm:$0xff] }
  0x59   :  { %v2732_v11 = vpack.c.bf16 %v263_v6, %v259_v5  ;;  %v299_v1 = vld [vmem:[%s6539_s1 + $0x808] sm:$0xff]  ;;  %v337_v54 = vld [vmem:[%s6539_s1 + $0x938] sm:$0xff] }
  0x5a   :  { %2711 = vmatpush1.bf16.msra.mxu0 %v2710_v12  ;;  %v258_v12 = vld [vmem:[%s6539_s1 + $0x6c0] sm:$0xff]  ;;  %v303_v2 = vld [vmem:[%s6539_s1 + $0x828] sm:$0xff] }
  0x5b   :  { %2907 = vmatpush1.bf16.msra.mxu1 %v2906_v14  ;;  %2713 = vmatprep.subr.bf16.mxu0 %v2712_v15  ;;  %v260_v14 = vld [vmem:[%s6539_s1 + $0x6d0] sm:$0xff]  ;;  %v2928_v15 = vpack.c.bf16 %v265_v8, %v261_v7  ;;  %v2734_v21 = vpack.c.bf16 %v262_v13, %v258_v12  ;;  %v2752_v7 = vpack.c.bf16 %v303_v2, %v299_v1  ;;  %v298_v8 = vld [vmem:[%s6539_s1 + $0x800] sm:$0xff]  ;;  %v307_v13 = vld [vmem:[%s6539_s1 + $0x848] sm:$0xff] }
  0x5c   :  { %2909 = vmatprep.subr.bf16.mxu1 %v2908_v19  ;;  %v269_v19 = vld [vmem:[%s6539_s1 + $0x718] sm:$0xff]  ;;  %v2930_v22 = vpack.c.bf16 %v264_v16, %v260_v14  ;;  %v304_v12 = vld [vmem:[%s6539_s1 + $0x830] sm:$0xff]  ;;  %v311_v14 = vld [vmem:[%s6539_s1 + $0x868] sm:$0xff] }
  0x5d   :  { %v313_v16 = vld [vmem:[%s6539_s1 + $0x878] sm:$0xff] }
  0x5e   :  { %2715 = vmatpush1.bf16.msra.mxu0 %v2714_v25  ;;  %v270_v25 = vld [vmem:[%s6539_s1 + $0x720] sm:$0xff] }
  0x5f   :  { %2911 = vmatpush1.bf16.msra.mxu1 %v2910_v26  ;;  %2717 = vmatprep.subr.bf16.mxu0 %v2716_v27  ;;  %v268_v26 = vld [vmem:[%s6539_s1 + $0x710] sm:$0xff]  ;;  %v2932_v27 = vpack.c.bf16 %v273_v20, %v269_v19  ;;  %v2738_v33 = vpack.c.bf16 %v270_v25, %v266_v24  ;;  %v2756_v20 = vpack.c.bf16 %v311_v14, %v307_v13 }
  0x60   :  { %2913 = vmatprep.subr.bf16.mxu1 %v2912_v31  ;;  %v277_v31 = vld [vmem:[%s6539_s1 + $0x758] sm:$0xff]  ;;  %v2934_v34 = vpack.c.bf16 %v272_v28, %v268_v26  ;;  %v312_v25 = vld [vmem:[%s6539_s1 + $0x870] sm:$0xff]  ;;  %v315_v26 = vld [vmem:[%s6539_s1 + $0x888] sm:$0xff] }
  0x61   :  { %v317_v28 = vld [vmem:[%s6539_s1 + $0x898] sm:$0xff] }
  0x62   :  { %2719 = vmatpush1.bf16.msra.mxu0 %v2718_v37  ;;  %v278_v37 = vld [vmem:[%s6539_s1 + $0x760] sm:$0xff] }
  0x63   :  { %2915 = vmatpush1.bf16.msra.mxu1 %v2914_v38  ;;  %2721 = vmatprep.subr.bf16.mxu0 %v2720_v39  ;;  %v276_v38 = vld [vmem:[%s6539_s1 + $0x750] sm:$0xff]  ;;  %v2936_v39 = vpack.c.bf16 %v281_v32, %v277_v31  ;;  %v2742_v45 = vpack.c.bf16 %v278_v37, %v274_v36  ;;  %v2956_v37 = vpack.c.bf16 %v321_v29, %v317_v28 }
  0x64   :  { %2917 = vmatprep.subr.bf16.mxu1 %v2916_v43  ;;  %v285_v43 = vld [vmem:[%s6539_s1 + $0x798] sm:$0xff]  ;;  %v2938_v46 = vpack.c.bf16 %v280_v40, %v276_v38  ;;  %v316_v36 = vld [vmem:[%s6539_s1 + $0x890] sm:$0xff]  ;;  %v327_v40 = vld [vmem:[%s6539_s1 + $0x8e8] sm:$0xff] }
  0x65   :  { %v320_v38 = vld [vmem:[%s6539_s1 + $0x8b0] sm:$0xff] }
  0x66   :  { %2723 = vmatpush1.bf16.msra.mxu0 %v2722_v49  ;;  %v286_v49 = vld [vmem:[%s6539_s1 + $0x7a0] sm:$0xff] }
  0x67   :  { %2919 = vmatpush1.bf16.msra.mxu1 %v2918_v50  ;;  %2725 = vmatprep.subr.bf16.mxu0 %v2724_v51  ;;  %v284_v50 = vld [vmem:[%s6539_s1 + $0x790] sm:$0xff]  ;;  %v2940_v51 = vpack.c.bf16 %v289_v44, %v285_v43  ;;  %v2746_v57 = vpack.c.bf16 %v286_v49, %v282_v48  ;;  %v2958_v44 = vpack.c.bf16 %v320_v38, %v316_v36 }
  0x68   :  { %2921 = vmatprep.subr.bf16.mxu1 %v2920_v55  ;;  %v293_v55 = vld [vmem:[%s6539_s1 + $0x7d8] sm:$0xff]  ;;  %v2942_v58 = vpack.c.bf16 %v288_v52, %v284_v50  ;;  %v324_v48 = vld [vmem:[%s6539_s1 + $0x8d0] sm:$0xff]  ;;  %v2960_v49 = vpack.c.bf16 %v329_v42, %v325_v41  ;;  %v335_v52 = vld [vmem:[%s6539_s1 + $0x928] sm:$0xff] }
  0x69   :  { %v328_v50 = vld [vmem:[%s6539_s1 + $0x8f0] sm:$0xff] }
  0x6a   :  { %2727 = vmatpush1.bf16.msra.mxu0 %v2726_v61  ;;  %v294_v61 = vld [vmem:[%s6539_s1 + $0x7e0] sm:$0xff] }
  0x6b   :  { %2923 = vmatpush1.bf16.msra.mxu1 %v2922_v62  ;;  %2729 = vmatprep.subr.bf16.mxu0 %v2728_v63  ;;  %v292_v62 = vld [vmem:[%s6539_s1 + $0x7d0] sm:$0xff]  ;;  %v2944_v63 = vpack.c.bf16 %v297_v56, %v293_v55  ;;  %v2750_v5 = vpack.c.bf16 %v294_v61, %v290_v60  ;;  %v330_v56 = vld [vmem:[%s6539_s1 + $0x900] sm:$0xff] }
  0x6c   :  { %2925 = vmatprep.subr.bf16.mxu1 %v2924_v3  ;;  %v301_v3 = vld [vmem:[%s6539_s1 + $0x818] sm:$0xff]  ;;  %v2946_v6 = vpack.c.bf16 %v296_v0, %v292_v62  ;;  %v332_v60 = vld [vmem:[%s6539_s1 + $0x910] sm:$0xff]  ;;  %v2964_v62 = vpack.c.bf16 %v337_v54, %v333_v53  ;;  %v343_v0 = vld [vmem:[%s6539_s1 + $0x968] sm:$0xff] }
  0x6d   :  { %v336_v61 = vld [vmem:[%s6539_s1 + $0x930] sm:$0xff] }
  0x6e   :  { %2731 = vmatpush1.bf16.msra.mxu0 %v2730_v9  ;;  %v302_v9 = vld [vmem:[%s6539_s1 + $0x820] sm:$0xff] }
  0x6f   :  { %2927 = vmatpush1.bf16.msra.mxu1 %v2926_v10  ;;  %2733 = vmatprep.subr.bf16.mxu0 %v2732_v11  ;;  %v300_v10 = vld [vmem:[%s6539_s1 + $0x810] sm:$0xff]  ;;  %v2948_v11 = vpack.c.bf16 %v305_v4, %v301_v3  ;;  %v2754_v18 = vpack.c.bf16 %v302_v9, %v298_v8 }
  0x70   :  { %2929 = vmatprep.subr.bf16.mxu1 %v2928_v15  ;;  %v309_v15 = vld [vmem:[%s6539_s1 + $0x858] sm:$0xff]  ;;  %v2950_v19 = vpack.c.bf16 %v304_v12, %v300_v10 }
  0x71   :  { %v2952_v24 = vpack.c.bf16 %v313_v16, %v309_v15 }
  0x72   :  { %2735 = vmatpush1.bf16.msra.mxu0 %v2734_v21  ;;  %v306_v21 = vld [vmem:[%s6539_s1 + $0x840] sm:$0xff] }
  0x73   :  { %2931 = vmatpush1.bf16.msra.mxu1 %v2930_v22  ;;  %2737 = vmatprep.subr.bf16.mxu0 %v2736_v23  ;;  %v310_v22 = vld [vmem:[%s6539_s1 + $0x860] sm:$0xff]  ;;  %v308_v23 = vld [vmem:[%s6539_s1 + $0x850] sm:$0xff] }
  0x74   :  { %2933 = vmatprep.subr.bf16.mxu1 %v2932_v27  ;;  %v319_v27 = vld [vmem:[%s6539_s1 + $0x8a8] sm:$0xff]  ;;  %v2758_v31 = vpack.c.bf16 %v310_v22, %v306_v21  ;;  %v2954_v32 = vpack.c.bf16 %v312_v25, %v308_v23 }
  0x76   :  { %2739 = vmatpush1.bf16.msra.mxu0 %v2738_v33  ;;  %v2760_v33 = vpack.c.bf16 %v319_v27, %v315_v26 }
  0x77   :  { %2935 = vmatpush1.bf16.msra.mxu1 %v2934_v34  ;;  %2741 = vmatprep.subr.bf16.mxu0 %v2740_v35  ;;  %v314_v34 = vld [vmem:[%s6539_s1 + $0x880] sm:$0xff] }
  0x78   :  { %2937 = vmatprep.subr.bf16.mxu1 %v2936_v39  ;;  %v318_v35 = vld [vmem:[%s6539_s1 + $0x8a0] sm:$0xff]  ;;  %v323_v39 = vld [vmem:[%s6539_s1 + $0x8c8] sm:$0xff] }
  0x79   :  { %v2762_v43 = vpack.c.bf16 %v318_v35, %v314_v34 }
  0x7a   :  { %2743 = vmatpush1.bf16.msra.mxu0 %v2742_v45  ;;  %v2764_v45 = vpack.c.bf16 %v327_v40, %v323_v39 }
  0x7b   :  { %2939 = vmatpush1.bf16.msra.mxu1 %v2938_v46  ;;  %2745 = vmatprep.subr.bf16.mxu0 %v2744_v47  ;;  %v322_v46 = vld [vmem:[%s6539_s1 + $0x8c0] sm:$0xff] }
  0x7c   :  { %2941 = vmatprep.subr.bf16.mxu1 %v2940_v51  ;;  %v326_v47 = vld [vmem:[%s6539_s1 + $0x8e0] sm:$0xff]  ;;  %v331_v51 = vld [vmem:[%s6539_s1 + $0x908] sm:$0xff] }
  0x7d   :  { %v2766_v55 = vpack.c.bf16 %v326_v47, %v322_v46 }
  0x7e   :  { %2747 = vmatpush1.bf16.msra.mxu0 %v2746_v57  ;;  %v2962_v57 = vpack.c.bf16 %v328_v50, %v324_v48 }
  0x7f   :  { %2943 = vmatpush1.bf16.msra.mxu1 %v2942_v58  ;;  %2749 = vmatprep.subr.bf16.mxu0 %v2748_v59  ;;  %v2768_v58 = vpack.c.bf16 %v335_v52, %v331_v51  ;;  %v334_v59 = vld [vmem:[%s6539_s1 + $0x920] sm:$0xff] }
  0x80   :  { %2945 = vmatprep.subr.bf16.mxu1 %v2944_v63  ;;  %v339_v63 = vld [vmem:[%s6539_s1 + $0x948] sm:$0xff] }
  0x82   :  { %2751 = vmatpush1.bf16.msra.mxu0 %v2750_v5 }
  0x83   :  { %2947 = vmatpush1.bf16.msra.mxu1 %v2946_v6  ;;  %2753 = vmatprep.subr.bf16.mxu0 %v2752_v7 }
  0x84   :  { %2949 = vmatprep.subr.bf16.mxu1 %v2948_v11 }
  0x85   :  { %596 = vmatmul.mubr.f32.vlgmr.msra.gmra.mrb[0].mxu0 %v37_v17 }
  0x86   :  { %2755 = vmatpush1.bf16.msra.mxu0 %v2754_v18  ;;  %880 = vmatmul.mubr.f32.vlgmr.msra.gmra.mrb[0].mxu1 %v37_v17 }
  0x87   :  { %2951 = vmatpush1.bf16.msra.mxu1 %v2950_v19  ;;  %2757 = vmatprep.subr.bf16.mxu0 %v2756_v20 }
  0x88   :  { %2953 = vmatprep.subr.bf16.mxu1 %v2952_v24  ;;  %666 = vmatprep.mubr.f32.mxu0 %v40_v30 }
  0x89   :  { %950 = vmatprep.mubr.f32.mxu1 %v40_v30 }
  0x8a   :  { %2759 = vmatpush1.bf16.msra.mxu0 %v2758_v31 }
  0x8b   :  { %2955 = vmatpush1.bf16.msra.mxu1 %v2954_v32  ;;  %2761 = vmatprep.subr.bf16.mxu0 %v2760_v33 }
  0x8c   :  { %2957 = vmatprep.subr.bf16.mxu1 %v2956_v37 }
  0x8e   :  { %2763 = vmatpush1.bf16.msra.mxu0 %v2762_v43 }
  0x8f   :  { %2959 = vmatpush1.bf16.msra.mxu1 %v2958_v44  ;;  %2765 = vmatprep.subr.bf16.mxu0 %v2764_v45 }
  0x90   :  { %2961 = vmatprep.subr.bf16.mxu1 %v2960_v49 }
  0x91   :  { %16 = vsyncpa [#allocation3], 0  ;;  %v341_v1 = vld [vmem:[%s6539_s1 + $0x958] sm:$0xff]  ;;  %v2770_v3 = vpack.c.bf16 %v334_v59, %v330_v56  ;;  %v2966_v4 = vpack.c.bf16 %v336_v61, %v332_v60  ;;  %v2772_v5 = vpack.c.bf16 %v343_v0, %v339_v63  ;;  %v338_v6 = vld [vmem:[%s6539_s1 + $0x940] sm:$0xff]  ;;  %vm456_vm0 = vcmask 130048  }
  0x92   :  { %v345_v2 = vld [vmem:[%s6539_s1 + $0x978] sm:$0xff]  ;;  %2767 = vmatpush1.bf16.msra.mxu0 %v2766_v55  ;;  %v342_v7 = vld [vmem:[%s6539_s1 + $0x960] sm:$0xff]  ;;  %v340_v8 = vld [vmem:[%s6539_s1 + $0x950] sm:$0xff]  ;;  %vm1243_vm1 = vcmask 31744  }
  0x93   :  { %2963 = vmatpush1.bf16.msra.mxu1 %v2962_v57  ;;  %2769 = vmatprep.subr.bf16.mxu0 %v2768_v58  ;;  %v2968_v9 = vpack.c.bf16 %v345_v2, %v341_v1  ;;  %v344_v10 = vld [vmem:[%s6539_s1 + $0x970] sm:$0xff]  ;;  %v347_v11 = vld [vmem:[%s6539_s1 + $0x988] sm:$0xff]  ;;  %v349_v13 = vld [vmem:[%s6539_s1 + $0x998] sm:$0xff]  ;;  %v2774_v15 = vpack.c.bf16 %v342_v7, %v338_v6 }
  0x94   :  { %2965 = vmatprep.subr.bf16.mxu1 %v2964_v62  ;;  %v351_v12 = vld [vmem:[%s6539_s1 + $0x9a8] sm:$0xff]  ;;  %v353_v14 = vld [vmem:[%s6539_s1 + $0x9b8] sm:$0xff]  ;;  %v2970_v16 = vpack.c.bf16 %v344_v10, %v340_v8  ;;  %v346_v18 = vld [vmem:[%s6539_s1 + $0x980] sm:$0xff] }
  0x95   :  { %v2776_v17 = vpack.c.bf16 %v351_v12, %v347_v11  ;;  %v350_v19 = vld [vmem:[%s6539_s1 + $0x9a0] sm:$0xff]  ;;  %v348_v20 = vld [vmem:[%s6539_s1 + $0x990] sm:$0xff]  ;;  %v2972_v21 = vpack.c.bf16 %v353_v14, %v349_v13  ;;  %v355_v23 = vld [vmem:[%s6539_s1 + $0x9c8] sm:$0xff] }
  0x96   :  { %2771 = vmatpush1.bf16.msra.mxu0 %v2770_v3  ;;  %v352_v22 = vld [vmem:[%s6539_s1 + $0x9b0] sm:$0xff]  ;;  %v359_v24 = vld [vmem:[%s6539_s1 + $0x9e8] sm:$0xff]  ;;  %v357_v25 = vld [vmem:[%s6539_s1 + $0x9d8] sm:$0xff]  ;;  %v2778_v27 = vpack.c.bf16 %v350_v19, %v346_v18 }
  0x97   :  { %2967 = vmatpush1.bf16.msra.mxu1 %v2966_v4  ;;  %2773 = vmatprep.subr.bf16.mxu0 %v2772_v5  ;;  %v361_v26 = vld [vmem:[%s6539_s1 + $0x9f8] sm:$0xff]  ;;  %v2974_v28 = vpack.c.bf16 %v352_v22, %v348_v20  ;;  %v2780_v29 = vpack.c.bf16 %v359_v24, %v355_v23  ;;  %v354_v30 = vld [vmem:[%s6539_s1 + $0x9c0] sm:$0xff]  ;;  %v356_v32 = vld [vmem:[%s6539_s1 + $0x9d0] sm:$0xff] }
  0x98   :  { %2969 = vmatprep.subr.bf16.mxu1 %v2968_v9  ;;  %v358_v31 = vld [vmem:[%s6539_s1 + $0x9e0] sm:$0xff]  ;;  %v2976_v33 = vpack.c.bf16 %v361_v26, %v357_v25  ;;  %v360_v34 = vld [vmem:[%s6539_s1 + $0x9f0] sm:$0xff]  ;;  %v363_v35 = vld [vmem:[%s6539_s1 + $0xa08] sm:$0xff] }
  0x99   :  { %v367_v36 = vld [vmem:[%s6539_s1 + $0xa28] sm:$0xff]  ;;  %v365_v37 = vld [vmem:[%s6539_s1 + $0xa18] sm:$0xff]  ;;  %v2782_v39 = vpack.c.bf16 %v358_v31, %v354_v30  ;;  %v2978_v40 = vpack.c.bf16 %v360_v34, %v356_v32  ;;  %v362_v42 = vld [vmem:[%s6539_s1 + $0xa00] sm:$0xff] }
  0x9a   :  { %2775 = vmatpush1.bf16.msra.mxu0 %v2774_v15  ;;  %v369_v38 = vld [vmem:[%s6539_s1 + $0xa38] sm:$0xff]  ;;  %v2784_v41 = vpack.c.bf16 %v367_v36, %v363_v35  ;;  %v366_v43 = vld [vmem:[%s6539_s1 + $0xa20] sm:$0xff]  ;;  %v364_v44 = vld [vmem:[%s6539_s1 + $0xa10] sm:$0xff] }
  0x9b   :  { %2971 = vmatpush1.bf16.msra.mxu1 %v2970_v16  ;;  %2777 = vmatprep.subr.bf16.mxu0 %v2776_v17  ;;  %v2980_v45 = vpack.c.bf16 %v369_v38, %v365_v37  ;;  %v368_v46 = vld [vmem:[%s6539_s1 + $0xa30] sm:$0xff]  ;;  %v371_v47 = vld [vmem:[%s6539_s1 + $0xa48] sm:$0xff]  ;;  %v373_v49 = vld [vmem:[%s6539_s1 + $0xa58] sm:$0xff]  ;;  %v2786_v51 = vpack.c.bf16 %v366_v43, %v362_v42 }
  0x9c   :  { %2973 = vmatprep.subr.bf16.mxu1 %v2972_v21  ;;  %v375_v48 = vld [vmem:[%s6539_s1 + $0xa68] sm:$0xff]  ;;  %v377_v50 = vld [vmem:[%s6539_s1 + $0xa78] sm:$0xff]  ;;  %v2982_v52 = vpack.c.bf16 %v368_v46, %v364_v44  ;;  %v370_v54 = vld [vmem:[%s6539_s1 + $0xa40] sm:$0xff] }
  0x9d   :  { %v2788_v53 = vpack.c.bf16 %v375_v48, %v371_v47  ;;  %v374_v55 = vld [vmem:[%s6539_s1 + $0xa60] sm:$0xff]  ;;  %v372_v56 = vld [vmem:[%s6539_s1 + $0xa50] sm:$0xff]  ;;  %v2984_v57 = vpack.c.bf16 %v377_v50, %v373_v49  ;;  %v379_v59 = vld [vmem:[%s6539_s1 + $0xa88] sm:$0xff] }
  0x9e   :  { %2779 = vmatpush1.bf16.msra.mxu0 %v2778_v27  ;;  %v376_v58 = vld [vmem:[%s6539_s1 + $0xa70] sm:$0xff]  ;;  %v383_v60 = vld [vmem:[%s6539_s1 + $0xaa8] sm:$0xff]  ;;  %v381_v61 = vld [vmem:[%s6539_s1 + $0xa98] sm:$0xff]  ;;  %v2790_v63 = vpack.c.bf16 %v374_v55, %v370_v54 }
  0x9f   :  { %2975 = vmatpush1.bf16.msra.mxu1 %v2974_v28  ;;  %2781 = vmatprep.subr.bf16.mxu0 %v2780_v29  ;;  %v385_v62 = vld [vmem:[%s6539_s1 + $0xab8] sm:$0xff]  ;;  %v2986_v0 = vpack.c.bf16 %v376_v58, %v372_v56  ;;  %v2792_v1 = vpack.c.bf16 %v383_v60, %v379_v59  ;;  %v378_v2 = vld [vmem:[%s6539_s1 + $0xa80] sm:$0xff]  ;;  %v380_v4 = vld [vmem:[%s6539_s1 + $0xa90] sm:$0xff] }
  0xa0   :  { %2977 = vmatprep.subr.bf16.mxu1 %v2976_v33  ;;  %v382_v3 = vld [vmem:[%s6539_s1 + $0xaa0] sm:$0xff]  ;;  %v2988_v5 = vpack.c.bf16 %v385_v62, %v381_v61  ;;  %v384_v6 = vld [vmem:[%s6539_s1 + $0xab0] sm:$0xff]  ;;  %v387_v7 = vld [vmem:[%s6539_s1 + $0xac8] sm:$0xff] }
  0xa1   :  { %v391_v8 = vld [vmem:[%s6539_s1 + $0xae8] sm:$0xff]  ;;  %v389_v9 = vld [vmem:[%s6539_s1 + $0xad8] sm:$0xff]  ;;  %v2794_v11 = vpack.c.bf16 %v382_v3, %v378_v2  ;;  %v2990_v12 = vpack.c.bf16 %v384_v6, %v380_v4  ;;  %v386_v14 = vld [vmem:[%s6539_s1 + $0xac0] sm:$0xff] }
  0xa2   :  { %2783 = vmatpush1.bf16.msra.mxu0 %v2782_v39  ;;  %v393_v10 = vld [vmem:[%s6539_s1 + $0xaf8] sm:$0xff]  ;;  %v2796_v13 = vpack.c.bf16 %v391_v8, %v387_v7  ;;  %v390_v15 = vld [vmem:[%s6539_s1 + $0xae0] sm:$0xff]  ;;  %v388_v16 = vld [vmem:[%s6539_s1 + $0xad0] sm:$0xff] }
  0xa3   :  { %2979 = vmatpush1.bf16.msra.mxu1 %v2978_v40  ;;  %2785 = vmatprep.subr.bf16.mxu0 %v2784_v41  ;;  %v2992_v17 = vpack.c.bf16 %v393_v10, %v389_v9  ;;  %v392_v18 = vld [vmem:[%s6539_s1 + $0xaf0] sm:$0xff]  ;;  %v395_v19 = vld [vmem:[%s6539_s1 + $0xb08] sm:$0xff]  ;;  %v397_v21 = vld [vmem:[%s6539_s1 + $0xb18] sm:$0xff]  ;;  %v2798_v23 = vpack.c.bf16 %v390_v15, %v386_v14 }
  0xa4   :  { %2981 = vmatprep.subr.bf16.mxu1 %v2980_v45  ;;  %v399_v20 = vld [vmem:[%s6539_s1 + $0xb28] sm:$0xff]  ;;  %v401_v22 = vld [vmem:[%s6539_s1 + $0xb38] sm:$0xff]  ;;  %v2994_v24 = vpack.c.bf16 %v392_v18, %v388_v16  ;;  %v394_v26 = vld [vmem:[%s6539_s1 + $0xb00] sm:$0xff] }
  0xa5   :  { %v2800_v25 = vpack.c.bf16 %v399_v20, %v395_v19  ;;  %v398_v27 = vld [vmem:[%s6539_s1 + $0xb20] sm:$0xff]  ;;  %v396_v28 = vld [vmem:[%s6539_s1 + $0xb10] sm:$0xff]  ;;  %v2996_v29 = vpack.c.bf16 %v401_v22, %v397_v21  ;;  %v403_v31 = vld [vmem:[%s6539_s1 + $0xb48] sm:$0xff]  ;;  %v3614_v21 = vmov 0.0  }
  0xa6   :  { %2787 = vmatpush1.bf16.msra.mxu0 %v2786_v51  ;;  %v400_v30 = vld [vmem:[%s6539_s1 + $0xb30] sm:$0xff]  ;;  %v407_v32 = vld [vmem:[%s6539_s1 + $0xb68] sm:$0xff]  ;;  %v405_v33 = vld [vmem:[%s6539_s1 + $0xb58] sm:$0xff]  ;;  %v2802_v35 = vpack.c.bf16 %v398_v27, %v394_v26 }
  0xa7   :  { %2983 = vmatpush1.bf16.msra.mxu1 %v2982_v52  ;;  %2789 = vmatprep.subr.bf16.mxu0 %v2788_v53  ;;  %v409_v34 = vld [vmem:[%s6539_s1 + $0xb78] sm:$0xff]  ;;  %v2998_v36 = vpack.c.bf16 %v400_v30, %v396_v28  ;;  %v2804_v37 = vpack.c.bf16 %v407_v32, %v403_v31  ;;  %v402_v38 = vld [vmem:[%s6539_s1 + $0xb40] sm:$0xff]  ;;  %v404_v40 = vld [vmem:[%s6539_s1 + $0xb50] sm:$0xff] }
  0xa8   :  { %2985 = vmatprep.subr.bf16.mxu1 %v2984_v57  ;;  %v406_v39 = vld [vmem:[%s6539_s1 + $0xb60] sm:$0xff]  ;;  %v3000_v41 = vpack.c.bf16 %v409_v34, %v405_v33  ;;  %v408_v42 = vld [vmem:[%s6539_s1 + $0xb70] sm:$0xff]  ;;  %v411_v43 = vld [vmem:[%s6539_s1 + $0xb88] sm:$0xff] }
  0xa9   :  { %v415_v44 = vld [vmem:[%s6539_s1 + $0xba8] sm:$0xff]  ;;  %v413_v45 = vld [vmem:[%s6539_s1 + $0xb98] sm:$0xff]  ;;  %v2806_v47 = vpack.c.bf16 %v406_v39, %v402_v38  ;;  %v3002_v48 = vpack.c.bf16 %v408_v42, %v404_v40  ;;  %v410_v50 = vld [vmem:[%s6539_s1 + $0xb80] sm:$0xff] }
  0xaa   :  { %2791 = vmatpush1.bf16.msra.mxu0 %v2790_v63  ;;  %v417_v46 = vld [vmem:[%s6539_s1 + $0xbb8] sm:$0xff]  ;;  %v2808_v49 = vpack.c.bf16 %v415_v44, %v411_v43  ;;  %v414_v51 = vld [vmem:[%s6539_s1 + $0xba0] sm:$0xff]  ;;  %v412_v52 = vld [vmem:[%s6539_s1 + $0xb90] sm:$0xff] }
  0xab   :  { %2987 = vmatpush1.bf16.msra.mxu1 %v2986_v0  ;;  %2793 = vmatprep.subr.bf16.mxu0 %v2792_v1  ;;  %v3004_v53 = vpack.c.bf16 %v417_v46, %v413_v45  ;;  %v416_v54 = vld [vmem:[%s6539_s1 + $0xbb0] sm:$0xff]  ;;  %v419_v55 = vld [vmem:[%s6539_s1 + $0xbc8] sm:$0xff]  ;;  %v421_v57 = vld [vmem:[%s6539_s1 + $0xbd8] sm:$0xff]  ;;  %v2810_v59 = vpack.c.bf16 %v414_v51, %v410_v50 }
  0xac   :  { %2989 = vmatprep.subr.bf16.mxu1 %v2988_v5  ;;  %v423_v56 = vld [vmem:[%s6539_s1 + $0xbe8] sm:$0xff]  ;;  %v425_v58 = vld [vmem:[%s6539_s1 + $0xbf8] sm:$0xff]  ;;  %v3006_v60 = vpack.c.bf16 %v416_v54, %v412_v52  ;;  %v418_v62 = vld [vmem:[%s6539_s1 + $0xbc0] sm:$0xff] }
  0xad   :  { %v2812_v61 = vpack.c.bf16 %v423_v56, %v419_v55  ;;  %v422_v63 = vld [vmem:[%s6539_s1 + $0xbe0] sm:$0xff]  ;;  %v420_v0 = vld [vmem:[%s6539_s1 + $0xbd0] sm:$0xff]  ;;  %v3008_v1 = vpack.c.bf16 %v425_v58, %v421_v57  ;;  %v427_v3 = vld [vmem:[%s6539_s1 + $0xc08] sm:$0xff] }
  0xae   :  { %2795 = vmatpush1.bf16.msra.mxu0 %v2794_v11  ;;  %v424_v2 = vld [vmem:[%s6539_s1 + $0xbf0] sm:$0xff]  ;;  %v431_v4 = vld [vmem:[%s6539_s1 + $0xc28] sm:$0xff]  ;;  %v429_v5 = vld [vmem:[%s6539_s1 + $0xc18] sm:$0xff]  ;;  %v2814_v7 = vpack.c.bf16 %v422_v63, %v418_v62 }
  0xaf   :  { %2991 = vmatpush1.bf16.msra.mxu1 %v2990_v12  ;;  %2797 = vmatprep.subr.bf16.mxu0 %v2796_v13  ;;  %v433_v6 = vld [vmem:[%s6539_s1 + $0xc38] sm:$0xff]  ;;  %v3010_v8 = vpack.c.bf16 %v424_v2, %v420_v0  ;;  %v2816_v9 = vpack.c.bf16 %v431_v4, %v427_v3  ;;  %v426_v10 = vld [vmem:[%s6539_s1 + $0xc00] sm:$0xff]  ;;  %v428_v13 = vld [vmem:[%s6539_s1 + $0xc10] sm:$0xff] }
  0xb0   :  { %2993 = vmatprep.subr.bf16.mxu1 %v2992_v17  ;;  %v430_v11 = vld [vmem:[%s6539_s1 + $0xc20] sm:$0xff]  ;;  %v3012_v12 = vpack.c.bf16 %v433_v6, %v429_v5  ;;  %v432_v14 = vld [vmem:[%s6539_s1 + $0xc30] sm:$0xff]  ;;  %v1049_v16 = vld [vmem:[%s6541_s3 + $0x88] sm:$0xff] }
  0xb1   :  { %v1048_v15 = vld [vmem:[%s6541_s3 + $0x80] sm:$0xff]  ;;  %v2818_v18 = vpack.c.bf16 %v430_v11, %v426_v10  ;;  %v3014_v19 = vpack.c.bf16 %v432_v14, %v428_v13  ;;  %v41_v26 = vld [vmem:[%s6538_s0 + $0x30] sm:$0xff]  ;;  %v1035_v30 = vld [vmem:[%s6541_s3 + $0x18] sm:$0xff] }
  0xb2   :  { %2799 = vmatpush1.bf16.msra.mxu0 %v2798_v23  ;;  %v39_v17 = vld [vmem:[%s6538_s0 + $0x20] sm:$0xff]  ;;  %v3016_v20 = vpack.c.bf16 %v1049_v16, %v1048_v15  ;;  %v1033_v23 = vld [vmem:[%s6541_s3 + $0x8] sm:$0xff]  ;;  %v1055_v38 = vld [vmem:[%s6541_s3 + $0xb8] sm:$0xff] }
  0xb3   :  { %2995 = vmatpush1.bf16.msra.mxu1 %v2994_v24  ;;  %2801 = vmatprep.subr.bf16.mxu0 %v2800_v25  ;;  %v1032_v22 = vld [vmem:[%s6541_s3] sm:$0xff]  ;;  %v1050_v24 = vld [vmem:[%s6541_s3 + $0x90] sm:$0xff]  ;;  %v1051_v25 = vld [vmem:[%s6541_s3 + $0x98] sm:$0xff] }
  0xb4   :  { %2997 = vmatprep.subr.bf16.mxu1 %v2996_v29  ;;  %v3018_v27 = vpack.c.bf16 %v1033_v23, %v1032_v22  ;;  %v3020_v28 = vpack.c.bf16 %v1051_v25, %v1050_v24  ;;  %v1034_v29 = vld [vmem:[%s6541_s3 + $0x10] sm:$0xff]  ;;  %v1052_v31 = vld [vmem:[%s6541_s3 + $0xa0] sm:$0xff]  ;;  %v1053_v32 = vld [vmem:[%s6541_s3 + $0xa8] sm:$0xff] }
  0xb5   :  { %v3022_v33 = vpack.c.bf16 %v1035_v30, %v1034_v29  ;;  %v3024_v34 = vpack.c.bf16 %v1053_v32, %v1052_v31  ;;  %v1039_v42 = vld [vmem:[%s6541_s3 + $0x38] sm:$0xff]  ;;  %v1056_v43 = vld [vmem:[%s6541_s3 + $0xc0] sm:$0xff]  ;;  %v1057_v44 = vld [vmem:[%s6541_s3 + $0xc8] sm:$0xff] }
  0xb6   :  { %2803 = vmatpush1.bf16.msra.mxu0 %v2802_v35  ;;  %v1036_v35 = vld [vmem:[%s6541_s3 + $0x20] sm:$0xff]  ;;  %v3032_v46 = vpack.c.bf16 %v1057_v44, %v1056_v43  ;;  %v1059_v50 = vld [vmem:[%s6541_s3 + $0xd8] sm:$0xff]  ;;  %v1061_v56 = vld [vmem:[%s6541_s3 + $0xe8] sm:$0xff] }
  0xb7   :  { %2999 = vmatpush1.bf16.msra.mxu1 %v2998_v36  ;;  %2805 = vmatprep.subr.bf16.mxu0 %v2804_v37  ;;  %v1037_v36 = vld [vmem:[%s6541_s3 + $0x28] sm:$0xff]  ;;  %v1054_v37 = vld [vmem:[%s6541_s3 + $0xb0] sm:$0xff]  ;;  %v1043_v54 = vld [vmem:[%s6541_s3 + $0x58] sm:$0xff] }
  0xb8   :  { %3001 = vmatprep.subr.bf16.mxu1 %v3000_v41  ;;  %v3026_v39 = vpack.c.bf16 %v1037_v36, %v1036_v35  ;;  %v3028_v40 = vpack.c.bf16 %v1055_v38, %v1054_v37  ;;  %v1038_v41 = vld [vmem:[%s6541_s3 + $0x30] sm:$0xff]  ;;  %v1060_v55 = vld [vmem:[%s6541_s3 + $0xe0] sm:$0xff]  ;;  %v1063_v63 = vld [vmem:[%s6541_s3 + $0xf8] sm:$0xff] }
  0xb9   :  { %v3030_v45 = vpack.c.bf16 %v1039_v42, %v1038_v41  ;;  %v3040_v58 = vpack.c.bf16 %v1061_v56, %v1060_v55  ;;  %v1062_v62 = vld [vmem:[%s6541_s3 + $0xf0] sm:$0xff]  ;;  %v1047_v2 = vld [vmem:[%s6541_s3 + $0x78] sm:$0xff]  ;;  %v1080_v4 = vld [vmem:[%s6541_s3 + $0x180] sm:$0xff] }
  0xba   :  { %2807 = vmatpush1.bf16.msra.mxu0 %v2806_v47  ;;  %v1040_v47 = vld [vmem:[%s6541_s3 + $0x40] sm:$0xff]  ;;  %v3044_v0 = vpack.c.bf16 %v1063_v63, %v1062_v62  ;;  %v1081_v5 = vld [vmem:[%s6541_s3 + $0x188] sm:$0xff]  ;;  %v1082_v24 = vld [vmem:[%s6541_s3 + $0x190] sm:$0xff] }
  0xbb   :  { %3003 = vmatpush1.bf16.msra.mxu1 %v3002_v48  ;;  %2809 = vmatprep.subr.bf16.mxu0 %v2808_v49  ;;  %v1041_v48 = vld [vmem:[%s6541_s3 + $0x48] sm:$0xff]  ;;  %v1058_v49 = vld [vmem:[%s6541_s3 + $0xd0] sm:$0xff]  ;;  %v3048_v6 = vpack.c.bf16 %v1081_v5, %v1080_v4  ;;  %v4982_v10 = vld [vmem:[%s6540_s2] sm:$0xf] }
  0xbc   :  { %3005 = vmatprep.subr.bf16.mxu1 %v3004_v53  ;;  %v3034_v51 = vpack.c.bf16 %v1041_v48, %v1040_v47  ;;  %v3036_v52 = vpack.c.bf16 %v1059_v50, %v1058_v49  ;;  %v1042_v53 = vld [vmem:[%s6541_s3 + $0x50] sm:$0xff]  ;;  %v1083_v25 = vld [vmem:[%s6541_s3 + $0x198] sm:$0xff]  ;;  %v1085_v35 = vld [vmem:[%s6541_s3 + $0x1a8] sm:$0xff] }
  0xbd   :  { %v3038_v57 = vpack.c.bf16 %v1043_v54, %v1042_v53  ;;  %v3052_v30 = vpack.c.bf16 %v1083_v25, %v1082_v24  ;;  %v1066_v31 = vld [vmem:[%s6541_s3 + $0x110] sm:$0xff]  ;;  %v1067_v32 = vld [vmem:[%s6541_s3 + $0x118] sm:$0xff]  ;;  %v1068_v38 = vld [vmem:[%s6541_s3 + $0x120] sm:$0xff] }
  0xbe   :  { %2811 = vmatpush1.bf16.msra.mxu0 %v2810_v59  ;;  %v1044_v59 = vld [vmem:[%s6541_s3 + $0x60] sm:$0xff]  ;;  %v3054_v36 = vpack.c.bf16 %v1067_v32, %v1066_v31  ;;  %v1087_v41 = vld [vmem:[%s6541_s3 + $0x1b8] sm:$0xff]  ;;  %v1070_v44 = vld [vmem:[%s6541_s3 + $0x130] sm:$0xff] }
  0xbf   :  { %3007 = vmatpush1.bf16.msra.mxu1 %v3006_v60  ;;  %2813 = vmatprep.subr.bf16.mxu0 %v2812_v61  ;;  %v1045_v60 = vld [vmem:[%s6541_s3 + $0x68] sm:$0xff]  ;;  %v1072_v50 = vld [vmem:[%s6541_s3 + $0x140] sm:$0xff]  ;;  %v1091_v53 = vld [vmem:[%s6541_s3 + $0x1d8] sm:$0xff] }
  0xc0   :  { %3009 = vmatprep.subr.bf16.mxu1 %v3008_v1  ;;  %v3042_v61 = vpack.c.bf16 %v1045_v60, %v1044_v59  ;;  %v1046_v1 = vld [vmem:[%s6541_s3 + $0x70] sm:$0xff]  ;;  %v1089_v47 = vld [vmem:[%s6541_s3 + $0x1c8] sm:$0xff]  ;;  %v1076_v63 = vld [vmem:[%s6541_s3 + $0x160] sm:$0xff] }
  0xc1   :  { %v3046_v3 = vpack.c.bf16 %v1047_v2, %v1046_v1  ;;  %v1074_v56 = vld [vmem:[%s6541_s3 + $0x150] sm:$0xff]  ;;  %v1093_v59 = vld [vmem:[%s6541_s3 + $0x1e8] sm:$0xff]  ;;  %v1095_v2 = vld [vmem:[%s6541_s3 + $0x1f8] sm:$0xff] }
  0xc2   :  { %2815 = vmatpush1.bf16.msra.mxu0 %v2814_v7  ;;  %v436_v7 = vlaneseq  ;;  %v1094_v1 = vld [vmem:[%s6541_s3 + $0x1f0] sm:$0xff]  ;;  %v1394_v31 = vld [vmem:[%s6545_s7 + $0xc0] sm:$0xff] }
  0xc3   :  { %3011 = vmatpush1.bf16.msra.mxu1 %v3010_v8  ;;  %2817 = vmatprep.subr.bf16.mxu0 %v2816_v9  ;;  %v3076_v5 = vpack.c.bf16 %v1095_v2, %v1094_v1  ;;  %v1372_v25 = vld [vmem:[%s6545_s7 + $0x10] sm:$0xff]  ;;  %v1429_v1 = vld [vmem:[%s6545_s7 + $0x1d8] sm:$0xff] }
  0xc4   :  { %3013 = vmatprep.subr.bf16.mxu1 %v3012_v12  ;;  %v4974_v8 = vshrl.u32 %v436_v7, 7  ;;  %v1079_v7 = vld [vmem:[%s6541_s3 + $0x178] sm:$0xff]  ;;  %v1436_v2 = vld [vmem:[%s6545_s7 + $0x210] sm:$0xff] }
  0xc5   :  { %667 = vmatmul.mubr.f32.vlgmr.msra.gmra.mrb[0].mxu0 %v39_v17 }
  0xc6   :  { %951 = vmatmul.mubr.f32.vlgmr.msra.gmra.mrb[0].mxu1 %v39_v17  ;;  %2819 = vmatpush1.bf16.msra.mxu0 %v2818_v18  ;;  %v4977_v9 = vsub.s32 0, %v4974_v8  ;;  %v4985_v11 = vsub.s32 1, %v4974_v8  ;;  %v4988_v12 = vsub.s32 3, %v4974_v8 }
  0xc7   :  { %3015 = vmatpush1.bf16.msra.mxu1 %v3014_v19  ;;  %737 = vmatprep.mubr.f32.mxu0 %v3614_v21 }
  0xc8   :  { %1021 = vmatprep.mubr.f32.mxu1 %v3614_v21  ;;  %3017 = vmatprep.subr.bf16.mxu1 %v3016_v20  ;;  %v439_v13 = vrot.slane %v4982_v10, %v4977_v9  ;;  %v443_v14 = vrot.slane %v4982_v10, %v4985_v11  ;;  %v451_v15 = vrot.slane %v4982_v10, %v4988_v12  ;;  %v1064_v20 = vld [vmem:[%s6541_s3 + $0x100] sm:$0xff]  ;;  %v1065_v21 = vld [vmem:[%s6541_s3 + $0x108] sm:$0xff] }
  0xcd   :  { %2481 = vmatmul.mubr.msk.f32.vlgmr.msra.gmra.mrb[0].mxu0 %vm456_vm0, %v41_v26 }
  0xce   :  { %2482 = vmatmul.mubr.msk.f32.vlgmr.msra.gmra.mrb[0].mxu1 %vm456_vm0, %v41_v26 }
  0xcf   :  { %3019 = vmatpush3.bf16.msra.mxu1 %v3018_v27 }
  0xd0   :  { %3021 = vmatprep.subr.bf16.mxu1 %v3020_v28  ;;  %v3050_v28 = vpack.c.bf16 %v1065_v21, %v1064_v20  ;;  %v1370_v21 = vld [vmem:[%s6545_s7] sm:$0xff] }
  0xd3   :  { %3023 = vmatpush3.bf16.msra.mxu1 %v3022_v33 }
  0xd4   :  { %3025 = vmatprep.subr.bf16.mxu1 %v3024_v34  ;;  %v1084_v34 = vld [vmem:[%s6541_s3 + $0x1a0] sm:$0xff] }
  0xd5   :  { %v3056_v37 = vpack.c.bf16 %v1085_v35, %v1084_v34  ;;  %v1384_v34 = vld [vmem:[%s6545_s7 + $0x70] sm:$0xff]  ;;  %v1391_v35 = vld [vmem:[%s6545_s7 + $0xa8] sm:$0xff] }
  0xd7   :  { %3027 = vmatpush3.bf16.msra.mxu1 %v3026_v39  ;;  %v1069_v39 = vld [vmem:[%s6541_s3 + $0x128] sm:$0xff] }
  0xd8   :  { %3029 = vmatprep.subr.bf16.mxu1 %v3028_v40  ;;  %v1086_v40 = vld [vmem:[%s6541_s3 + $0x1b0] sm:$0xff]  ;;  %v3058_v42 = vpack.c.bf16 %v1069_v39, %v1068_v38  ;;  %v1393_v38 = vld [vmem:[%s6545_s7 + $0xb8] sm:$0xff]  ;;  %v1399_v39 = vld [vmem:[%s6545_s7 + $0xe8] sm:$0xff] }
  0xd9   :  { %v3060_v43 = vpack.c.bf16 %v1087_v41, %v1086_v40  ;;  %v1406_v40 = vld [vmem:[%s6545_s7 + $0x120] sm:$0xff] }
  0xdb   :  { %3031 = vmatpush3.bf16.msra.mxu1 %v3030_v45  ;;  %v1071_v45 = vld [vmem:[%s6541_s3 + $0x138] sm:$0xff] }
  0xdc   :  { %3033 = vmatprep.subr.bf16.mxu1 %v3032_v46  ;;  %v1088_v46 = vld [vmem:[%s6541_s3 + $0x1c0] sm:$0xff]  ;;  %v3062_v48 = vpack.c.bf16 %v1071_v45, %v1070_v44  ;;  %v1408_v44 = vld [vmem:[%s6545_s7 + $0x130] sm:$0xff] }
  0xdd   :  { %v3064_v49 = vpack.c.bf16 %v1089_v47, %v1088_v46  ;;  %v1398_v45 = vld [vmem:[%s6545_s7 + $0xe0] sm:$0xff]  ;;  %v1405_v47 = vld [vmem:[%s6545_s7 + $0x118] sm:$0xff] }
  0xdf   :  { %3035 = vmatpush3.bf16.msra.mxu1 %v3034_v51  ;;  %v1073_v51 = vld [vmem:[%s6541_s3 + $0x148] sm:$0xff] }
  0xe0   :  { %3037 = vmatprep.subr.bf16.mxu1 %v3036_v52  ;;  %v1090_v52 = vld [vmem:[%s6541_s3 + $0x1d0] sm:$0xff]  ;;  %v3066_v54 = vpack.c.bf16 %v1073_v51, %v1072_v50  ;;  %v3090_v50 = vpack.c.bf16 %v1405_v47, %v1398_v45  ;;  %v1413_v51 = vld [vmem:[%s6545_s7 + $0x158] sm:$0xff]  ;;  %v1475_v47 = vld [vmem:[%s6545_s7 + $0x348] sm:$0xff] }
  0xe1   :  { %v3068_v55 = vpack.c.bf16 %v1091_v53, %v1090_v52  ;;  %v1420_v52 = vld [vmem:[%s6545_s7 + $0x190] sm:$0xff]  ;;  %v1415_v53 = vld [vmem:[%s6545_s7 + $0x168] sm:$0xff] }
  0xe3   :  { %3039 = vmatpush3.bf16.msra.mxu1 %v3038_v57  ;;  %v1075_v57 = vld [vmem:[%s6541_s3 + $0x158] sm:$0xff] }
  0xe4   :  { %3041 = vmatprep.subr.bf16.mxu1 %v3040_v58  ;;  %v1092_v58 = vld [vmem:[%s6541_s3 + $0x1e0] sm:$0xff]  ;;  %v3070_v60 = vpack.c.bf16 %v1075_v57, %v1074_v56  ;;  %v1412_v57 = vld [vmem:[%s6545_s7 + $0x150] sm:$0xff] }
  0xe5   :  { %v3072_v62 = vpack.c.bf16 %v1093_v59, %v1092_v58  ;;  %v1422_v56 = vld [vmem:[%s6545_s7 + $0x1a0] sm:$0xff]  ;;  %v1419_v58 = vld [vmem:[%s6545_s7 + $0x188] sm:$0xff] }
  0xe6   :  { %v3220_v59 = vpack.c.bf16 %v1422_v56, %v1415_v53  ;;  %v1485_v53 = vld [vmem:[%s6545_s7 + $0x398] sm:$0xff] }
  0xe7   :  { %3043 = vmatpush3.bf16.msra.mxu1 %v3042_v61  ;;  %v5071_v61 = vsub.s32 2, %v4974_v8 }
  0xe8   :  { %3045 = vmatprep.subr.bf16.mxu1 %v3044_v0  ;;  %v1077_v0 = vld [vmem:[%s6541_s3 + $0x168] sm:$0xff] }
  0xe9   :  { %v447_v4 = vrot.slane %v4982_v10, %v5071_v61  ;;  %v1371_v10 = vld [vmem:[%s6545_s7 + $0x8] sm:$0xff] }
  0xeb   :  { %3047 = vmatpush3.bf16.msra.mxu1 %v3046_v3  ;;  %v3074_v3 = vpack.c.bf16 %v1077_v0, %v1076_v63  ;;  %v1427_v63 = vld [vmem:[%s6545_s7 + $0x1c8] sm:$0xff]  ;;  %v1434_v0 = vld [vmem:[%s6545_s7 + $0x200] sm:$0xff] }
  0xec   :  { %3049 = vmatprep.subr.bf16.mxu1 %v3048_v6  ;;  %v1078_v6 = vld [vmem:[%s6541_s3 + $0x170] sm:$0xff] }
 0x1a0   :  { %v739_v16 = vpop.f32.mrb[0].mxu0 }
 0x1a1   :  { %v3528_v17 = vadd.f32 %v739_v16, %v439_v13  ;;  %v4996_v18 = vpop.f32.mrb[0].mxu1  ;;  %v741_v19 = vpop.f32.mrb[1].mxu0  ;;  %v3078_v13 = vpack.c.bf16 %v1079_v7, %v1078_v6  ;;  %v3615_v16 = vmov 0   ;;  %v1426_v6 = vld [vmem:[%s6545_s7 + $0x1c0] sm:$0xff]  ;;  %v1433_v7 = vld [vmem:[%s6545_s7 + $0x1f8] sm:$0xff] }
 0x1a2   :  { %v3529_v22 = vadd.f32 %v741_v19, %v443_v14  ;;  %v1025_v23 = vpop.f32.mrb[1].mxu1  ;;  %v3530_v14 = vadd.f32 %v4996_v18, %v447_v4  ;;  %3560 = vset.pattern.permute.xlu0 %v3615_v16  ;;  %v1373_v19 = vld [vmem:[%s6545_s7 + $0x18] sm:$0xff]  ;;  %v1380_v18 = vld [vmem:[%s6545_s7 + $0x50] sm:$0xff] }
 0x1a3   :  { %v3531_v26 = vadd.f32 %v1025_v23, %v451_v15  ;;  %v1028_v29 = vmax.f32 %v3528_v17, 0.0  ;;  %v1378_v17 = vld [vmem:[%s6545_s7 + $0x40] sm:$0xff]  ;;  %v3208_v23 = vpack.c.bf16 %v1380_v18, %v1373_v19  ;;  %v1441_v16 = vld [vmem:[%s6545_s7 + $0x238] sm:$0xff] }
 0x1a4   :  { %v1029_v27 = vmax.f32 %v3529_v22, 0.0  ;;  %v1030_v15 = vmax.f32 %v3530_v14, 0.0  ;;  %v3080_v20 = vpack.c.bf16 %v1378_v17, %v1371_v10  ;;  %v1377_v22 = vld [vmem:[%s6545_s7 + $0x38] sm:$0xff]  ;;  %v3224_v14 = vpack.c.bf16 %v1436_v2, %v1429_v1  ;;  %v1448_v10 = vld [vmem:[%s6545_s7 + $0x270] sm:$0xff]  ;;  %v1443_v17 = vld [vmem:[%s6545_s7 + $0x248] sm:$0xff] }
 0x1a5   :  { %v1031_v33 = vmax.f32 %v3531_v26, 0.0  ;;  %v3082_v24 = vpack.c.bf16 %v1377_v22, %v1370_v21  ;;  %v1379_v26 = vld [vmem:[%s6545_s7 + $0x48] sm:$0xff]  ;;  %v1450_v19 = vld [vmem:[%s6545_s7 + $0x280] sm:$0xff]  ;;  %v3100_v21 = vpack.c.bf16 %v1448_v10, %v1441_v16  ;;  %v1440_v22 = vld [vmem:[%s6545_s7 + $0x230] sm:$0xff] }
 0x1a6   :  { %1167 = vmatprep.mubr.f32.mxu1 %v1029_v27  ;;  %v1385_v27 = vld [vmem:[%s6545_s7 + $0x78] sm:$0xff]  ;;  %3081 = vmatprep.subr.bf16.mxu0 %v3080_v20  ;;  %v3098_v20 = vpack.c.bf16 %v1433_v7, %v1426_v6  ;;  %v1504_v1 = vld [vmem:[%s6545_s7 + $0x430] sm:$0xff]  ;;  %v1499_v2 = vld [vmem:[%s6545_s7 + $0x408] sm:$0xff] }
 0x1a7   :  { %1168 = vmatmul.mubr.f32.vlgmr.msra.gmra.mrb[2].mxu1 %v1028_v29  ;;  %v1392_v29 = vld [vmem:[%s6545_s7 + $0xb0] sm:$0xff]  ;;  %3083 = vmatpush1.bf16.msra.mxu0 %v3082_v24  ;;  %v1442_v24 = vld [vmem:[%s6545_s7 + $0x240] sm:$0xff]  ;;  %v1505_v16 = vld [vmem:[%s6545_s7 + $0x438] sm:$0xff] }
 0x1a8   :  { %3051 = vmatpush3.bf16.msra.mxu1 %v3050_v28  ;;  %1237 = vmatprep.mubr.f32.mxu1 %v1031_v33  ;;  %v3210_v28 = vpack.c.bf16 %v1379_v26, %v1372_v25  ;;  %v3084_v32 = vpack.c.bf16 %v1392_v29, %v1385_v27  ;;  %v3228_v25 = vpack.c.bf16 %v1450_v19, %v1443_v17  ;;  %v1449_v26 = vld [vmem:[%s6545_s7 + $0x278] sm:$0xff]  ;;  %v1455_v27 = vld [vmem:[%s6545_s7 + $0x2a8] sm:$0xff]  ;;  %v1496_v7 = vld [vmem:[%s6545_s7 + $0x3f0] sm:$0xff] }
 0x1a9   :  { %3053 = vmatprep.subr.bf16.mxu1 %v3052_v30  ;;  %v1387_v30 = vld [vmem:[%s6545_s7 + $0x88] sm:$0xff]  ;;  %v1457_v29 = vld [vmem:[%s6545_s7 + $0x2b8] sm:$0xff]  ;;  %v1518_v17 = vld [vmem:[%s6545_s7 + $0x4a0] sm:$0xff] }
 0x1aa   :  { %v3212_v33 = vpack.c.bf16 %v1394_v31, %v1387_v30  ;;  %3085 = vmatprep.subr.bf16.mxu0 %v3084_v32  ;;  %v1464_v30 = vld [vmem:[%s6545_s7 + $0x2f0] sm:$0xff]  ;;  %v3230_v32 = vpack.c.bf16 %v1449_v26, %v1442_v24  ;;  %v1511_v10 = vld [vmem:[%s6545_s7 + $0x468] sm:$0xff]  ;;  %v1513_v19 = vld [vmem:[%s6545_s7 + $0x478] sm:$0xff] }
 0x1ab   :  { %v1517_v24 = vld [vmem:[%s6545_s7 + $0x498] sm:$0xff] }
 0x1ac   :  { %3055 = vmatpush3.bf16.msra.mxu1 %v3054_v36  ;;  %v1386_v36 = vld [vmem:[%s6545_s7 + $0x80] sm:$0xff] }
 0x1ad   :  { %3057 = vmatprep.subr.bf16.mxu1 %v3056_v37  ;;  %v3086_v37 = vpack.c.bf16 %v1391_v35, %v1384_v34  ;;  %v3214_v41 = vpack.c.bf16 %v1393_v38, %v1386_v36  ;;  %v1454_v34 = vld [vmem:[%s6545_s7 + $0x2a0] sm:$0xff]  ;;  %v1461_v35 = vld [vmem:[%s6545_s7 + $0x2d8] sm:$0xff]  ;;  %v1456_v36 = vld [vmem:[%s6545_s7 + $0x2b0] sm:$0xff] }
 0x1ae   :  { %v1463_v38 = vld [vmem:[%s6545_s7 + $0x2e8] sm:$0xff] }
 0x1af   :  { %3087 = vmatpush1.bf16.msra.mxu0 %v3086_v37  ;;  %v3232_v37 = vpack.c.bf16 %v1464_v30, %v1457_v29  ;;  %v1532_v29 = vld [vmem:[%s6545_s7 + $0x510] sm:$0xff]  ;;  %v1527_v30 = vld [vmem:[%s6545_s7 + $0x4e8] sm:$0xff] }
 0x1b0   :  { %3059 = vmatpush3.bf16.msra.mxu1 %v3058_v42  ;;  %v3088_v42 = vpack.c.bf16 %v1406_v40, %v1399_v39  ;;  %v1469_v39 = vld [vmem:[%s6545_s7 + $0x318] sm:$0xff]  ;;  %v1476_v40 = vld [vmem:[%s6545_s7 + $0x350] sm:$0xff] }
 0x1b1   :  { %3061 = vmatprep.subr.bf16.mxu1 %v3060_v43  ;;  %v1401_v43 = vld [vmem:[%s6545_s7 + $0xf8] sm:$0xff]  ;;  %v3108_v45 = vpack.c.bf16 %v1476_v40, %v1469_v39  ;;  %v1539_v40 = vld [vmem:[%s6545_s7 + $0x548] sm:$0xff] }
 0x1b2   :  { %v3216_v46 = vpack.c.bf16 %v1408_v44, %v1401_v43  ;;  %3089 = vmatprep.subr.bf16.mxu0 %v3088_v42  ;;  %v1478_v42 = vld [vmem:[%s6545_s7 + $0x360] sm:$0xff]  ;;  %v3106_v43 = vpack.c.bf16 %v1461_v35, %v1454_v34  ;;  %v3234_v44 = vpack.c.bf16 %v1463_v38, %v1456_v36  ;;  %v1524_v35 = vld [vmem:[%s6545_s7 + $0x4d0] sm:$0xff]  ;;  %v1531_v36 = vld [vmem:[%s6545_s7 + $0x508] sm:$0xff] }
 0x1b3   :  { %3091 = vmatpush1.bf16.msra.mxu0 %v3090_v50  ;;  %v1477_v50 = vld [vmem:[%s6545_s7 + $0x358] sm:$0xff] }
 0x1b4   :  { %3063 = vmatpush3.bf16.msra.mxu1 %v3062_v48  ;;  %v1400_v48 = vld [vmem:[%s6545_s7 + $0xf0] sm:$0xff]  ;;  %v1533_v39 = vld [vmem:[%s6545_s7 + $0x518] sm:$0xff] }
 0x1b5   :  { %3065 = vmatprep.subr.bf16.mxu1 %v3064_v49  ;;  %v1407_v49 = vld [vmem:[%s6545_s7 + $0x128] sm:$0xff] }
 0x1b8   :  { %3067 = vmatpush3.bf16.msra.mxu1 %v3066_v54  ;;  %v3218_v54 = vpack.c.bf16 %v1407_v49, %v1400_v48  ;;  %v1470_v48 = vld [vmem:[%s6545_s7 + $0x320] sm:$0xff] }
 0x1b9   :  { %3069 = vmatprep.subr.bf16.mxu1 %v3068_v55  ;;  %v3092_v55 = vpack.c.bf16 %v1420_v52, %v1413_v51  ;;  %v1483_v51 = vld [vmem:[%s6545_s7 + $0x388] sm:$0xff]  ;;  %v1490_v52 = vld [vmem:[%s6545_s7 + $0x3c0] sm:$0xff]  ;;  %v3238_v56 = vpack.c.bf16 %v1477_v50, %v1470_v48  ;;  %v1545_v48 = vld [vmem:[%s6545_s7 + $0x578] sm:$0xff] }
 0x1ba   :  { %v1540_v50 = vld [vmem:[%s6545_s7 + $0x550] sm:$0xff] }
 0x1bb   :  { %3093 = vmatprep.subr.bf16.mxu0 %v3092_v55 }
 0x1bc   :  { %3071 = vmatpush3.bf16.msra.mxu1 %v3070_v60  ;;  %v1414_v60 = vld [vmem:[%s6545_s7 + $0x160] sm:$0xff] }
 0x1bd   :  { %3073 = vmatprep.subr.bf16.mxu1 %v3072_v62  ;;  %v1421_v62 = vld [vmem:[%s6545_s7 + $0x198] sm:$0xff] }
 0x1be   :  { %v3222_v4 = vpack.c.bf16 %v1421_v62, %v1414_v60  ;;  %v1484_v60 = vld [vmem:[%s6545_s7 + $0x390] sm:$0xff] }
 0x1c0   :  { %3075 = vmatpush3.bf16.msra.mxu1 %v3074_v3  ;;  %v3094_v3 = vpack.c.bf16 %v1419_v58, %v1412_v57  ;;  %v3112_v57 = vpack.c.bf16 %v1490_v52, %v1483_v51  ;;  %v1482_v58 = vld [vmem:[%s6545_s7 + $0x380] sm:$0xff]  ;;  %v1547_v51 = vld [vmem:[%s6545_s7 + $0x588] sm:$0xff] }
 0x1c1   :  { %3077 = vmatprep.subr.bf16.mxu1 %v3076_v5  ;;  %v3096_v5 = vpack.c.bf16 %v1434_v0, %v1427_v63  ;;  %v1491_v63 = vld [vmem:[%s6545_s7 + $0x3c8] sm:$0xff]  ;;  %v1497_v0 = vld [vmem:[%s6545_s7 + $0x3f8] sm:$0xff] }
 0x1c2   :  { %3095 = vmatpush1.bf16.msra.mxu0 %v3094_v3  ;;  %v1506_v3 = vld [vmem:[%s6545_s7 + $0x440] sm:$0xff]  ;;  %v3116_v6 = vpack.c.bf16 %v1504_v1, %v1497_v0  ;;  %v1553_v0 = vld [vmem:[%s6545_s7 + $0x5b8] sm:$0xff]  ;;  %v1560_v1 = vld [vmem:[%s6545_s7 + $0x5f0] sm:$0xff] }
 0x1c3   :  { %3097 = vmatprep.subr.bf16.mxu0 %v3096_v5  ;;  %v3242_v5 = vpack.c.bf16 %v1491_v63, %v1484_v60 }
 0x1c4   :  { %3079 = vmatpush3.bf16.msra.mxu1 %v3078_v13  ;;  %v1428_v13 = vld [vmem:[%s6545_s7 + $0x1d0] sm:$0xff] }
 0x1c5   :  { %3209 = vmatprep.subr.bf16.mxu1 %v3208_v23  ;;  %v1447_v23 = vld [vmem:[%s6545_s7 + $0x268] sm:$0xff] }
 0x1c6   :  { %3099 = vmatpush1.bf16.msra.mxu0 %v3098_v20  ;;  %v3102_v31 = vpack.c.bf16 %v1447_v23, %v1440_v22  ;;  %v1520_v20 = vld [vmem:[%s6545_s7 + $0x4b0] sm:$0xff]  ;;  %v3120_v22 = vpack.c.bf16 %v1518_v17, %v1511_v10  ;;  %v1510_v23 = vld [vmem:[%s6545_s7 + $0x460] sm:$0xff]  ;;  %v1567_v10 = vld [vmem:[%s6545_s7 + $0x628] sm:$0xff] }
 0x1c7   :  { %1238 = vmatmul.mubr.f32.vlgmr.msra.gmra.mrb[4].mxu1 %v1030_v15  ;;  %v1435_v15 = vld [vmem:[%s6545_s7 + $0x208] sm:$0xff]  ;;  %3101 = vmatprep.subr.bf16.mxu0 %v3100_v21  ;;  %v3248_v26 = vpack.c.bf16 %v1520_v20, %v1513_v19  ;;  %v1574_v17 = vld [vmem:[%s6545_s7 + $0x660] sm:$0xff]  ;;  %v1569_v19 = vld [vmem:[%s6545_s7 + $0x638] sm:$0xff] }
 0x1c8   :  { %3211 = vmatpush1.bf16.msra.mxu1 %v3210_v28  ;;  %v3226_v18 = vpack.c.bf16 %v1435_v15, %v1428_v13  ;;  %v1462_v28 = vld [vmem:[%s6545_s7 + $0x2e0] sm:$0xff]  ;;  %v1503_v13 = vld [vmem:[%s6545_s7 + $0x428] sm:$0xff]  ;;  %v3244_v15 = vpack.c.bf16 %v1506_v3, %v1499_v2  ;;  %v3132_v3 = vpack.c.bf16 %v1560_v1, %v1553_v0  ;;  %v1576_v20 = vld [vmem:[%s6545_s7 + $0x670] sm:$0xff] }
 0x1c9   :  { %3213 = vmatprep.subr.bf16.mxu1 %v3212_v33  ;;  %v3104_v33 = vpack.c.bf16 %v1462_v28, %v1455_v27  ;;  %v1519_v27 = vld [vmem:[%s6545_s7 + $0x4a8] sm:$0xff]  ;;  %v1525_v28 = vld [vmem:[%s6545_s7 + $0x4d8] sm:$0xff] }
 0x1ca   :  { %3103 = vmatpush1.bf16.msra.mxu0 %v3102_v31  ;;  %v1534_v31 = vld [vmem:[%s6545_s7 + $0x520] sm:$0xff]  ;;  %v3124_v34 = vpack.c.bf16 %v1532_v29, %v1525_v28  ;;  %v1555_v2 = vld [vmem:[%s6545_s7 + $0x5c8] sm:$0xff]  ;;  %v1581_v29 = vld [vmem:[%s6545_s7 + $0x698] sm:$0xff] }
 0x1cb   :  { %3105 = vmatprep.subr.bf16.mxu0 %v3104_v33  ;;  %v3252_v38 = vpack.c.bf16 %v1534_v31, %v1527_v30  ;;  %v1588_v30 = vld [vmem:[%s6545_s7 + $0x6d0] sm:$0xff]  ;;  %v1583_v31 = vld [vmem:[%s6545_s7 + $0x6a8] sm:$0xff] }
 0x1cc   :  { %3215 = vmatpush1.bf16.msra.mxu1 %v3214_v41  ;;  %v1471_v41 = vld [vmem:[%s6545_s7 + $0x328] sm:$0xff] }
 0x1cd   :  { %3217 = vmatprep.subr.bf16.mxu1 %v3216_v46  ;;  %v1468_v46 = vld [vmem:[%s6545_s7 + $0x310] sm:$0xff]  ;;  %v3236_v49 = vpack.c.bf16 %v1478_v42, %v1471_v41  ;;  %v1546_v41 = vld [vmem:[%s6545_s7 + $0x580] sm:$0xff]  ;;  %v1541_v42 = vld [vmem:[%s6545_s7 + $0x558] sm:$0xff] }
 0x1ce   :  { %3107 = vmatpush1.bf16.msra.mxu0 %v3106_v43  ;;  %v3110_v55 = vpack.c.bf16 %v1475_v47, %v1468_v46  ;;  %v1548_v43 = vld [vmem:[%s6545_s7 + $0x590] sm:$0xff]  ;;  %v3128_v46 = vpack.c.bf16 %v1546_v41, %v1539_v40  ;;  %v1538_v47 = vld [vmem:[%s6545_s7 + $0x540] sm:$0xff]  ;;  %v1595_v41 = vld [vmem:[%s6545_s7 + $0x708] sm:$0xff] }
 0x1cf   :  { %3109 = vmatprep.subr.bf16.mxu0 %v3108_v45  ;;  %v3130_v52 = vpack.c.bf16 %v1545_v48, %v1538_v47  ;;  %v1262_v47 = vsub.s32 4, %v4974_v8  ;;  %v1266_v48 = vsub.s32 6, %v4974_v8 }
 0x1d0   :  { %3219 = vmatpush1.bf16.msra.mxu1 %v3218_v54  ;;  %v1492_v54 = vld [vmem:[%s6545_s7 + $0x3d0] sm:$0xff] }
 0x1d1   :  { %3221 = vmatprep.subr.bf16.mxu1 %v3220_v59  ;;  %v1489_v59 = vld [vmem:[%s6545_s7 + $0x3b8] sm:$0xff]  ;;  %v3240_v62 = vpack.c.bf16 %v1492_v54, %v1485_v53  ;;  %v3258_v53 = vpack.c.bf16 %v1547_v51, %v1540_v50  ;;  %v1306_v50 = vsub.s32 5, %v4974_v8  ;;  %v1310_v51 = vsub.s32 7, %v4974_v8 }
 0x1d2   :  { %3111 = vmatpush1.bf16.msra.mxu0 %v3110_v55 }
 0x1d3   :  { %3113 = vmatprep.subr.bf16.mxu0 %v3112_v57  ;;  %v2483_v57 = vld [vmem:[%s6542_s4] ss:$0 sm:$0xff] }
 0x1d4   :  { %3223 = vmatpush1.bf16.msra.mxu1 %v3222_v4  ;;  %v3114_v4 = vpack.c.bf16 %v1489_v59, %v1482_v58 }
 0x1d5   :  { %3225 = vmatprep.subr.bf16.mxu1 %v3224_v14  ;;  %v1498_v14 = vld [vmem:[%s6545_s7 + $0x400] sm:$0xff] }
 0x1d6   :  { %3115 = vmatpush1.bf16.msra.mxu0 %v3114_v4  ;;  %v3246_v21 = vpack.c.bf16 %v1505_v16, %v1498_v14  ;;  %v1562_v4 = vld [vmem:[%s6545_s7 + $0x600] sm:$0xff] }
 0x1d7   :  { %3117 = vmatprep.subr.bf16.mxu0 %v3116_v6  ;;  %v1559_v6 = vld [vmem:[%s6545_s7 + $0x5e8] sm:$0xff]  ;;  %v1554_v14 = vld [vmem:[%s6545_s7 + $0x5c0] sm:$0xff] }
 0x1d8   :  { %3227 = vmatpush1.bf16.msra.mxu1 %v3226_v18  ;;  %v3118_v18 = vpack.c.bf16 %v1503_v13, %v1496_v7  ;;  %v3260_v7 = vpack.c.bf16 %v1562_v4, %v1555_v2  ;;  %v1340_v2 = vld [vmem:[%s6544_s6] sm:$0xf] }
 0x1d9   :  { %3229 = vmatprep.subr.bf16.mxu1 %v3228_v25  ;;  %v1512_v25 = vld [vmem:[%s6545_s7 + $0x470] sm:$0xff] }
 0x1da   :  { %3119 = vmatpush1.bf16.msra.mxu0 %v3118_v18  ;;  %v3250_v33 = vpack.c.bf16 %v1519_v27, %v1512_v25  ;;  %v1566_v18 = vld [vmem:[%s6545_s7 + $0x620] sm:$0xff]  ;;  %v1575_v27 = vld [vmem:[%s6545_s7 + $0x668] sm:$0xff] }
 0x1db   :  { %3121 = vmatprep.subr.bf16.mxu0 %v3120_v22  ;;  %v3616_v22 = vmov 1  }
 0x1dc   :  { %3231 = vmatpush1.bf16.msra.mxu1 %v3230_v32  ;;  %v3122_v32 = vpack.c.bf16 %v1517_v24, %v1510_v23  ;;  %v3136_v23 = vpack.c.bf16 %v1574_v17, %v1567_v10  ;;  %v3264_v24 = vpack.c.bf16 %v1576_v20, %v1569_v19 }
 0x1dd   :  { %3233 = vmatprep.subr.bf16.mxu1 %v3232_v37  ;;  %v1526_v37 = vld [vmem:[%s6545_s7 + $0x4e0] sm:$0xff] }
 0x1de   :  { %3123 = vmatpush1.bf16.msra.mxu0 %v3122_v32  ;;  %v3254_v45 = vpack.c.bf16 %v1533_v39, %v1526_v37  ;;  %v3140_v32 = vpack.c.bf16 %v1588_v30, %v1581_v29  ;;  %v1589_v39 = vld [vmem:[%s6545_s7 + $0x6d8] sm:$0xff]  ;;  %v1596_v30 = vld [vmem:[%s6545_s7 + $0x710] sm:$0xff] }
 0x1df   :  { %3125 = vmatprep.subr.bf16.mxu0 %v3124_v34  ;;  %v1580_v34 = vld [vmem:[%s6545_s7 + $0x690] sm:$0xff]  ;;  %v1601_v29 = vld [vmem:[%s6545_s7 + $0x738] sm:$0xff] }
 0x1e0   :  { %3235 = vmatpush1.bf16.msra.mxu1 %v3234_v44  ;;  %v3126_v44 = vpack.c.bf16 %v1531_v36, %v1524_v35  ;;  %v1587_v35 = vld [vmem:[%s6545_s7 + $0x6c8] sm:$0xff] }
 0x1e1   :  { %3237 = vmatprep.subr.bf16.mxu1 %v3236_v49  ;;  %v3256_v49 = vpack.c.bf16 %v1548_v43, %v1541_v42  ;;  %v3142_v37 = vpack.c.bf16 %v1587_v35, %v1580_v34  ;;  %v1602_v42 = vld [vmem:[%s6545_s7 + $0x740] sm:$0xff]  ;;  %v1597_v43 = vld [vmem:[%s6545_s7 + $0x718] sm:$0xff] }
 0x1e2   :  { %3127 = vmatpush1.bf16.msra.mxu0 %v3126_v44  ;;  %v3144_v44 = vpack.c.bf16 %v1602_v42, %v1595_v41  ;;  %v1609_v35 = vld [vmem:[%s6545_s7 + $0x778] sm:$0xff] }
 0x1e3   :  { %3129 = vmatprep.subr.bf16.mxu0 %v3128_v46 }
 0x1e4   :  { %3239 = vmatpush1.bf16.msra.mxu1 %v3238_v56 }
 0x1e5   :  { %3241 = vmatprep.subr.bf16.mxu1 %v3240_v62 }
 0x1e6   :  { %3131 = vmatpush1.bf16.msra.mxu0 %v3130_v52 }
 0x1e7   :  { %3133 = vmatprep.subr.bf16.mxu0 %v3132_v3 }
 0x1e8   :  { %3243 = vmatpush1.bf16.msra.mxu1 %v3242_v5  ;;  %v1552_v5 = vld [vmem:[%s6545_s7 + $0x5b0] sm:$0xff] }
 0x1e9   :  { %3245 = vmatprep.subr.bf16.mxu1 %v3244_v15  ;;  %v3134_v13 = vpack.c.bf16 %v1559_v6, %v1552_v5  ;;  %v1561_v15 = vld [vmem:[%s6545_s7 + $0x5f8] sm:$0xff] }
 0x1ea   :  { %v3262_v16 = vpack.c.bf16 %v1561_v15, %v1554_v14  ;;  %v1353_v14 = vrot.slane %v1340_v2, %v5071_v61 }
 0x1eb   :  { %3135 = vmatpush1.bf16.msra.mxu0 %v3134_v13  ;;  %v1349_v13 = vrot.slane %v1340_v2, %v4985_v11 }
 0x1ec   :  { %3247 = vmatpush1.bf16.msra.mxu1 %v3246_v21  ;;  %v1573_v21 = vld [vmem:[%s6545_s7 + $0x658] sm:$0xff]  ;;  %3137 = vmatprep.subr.bf16.mxu0 %v3136_v23  ;;  %v1357_v23 = vrot.slane %v1340_v2, %v4988_v12 }
 0x1ed   :  { %3249 = vmatprep.subr.bf16.mxu1 %v3248_v26  ;;  %v3138_v25 = vpack.c.bf16 %v1573_v21, %v1566_v18  ;;  %v1568_v26 = vld [vmem:[%s6545_s7 + $0x630] sm:$0xff] }
 0x1ee   :  { %v3266_v28 = vpack.c.bf16 %v1575_v27, %v1568_v26 }
 0x1ef   :  { %3139 = vmatpush1.bf16.msra.mxu0 %v3138_v25 }
 0x1f0   :  { %3251 = vmatpush1.bf16.msra.mxu1 %v3250_v33  ;;  %v1590_v33 = vld [vmem:[%s6545_s7 + $0x6e0] sm:$0xff]  ;;  %3141 = vmatprep.subr.bf16.mxu0 %v3140_v32 }
 0x1f1   :  { %3253 = vmatprep.subr.bf16.mxu1 %v3252_v38  ;;  %v3268_v36 = vpack.c.bf16 %v1590_v33, %v1583_v31  ;;  %v1582_v38 = vld [vmem:[%s6545_s7 + $0x6a0] sm:$0xff]  ;;  %v1603_v31 = vld [vmem:[%s6545_s7 + $0x748] sm:$0xff] }
 0x1f2   :  { %v3270_v40 = vpack.c.bf16 %v1589_v39, %v1582_v38  ;;  %v1611_v38 = vld [vmem:[%s6545_s7 + $0x788] sm:$0xff]  ;;  %v1618_v39 = vld [vmem:[%s6545_s7 + $0x7c0] sm:$0xff] }
 0x1f3   :  { %3143 = vmatpush1.bf16.msra.mxu0 %v3142_v37  ;;  %v1616_v37 = vld [vmem:[%s6545_s7 + $0x7b0] sm:$0xff] }
 0x1f4   :  { %3255 = vmatpush1.bf16.msra.mxu1 %v3254_v45  ;;  %v1604_v45 = vld [vmem:[%s6545_s7 + $0x750] sm:$0xff]  ;;  %3145 = vmatprep.subr.bf16.mxu0 %v3144_v44 }
 0x1f5   :  { %3257 = vmatprep.subr.bf16.mxu1 %v3256_v49  ;;  %v3272_v46 = vpack.c.bf16 %v1604_v45, %v1597_v43  ;;  %v1245_v49 = vld [vmem:[%s6543_s5] sm:$0xff]  ;;  %v3274_v43 = vpack.c.bf16 %v1603_v31, %v1596_v30  ;;  %v1608_v44 = vld [vmem:[%s6545_s7 + $0x770] sm:$0xff]  ;;  %v1615_v45 = vld [vmem:[%s6545_s7 + $0x7a8] sm:$0xff] }
 0x1f6   :  { %v1255_v52 = vrot.slane %v1245_v49, %v4977_v9  ;;  %v1659_v30 = vld [vmem:[%s6545_s7 + $0x908] sm:$0xff]  ;;  %v1665_v31 = vld [vmem:[%s6545_s7 + $0x938] sm:$0xff] }
 0x1f8   :  { %3259 = vmatpush1.bf16.msra.mxu1 %v3258_v53  ;;  %v1259_v53 = vrot.slane %v1245_v49, %v5071_v61 }
 0x1f9   :  { %3261 = vmatprep.subr.bf16.mxu1 %v3260_v7  ;;  %v1345_v7 = vrot.slane %v1340_v2, %v4977_v9  ;;  %v1631_v2 = vld [vmem:[%s6545_s7 + $0x828] sm:$0xff] }
 0x1fc   :  { %3263 = vmatpush1.bf16.msra.mxu1 %v3262_v16 }
 0x1fd   :  { %3265 = vmatprep.subr.bf16.mxu1 %v3264_v24 }
 0x200   :  { %3267 = vmatpush1.bf16.msra.mxu1 %v3266_v28  ;;  %v1594_v28 = vld [vmem:[%s6545_s7 + $0x700] sm:$0xff] }
 0x201   :  { %3269 = vmatprep.subr.bf16.mxu1 %v3268_v36  ;;  %v3146_v42 = vpack.c.bf16 %v1601_v29, %v1594_v28  ;;  %v1652_v29 = vld [vmem:[%s6545_s7 + $0x8d0] sm:$0xff] }
 0x204   :  { %3271 = vmatpush1.bf16.msra.mxu1 %v3270_v40 }
 0x205   :  { %3273 = vmatprep.subr.bf16.mxu1 %v3272_v46  ;;  %v1610_v46 = vld [vmem:[%s6545_s7 + $0x780] sm:$0xff] }
 0x27a   :  { %v2516_v54 = vpop.f32.mrb[2].mxu1 }
 0x27b   :  { %v2517_v55 = vpop.f32.mrb[3].mxu1 }
 0x27c   :  { %v2518_v56 = vadd.f32 %v2517_v55, %v2516_v54  ;;  %v1263_v54 = vrot.slane %v1245_v49, %v1262_v47  ;;  %v1267_v55 = vrot.slane %v1245_v49, %v1266_v48 }
 0x27e   :  { %v1170_v60 = vadd.f32 %v2518_v56, %v2483_v57  ;;  %v1299_v56 = vrot.slane %v1245_v49, %v4985_v11  ;;  %v1303_v57 = vrot.slane %v1245_v49, %v4988_v12  ;;  %v1283_v0 = vrot.slane %v1263_v54, %v4977_v9  ;;  %v1630_v54 = vld [vmem:[%s6545_s7 + $0x820] sm:$0xff] }
 0x27f   :  { %v1287_v1 = vrot.slane %v1267_v55, %v4977_v9  ;;  %v1625_v55 = vld [vmem:[%s6545_s7 + $0x7f8] sm:$0xff] }
 0x280   :  { %v1319_v3 = vrot.slane %v1299_v56, %v4985_v11  ;;  %v1323_v4 = vrot.slane %v1303_v57, %v4985_v11  ;;  %v1632_v56 = vld [vmem:[%s6545_s7 + $0x830] sm:$0xff] }
 0x29a   :  { %v2551_v58 = vpop.f32.mrb[4].mxu1 }
 0x29b   :  { %v2552_v59 = vpop.f32.mrb[5].mxu1 }
 0x29c   :  { %v2553_v62 = vadd.f32 %v2552_v59, %v2551_v58  ;;  %v1307_v58 = vrot.slane %v1245_v49, %v1306_v50  ;;  %v1311_v59 = vrot.slane %v1245_v49, %v1310_v51  ;;  %v1617_v49 = vld [vmem:[%s6545_s7 + $0x7b8] sm:$0xff]  ;;  %v1623_v51 = vld [vmem:[%s6545_s7 + $0x7e8] sm:$0xff] }
 0x29e   :  { %v1240_v63 = vadd.f32 %v2553_v62, %v1170_v60  ;;  %v1275_v62 = vrot.slane %v1255_v52, %v4977_v9  ;;  %v1327_v5 = vrot.slane %v1307_v58, %v4985_v11  ;;  %v1331_v6 = vrot.slane %v1311_v59, %v4985_v11 }
 0x29f   :  { %v3148_v52 = vpack.c.bf16 %v1616_v37, %v1609_v35  ;;  %v3150_v58 = vpack.c.bf16 %v1615_v45, %v1608_v44  ;;  %v3278_v59 = vpack.c.bf16 %v1617_v49, %v1610_v46  ;;  %v1674_v35 = vld [vmem:[%s6545_s7 + $0x980] sm:$0xff]  ;;  %v3290_v37 = vpack.c.bf16 %v1659_v30, %v1652_v29  ;;  %v1673_v45 = vld [vmem:[%s6545_s7 + $0x978] sm:$0xff]  ;;  %v1679_v46 = vld [vmem:[%s6545_s7 + $0x9a8] sm:$0xff] }
 0x2a0   :  { %1244 = vst.msk [vmem:[%s6548_s10] sm:$0xff] %vm1243_vm1, %v1240_v63  ;;  %1248 = vperm.xlu0 %3560, %v1240_v63   ;;  %v1666_v44 = vld [vmem:[%s6545_s7 + $0x940] sm:$0xff]  ;;  %v1723_v29 = vld [vmem:[%s6545_s7 + $0xb08] sm:$0xff] }
 0x2a1   :  { %v1686_v49 = vld [vmem:[%s6545_s7 + $0x9e0] sm:$0xff] }
 0x2a2   :  { %v1730_v30 = vld [vmem:[%s6545_s7 + $0xb40] sm:$0xff] }
 0x2a4   :  { %3561 = vset.pattern.permute.xlu0 %v3616_v22 }
 0x2a5   :  { %1293 = vperm.xlu0 %3561, %v1240_v63   ;;  %v1279_v63 = vrot.slane %v1259_v53, %v4977_v9  ;;  %v3276_v53 = vpack.c.bf16 %v1618_v39, %v1611_v38  ;;  %v1664_v38 = vld [vmem:[%s6545_s7 + $0x930] sm:$0xff]  ;;  %v1671_v39 = vld [vmem:[%s6545_s7 + $0x968] sm:$0xff] }
 0x31f   :  { %v1249_v60 = vpop.permute.xlu0 %1248 }
 0x320   :  { %v1288_v15 = vmul.f32 %v1275_v62, %v1249_v60  ;;  %v1289_v16 = vmul.f32 %v1279_v63, %v1249_v60  ;;  %v1290_v10 = vmul.f32 %v1283_v0, %v1249_v60  ;;  %v1291_v17 = vmul.f32 %v1287_v1, %v1249_v60  ;;  %v1622_v60 = vld [vmem:[%s6545_s7 + $0x7e0] sm:$0xff]  ;;  %v1629_v62 = vld [vmem:[%s6545_s7 + $0x818] sm:$0xff]  ;;  %v1624_v1 = vld [vmem:[%s6545_s7 + $0x7f0] sm:$0xff] }
 0x321   :  { %v3152_v63 = vpack.c.bf16 %v1630_v54, %v1623_v51  ;;  %v3280_v0 = vpack.c.bf16 %v1632_v56, %v1625_v55  ;;  %v1681_v51 = vld [vmem:[%s6545_s7 + $0x9b8] sm:$0xff]  ;;  %v3294_v54 = vpack.c.bf16 %v1673_v45, %v1666_v44  ;;  %v1678_v55 = vld [vmem:[%s6545_s7 + $0x9a0] sm:$0xff]  ;;  %v1744_v45 = vld [vmem:[%s6545_s7 + $0xbb0] sm:$0xff] }
 0x322   :  { %v1685_v56 = vld [vmem:[%s6545_s7 + $0x9d8] sm:$0xff] }
 0x323   :  { %v1737_v44 = vld [vmem:[%s6545_s7 + $0xb78] sm:$0xff] }
 0x324   :  { %v1294_v19 = vpop.permute.xlu0 %1293 }
 0x325   :  { %v1332_v20 = vmul.f32 %v1319_v3, %v1294_v19  ;;  %v1333_v18 = vmul.f32 %v1323_v4, %v1294_v19  ;;  %v1334_v21 = vmul.f32 %v1327_v5, %v1294_v19  ;;  %v1335_v22 = vmul.f32 %v1331_v6, %v1294_v19  ;;  %v1637_v3 = vld [vmem:[%s6545_s7 + $0x858] sm:$0xff]  ;;  %v1644_v4 = vld [vmem:[%s6545_s7 + $0x890] sm:$0xff]  ;;  %v1639_v5 = vld [vmem:[%s6545_s7 + $0x868] sm:$0xff] }
 0x326   :  { %v1646_v6 = vld [vmem:[%s6545_s7 + $0x8a0] sm:$0xff]  ;;  %v1645_v19 = vld [vmem:[%s6545_s7 + $0x898] sm:$0xff] }
 0x327   :  { %v1336_v24 = vadd.f32 %v1332_v20, %v1288_v15  ;;  %v1337_v25 = vadd.f32 %v1333_v18, %v1289_v16  ;;  %v1338_v26 = vadd.f32 %v1334_v21, %v1290_v10  ;;  %v1339_v27 = vadd.f32 %v1335_v22, %v1291_v17  ;;  %v1643_v15 = vld [vmem:[%s6545_s7 + $0x888] sm:$0xff]  ;;  %v1638_v17 = vld [vmem:[%s6545_s7 + $0x860] sm:$0xff]  ;;  %v1653_v21 = vld [vmem:[%s6545_s7 + $0x8d8] sm:$0xff] }
 0x328   :  { %v3156_v16 = vpack.c.bf16 %v1644_v4, %v1637_v3  ;;  %v3284_v10 = vpack.c.bf16 %v1646_v6, %v1639_v5  ;;  %v1651_v20 = vld [vmem:[%s6545_s7 + $0x8c8] sm:$0xff]  ;;  %v1658_v18 = vld [vmem:[%s6545_s7 + $0x900] sm:$0xff]  ;;  %v1660_v22 = vld [vmem:[%s6545_s7 + $0x910] sm:$0xff]  ;;  %v3170_v3 = vpack.c.bf16 %v1685_v56, %v1678_v55 }
 0x329   :  { %v1362_v32 = vadd.f32 %v1345_v7, %v1336_v24  ;;  %v1363_v33 = vadd.f32 %v1349_v13, %v1337_v25  ;;  %v5540_v34 = vadd.f32 %v1353_v14, %v1338_v26  ;;  %v1365_v36 = vadd.f32 %v1357_v23, %v1339_v27  ;;  %v1636_v14 = vld [vmem:[%s6545_s7 + $0x850] sm:$0xff]  ;;  %v1650_v25 = vld [vmem:[%s6545_s7 + $0x8c0] sm:$0xff]  ;;  %v1657_v26 = vld [vmem:[%s6545_s7 + $0x8f8] sm:$0xff] }
 0x32a   :  { %v3154_v7 = vpack.c.bf16 %v1629_v62, %v1622_v60  ;;  %v3282_v13 = vpack.c.bf16 %v1631_v2, %v1624_v1  ;;  %v3158_v23 = vpack.c.bf16 %v1643_v15, %v1636_v14  ;;  %v3286_v24 = vpack.c.bf16 %v1645_v19, %v1638_v17  ;;  %v1680_v60 = vld [vmem:[%s6545_s7 + $0x9b0] sm:$0xff]  ;;  %v1687_v62 = vld [vmem:[%s6545_s7 + $0x9e8] sm:$0xff]  ;;  %v1702_v2 = vld [vmem:[%s6545_s7 + $0xa60] sm:$0xff] }
 0x32b   :  { %v5554_v40 = vmax.f32 %v1363_v33, 0.0  ;;  %v5556_v41 = vmax.f32 %v1362_v32, 0.0  ;;  %v5586_v57 = vmax.f32 %v1365_v36, 0.0  ;;  %v3160_v27 = vpack.c.bf16 %v1658_v18, %v1651_v20  ;;  %v1672_v32 = vld [vmem:[%s6545_s7 + $0x970] sm:$0xff]  ;;  %v1667_v33 = vld [vmem:[%s6545_s7 + $0x948] sm:$0xff]  ;;  %v1694_v14 = vld [vmem:[%s6545_s7 + $0xa20] sm:$0xff] }
 0x32c   :  { %v3288_v28 = vpack.c.bf16 %v1660_v22, %v1653_v21  ;;  %v3162_v36 = vpack.c.bf16 %v1657_v26, %v1650_v25  ;;  %v1695_v1 = vld [vmem:[%s6545_s7 + $0xa28] sm:$0xff]  ;;  %v3298_v4 = vpack.c.bf16 %v1687_v62, %v1680_v60  ;;  %v1692_v5 = vld [vmem:[%s6545_s7 + $0xa10] sm:$0xff]  ;;  %v1701_v15 = vld [vmem:[%s6545_s7 + $0xa58] sm:$0xff] }
 0x32d   :  { %1919 = vmatprep.mubr.f32.mxu0 %v5554_v40  ;;  %2061 = vmatprep.mubr.f32.mxu1 %v5554_v40  ;;  %v1699_v6 = vld [vmem:[%s6545_s7 + $0xa48] sm:$0xff]  ;;  %v1709_v17 = vld [vmem:[%s6545_s7 + $0xa98] sm:$0xff]  ;;  %v1716_v19 = vld [vmem:[%s6545_s7 + $0xad0] sm:$0xff]  ;;  %v3302_v18 = vpack.c.bf16 %v1701_v15, %v1694_v14 }
 0x32e   :  { %1920 = vmatmul.mubr.f32.vlgmr.msra.gmra.mrb[2].mxu0 %v5556_v41  ;;  %2062 = vmatmul.mubr.f32.vlgmr.msra.gmra.mrb[6].mxu1 %v5556_v41  ;;  %v3174_v20 = vpack.c.bf16 %v1699_v6, %v1692_v5  ;;  %v1706_v21 = vld [vmem:[%s6545_s7 + $0xa80] sm:$0xff]  ;;  %v1713_v22 = vld [vmem:[%s6545_s7 + $0xab8] sm:$0xff]  ;;  %v1708_v25 = vld [vmem:[%s6545_s7 + $0xa90] sm:$0xff] }
 0x32f   :  { %3147 = vmatpush1.bf16.msra.mxu0 %v3146_v42  ;;  %3275 = vmatpush1.bf16.msra.mxu1 %v3274_v43  ;;  %v3164_v42 = vpack.c.bf16 %v1672_v32, %v1665_v31  ;;  %v3292_v43 = vpack.c.bf16 %v1674_v35, %v1667_v33  ;;  %v1715_v26 = vld [vmem:[%s6545_s7 + $0xac8] sm:$0xff]  ;;  %v3178_v31 = vpack.c.bf16 %v1713_v22, %v1706_v21  ;;  %v1720_v33 = vld [vmem:[%s6545_s7 + $0xaf0] sm:$0xff]  ;;  %v1758_v62 = vld [vmem:[%s6545_s7 + $0xc20] sm:$0xff] }
 0x330   :  { %1990 = vmatprep.mubr.f32.mxu0 %v5586_v57  ;;  %2132 = vmatprep.mubr.f32.mxu1 %v5586_v57  ;;  %v3306_v32 = vpack.c.bf16 %v1715_v26, %v1708_v25  ;;  %v1727_v35 = vld [vmem:[%s6545_s7 + $0xb28] sm:$0xff]  ;;  %v1736_v55 = vld [vmem:[%s6545_s7 + $0xb70] sm:$0xff]  ;;  %v1750_v5 = vld [vmem:[%s6545_s7 + $0xbe0] sm:$0xff] }
 0x331   :  { %3149 = vmatprep.subr.bf16.mxu0 %v3148_v52  ;;  %3277 = vmatprep.subr.bf16.mxu1 %v3276_v53  ;;  %v1688_v52 = vld [vmem:[%s6545_s7 + $0x9f0] sm:$0xff]  ;;  %v3166_v53 = vpack.c.bf16 %v1671_v39, %v1664_v38  ;;  %v1722_v38 = vld [vmem:[%s6545_s7 + $0xb00] sm:$0xff]  ;;  %v1729_v39 = vld [vmem:[%s6545_s7 + $0xb38] sm:$0xff] }
 0x332   :  { %v1743_v56 = vld [vmem:[%s6545_s7 + $0xba8] sm:$0xff]  ;;  %v1757_v6 = vld [vmem:[%s6545_s7 + $0xc18] sm:$0xff]  ;;  %v1772_v15 = vld [vmem:[%s6545_s7 + $0xc90] sm:$0xff] }
 0x333   :  { %3151 = vmatpush1.bf16.msra.mxu0 %v3150_v58  ;;  %3279 = vmatpush1.bf16.msra.mxu1 %v3278_v59  ;;  %v3168_v58 = vpack.c.bf16 %v1686_v49, %v1679_v46  ;;  %v3296_v59 = vpack.c.bf16 %v1688_v52, %v1681_v51  ;;  %v3182_v46 = vpack.c.bf16 %v1727_v35, %v1720_v33  ;;  %v1734_v51 = vld [vmem:[%s6545_s7 + $0xb60] sm:$0xff]  ;;  %v1741_v52 = vld [vmem:[%s6545_s7 + $0xb98] sm:$0xff]  ;;  %v1751_v60 = vld [vmem:[%s6545_s7 + $0xbe8] sm:$0xff] }
 0x334   :  { %3153 = vmatprep.subr.bf16.mxu0 %v3152_v63  ;;  %3281 = vmatprep.subr.bf16.mxu1 %v3280_v0  ;;  %v1693_v63 = vld [vmem:[%s6545_s7 + $0xa18] sm:$0xff]  ;;  %v1700_v0 = vld [vmem:[%s6545_s7 + $0xa50] sm:$0xff]  ;;  %v3310_v49 = vpack.c.bf16 %v1729_v39, %v1722_v38  ;;  %v1771_v22 = vld [vmem:[%s6545_s7 + $0xc88] sm:$0xff] }
 0x335   :  { %v1765_v14 = vld [vmem:[%s6545_s7 + $0xc58] sm:$0xff]  ;;  %v1764_v21 = vld [vmem:[%s6545_s7 + $0xc50] sm:$0xff]  ;;  %v1779_v25 = vld [vmem:[%s6545_s7 + $0xcc8] sm:$0xff] }
 0x336   :  { %v1786_v26 = vld [vmem:[%s6545_s7 + $0xd00] sm:$0xff]  ;;  %v1785_v35 = vld [vmem:[%s6545_s7 + $0xcf8] sm:$0xff]  ;;  %v1800_v39 = vld [vmem:[%s6545_s7 + $0xd70] sm:$0xff] }
 0x337   :  { %3155 = vmatpush1.bf16.msra.mxu0 %v3154_v7  ;;  %3283 = vmatpush1.bf16.msra.mxu1 %v3282_v13  ;;  %v3172_v7 = vpack.c.bf16 %v1700_v0, %v1693_v63  ;;  %v3300_v13 = vpack.c.bf16 %v1702_v2, %v1695_v1  ;;  %v3186_v63 = vpack.c.bf16 %v1741_v52, %v1734_v51  ;;  %v1748_v1 = vld [vmem:[%s6545_s7 + $0xbd0] sm:$0xff]  ;;  %v1755_v2 = vld [vmem:[%s6545_s7 + $0xc08] sm:$0xff]  ;;  %v1778_v33 = vld [vmem:[%s6545_s7 + $0xcc0] sm:$0xff] }
 0x338   :  { %3157 = vmatprep.subr.bf16.mxu0 %v3156_v16  ;;  %3285 = vmatprep.subr.bf16.mxu1 %v3284_v10  ;;  %v1707_v16 = vld [vmem:[%s6545_s7 + $0xa88] sm:$0xff]  ;;  %v1714_v10 = vld [vmem:[%s6545_s7 + $0xac0] sm:$0xff]  ;;  %v3314_v0 = vpack.c.bf16 %v1743_v56, %v1736_v55  ;;  %v1793_v38 = vld [vmem:[%s6545_s7 + $0xd38] sm:$0xff] }
 0x339   :  { %v1792_v51 = vld [vmem:[%s6545_s7 + $0xd30] sm:$0xff]  ;;  %v1799_v52 = vld [vmem:[%s6545_s7 + $0xd68] sm:$0xff]  ;;  %v1814_v56 = vld [vmem:[%s6545_s7 + $0xde0] sm:$0xff] }
 0x33a   :  { %v1807_v55 = vld [vmem:[%s6545_s7 + $0xda8] sm:$0xff] }
 0x33b   :  { %3159 = vmatpush1.bf16.msra.mxu0 %v3158_v23  ;;  %3287 = vmatpush1.bf16.msra.mxu1 %v3286_v24  ;;  %v3176_v23 = vpack.c.bf16 %v1714_v10, %v1707_v16  ;;  %v3304_v24 = vpack.c.bf16 %v1716_v19, %v1709_v17  ;;  %v3190_v16 = vpack.c.bf16 %v1755_v2, %v1748_v1  ;;  %v1762_v17 = vld [vmem:[%s6545_s7 + $0xc40] sm:$0xff]  ;;  %v1769_v19 = vld [vmem:[%s6545_s7 + $0xc78] sm:$0xff] }
 0x33c   :  { %3161 = vmatprep.subr.bf16.mxu0 %v3160_v27  ;;  %3289 = vmatprep.subr.bf16.mxu1 %v3288_v28  ;;  %v1721_v27 = vld [vmem:[%s6545_s7 + $0xaf8] sm:$0xff]  ;;  %v1728_v28 = vld [vmem:[%s6545_s7 + $0xb30] sm:$0xff]  ;;  %v3318_v10 = vpack.c.bf16 %v1757_v6, %v1750_v5  ;;  %v1806_v1 = vld [vmem:[%s6545_s7 + $0xda0] sm:$0xff] }
 0x33d   :  { %v1813_v2 = vld [vmem:[%s6545_s7 + $0xdd8] sm:$0xff]  ;;  %v1488_v5 = vld [vmem:[%s6545_s7 + $0x3b0] sm:$0xff]  ;;  %v1495_v6 = vld [vmem:[%s6545_s7 + $0x3e8] sm:$0xff] }
 0x33f   :  { %3163 = vmatpush1.bf16.msra.mxu0 %v3162_v36  ;;  %3291 = vmatpush1.bf16.msra.mxu1 %v3290_v37  ;;  %v3180_v36 = vpack.c.bf16 %v1728_v28, %v1721_v27  ;;  %v3308_v37 = vpack.c.bf16 %v1730_v30, %v1723_v29  ;;  %v3194_v27 = vpack.c.bf16 %v1769_v19, %v1762_v17  ;;  %v1776_v29 = vld [vmem:[%s6545_s7 + $0xcb0] sm:$0xff]  ;;  %v1783_v30 = vld [vmem:[%s6545_s7 + $0xce8] sm:$0xff] }
 0x340   :  { %3165 = vmatprep.subr.bf16.mxu0 %v3164_v42  ;;  %3293 = vmatprep.subr.bf16.mxu1 %v3292_v43  ;;  %v1735_v42 = vld [vmem:[%s6545_s7 + $0xb68] sm:$0xff]  ;;  %v1742_v43 = vld [vmem:[%s6545_s7 + $0xba0] sm:$0xff]  ;;  %v3322_v28 = vpack.c.bf16 %v1771_v22, %v1764_v21  ;;  %v1376_v17 = vld [vmem:[%s6545_s7 + $0x30] sm:$0xff] }
 0x341   :  { %v1383_v19 = vld [vmem:[%s6545_s7 + $0x68] sm:$0xff]  ;;  %v1502_v21 = vld [vmem:[%s6545_s7 + $0x420] sm:$0xff]  ;;  %v1509_v22 = vld [vmem:[%s6545_s7 + $0x458] sm:$0xff] }
 0x343   :  { %3167 = vmatpush1.bf16.msra.mxu0 %v3166_v53  ;;  %3295 = vmatpush1.bf16.msra.mxu1 %v3294_v54  ;;  %v3184_v53 = vpack.c.bf16 %v1742_v43, %v1735_v42  ;;  %v3312_v54 = vpack.c.bf16 %v1744_v45, %v1737_v44  ;;  %v3198_v42 = vpack.c.bf16 %v1783_v30, %v1776_v29  ;;  %v1790_v44 = vld [vmem:[%s6545_s7 + $0xd20] sm:$0xff]  ;;  %v1797_v45 = vld [vmem:[%s6545_s7 + $0xd58] sm:$0xff] }
 0x344   :  { %3169 = vmatprep.subr.bf16.mxu0 %v3168_v58  ;;  %3297 = vmatprep.subr.bf16.mxu1 %v3296_v59  ;;  %v1749_v58 = vld [vmem:[%s6545_s7 + $0xbd8] sm:$0xff]  ;;  %v1756_v59 = vld [vmem:[%s6545_s7 + $0xc10] sm:$0xff]  ;;  %v3326_v43 = vpack.c.bf16 %v1785_v35, %v1778_v33  ;;  %v3468_v30 = vpack.c.bf16 %v1509_v22, %v1502_v21  ;;  %v1523_v35 = vld [vmem:[%s6545_s7 + $0x4c8] sm:$0xff] }
 0x345   :  { %v1516_v33 = vld [vmem:[%s6545_s7 + $0x490] sm:$0xff]  ;;  %v1451_v22 = vld [vmem:[%s6545_s7 + $0x288] sm:$0xff] }
 0x346   :  { %v1444_v21 = vld [vmem:[%s6545_s7 + $0x250] sm:$0xff] }
 0x347   :  { %3171 = vmatpush1.bf16.msra.mxu0 %v3170_v3  ;;  %3299 = vmatpush1.bf16.msra.mxu1 %v3298_v4  ;;  %v3188_v3 = vpack.c.bf16 %v1756_v59, %v1749_v58  ;;  %v3316_v4 = vpack.c.bf16 %v1758_v62, %v1751_v60  ;;  %v3202_v58 = vpack.c.bf16 %v1797_v45, %v1790_v44  ;;  %v1804_v60 = vld [vmem:[%s6545_s7 + $0xd90] sm:$0xff]  ;;  %v1811_v62 = vld [vmem:[%s6545_s7 + $0xdc8] sm:$0xff]  ;;  %v1417_v45 = vld [vmem:[%s6545_s7 + $0x178] sm:$0xff] }
 0x348   :  { %3173 = vmatprep.subr.bf16.mxu0 %v3172_v7  ;;  %3301 = vmatprep.subr.bf16.mxu1 %v3300_v13  ;;  %v1763_v7 = vld [vmem:[%s6545_s7 + $0xc48] sm:$0xff]  ;;  %v1770_v13 = vld [vmem:[%s6545_s7 + $0xc80] sm:$0xff]  ;;  %v3330_v59 = vpack.c.bf16 %v1799_v52, %v1792_v51  ;;  %v3472_v44 = vpack.c.bf16 %v1523_v35, %v1516_v33  ;;  %v1537_v51 = vld [vmem:[%s6545_s7 + $0x538] sm:$0xff] }
 0x349   :  { %v1458_v33 = vld [vmem:[%s6545_s7 + $0x2c0] sm:$0xff]  ;;  %v1465_v35 = vld [vmem:[%s6545_s7 + $0x2f8] sm:$0xff] }
 0x34b   :  { %3175 = vmatpush1.bf16.msra.mxu0 %v3174_v20  ;;  %3303 = vmatpush1.bf16.msra.mxu1 %v3302_v18  ;;  %v3192_v20 = vpack.c.bf16 %v1770_v13, %v1763_v7  ;;  %v3320_v18 = vpack.c.bf16 %v1772_v15, %v1765_v14  ;;  %v3206_v7 = vpack.c.bf16 %v1811_v62, %v1804_v60  ;;  %v1425_v60 = vld [vmem:[%s6545_s7 + $0x1b8] sm:$0xff]  ;;  %v1431_v62 = vld [vmem:[%s6545_s7 + $0x1e8] sm:$0xff] }
 0x34c   :  { %3177 = vmatprep.subr.bf16.mxu0 %v3176_v23  ;;  %3305 = vmatprep.subr.bf16.mxu1 %v3304_v24  ;;  %v1777_v23 = vld [vmem:[%s6545_s7 + $0xcb8] sm:$0xff]  ;;  %v1784_v24 = vld [vmem:[%s6545_s7 + $0xcf0] sm:$0xff]  ;;  %v3334_v13 = vpack.c.bf16 %v1813_v2, %v1806_v1  ;;  %v3464_v15 = vpack.c.bf16 %v1495_v6, %v1488_v5  ;;  %v1551_v1 = vld [vmem:[%s6545_s7 + $0x5a8] sm:$0xff] }
 0x34d   :  { %v1430_v5 = vld [vmem:[%s6545_s7 + $0x1e0] sm:$0xff]  ;;  %v1437_v6 = vld [vmem:[%s6545_s7 + $0x218] sm:$0xff] }
 0x34f   :  { %3179 = vmatpush1.bf16.msra.mxu0 %v3178_v31  ;;  %3307 = vmatpush1.bf16.msra.mxu1 %v3306_v32  ;;  %v3196_v31 = vpack.c.bf16 %v1784_v24, %v1777_v23  ;;  %v3324_v32 = vpack.c.bf16 %v1786_v26, %v1779_v25  ;;  %v5951_v24 = vmax.f32 %v5540_v34, 0.0  ;;  %v3466_v25 = vpack.c.bf16 %v1383_v19, %v1376_v17  ;;  %v1388_v26 = vld [vmem:[%s6545_s7 + $0x90] sm:$0xff]  ;;  %v1397_v34 = vld [vmem:[%s6545_s7 + $0xd8] sm:$0xff] }
 0x350   :  { %3181 = vmatprep.subr.bf16.mxu0 %v3180_v36  ;;  %3309 = vmatprep.subr.bf16.mxu1 %v3308_v37  ;;  %v1791_v36 = vld [vmem:[%s6545_s7 + $0xd28] sm:$0xff]  ;;  %v1798_v37 = vld [vmem:[%s6545_s7 + $0xd60] sm:$0xff]  ;;  %v1565_v17 = vld [vmem:[%s6545_s7 + $0x618] sm:$0xff]  ;;  %v3354_v19 = vpack.c.bf16 %v1437_v6, %v1430_v5 }
 0x351   :  { %v1501_v5 = vld [vmem:[%s6545_s7 + $0x418] sm:$0xff]  ;;  %v1508_v6 = vld [vmem:[%s6545_s7 + $0x450] sm:$0xff] }
 0x353   :  { %3183 = vmatpush1.bf16.msra.mxu0 %v3182_v46  ;;  %3311 = vmatpush1.bf16.msra.mxu1 %v3310_v49  ;;  %v3200_v46 = vpack.c.bf16 %v1798_v37, %v1791_v36  ;;  %v3328_v49 = vpack.c.bf16 %v1800_v39, %v1793_v38  ;;  %v1402_v39 = vld [vmem:[%s6545_s7 + $0x100] sm:$0xff] }
 0x354   :  { %3185 = vmatprep.subr.bf16.mxu0 %v3184_v53  ;;  %3313 = vmatprep.subr.bf16.mxu1 %v3312_v54  ;;  %v1805_v53 = vld [vmem:[%s6545_s7 + $0xd98] sm:$0xff]  ;;  %v1812_v54 = vld [vmem:[%s6545_s7 + $0xdd0] sm:$0xff] }
 0x357   :  { %3187 = vmatpush1.bf16.msra.mxu0 %v3186_v63  ;;  %3315 = vmatpush1.bf16.msra.mxu1 %v3314_v0  ;;  %v3204_v63 = vpack.c.bf16 %v1812_v54, %v1805_v53  ;;  %v3332_v0 = vpack.c.bf16 %v1814_v56, %v1807_v55  ;;  %v1416_v55 = vld [vmem:[%s6545_s7 + $0x170] sm:$0xff]  ;;  %v1423_v56 = vld [vmem:[%s6545_s7 + $0x1a8] sm:$0xff] }
 0x358   :  { %3189 = vmatprep.subr.bf16.mxu0 %v3188_v3  ;;  %3317 = vmatprep.subr.bf16.mxu1 %v3316_v4  ;;  %v1375_v3 = vld [vmem:[%s6545_s7 + $0x28] sm:$0xff]  ;;  %v1382_v4 = vld [vmem:[%s6545_s7 + $0x60] sm:$0xff]  ;;  %v3350_v2 = vpack.c.bf16 %v1423_v56, %v1416_v55 }
 0x359   :  { %v3336_v14 = vpack.c.bf16 %v1382_v4, %v1375_v3  ;;  %v1487_v55 = vld [vmem:[%s6545_s7 + $0x3a8] sm:$0xff]  ;;  %v1494_v56 = vld [vmem:[%s6545_s7 + $0x3e0] sm:$0xff] }
 0x35b   :  { %3191 = vmatpush1.bf16.msra.mxu0 %v3190_v16  ;;  %3319 = vmatpush1.bf16.msra.mxu1 %v3318_v10  ;;  %v1374_v16 = vld [vmem:[%s6545_s7 + $0x20] sm:$0xff]  ;;  %v1381_v10 = vld [vmem:[%s6545_s7 + $0x58] sm:$0xff] }
 0x35c   :  { %3193 = vmatprep.subr.bf16.mxu0 %v3192_v20  ;;  %3321 = vmatprep.subr.bf16.mxu1 %v3320_v18  ;;  %v1389_v20 = vld [vmem:[%s6545_s7 + $0x98] sm:$0xff]  ;;  %v1396_v18 = vld [vmem:[%s6545_s7 + $0xd0] sm:$0xff]  ;;  %v3338_v23 = vpack.c.bf16 %v1381_v10, %v1374_v16  ;;  %v1558_v10 = vld [vmem:[%s6545_s7 + $0x5e0] sm:$0xff] }
 0x35d   :  { %v3340_v29 = vpack.c.bf16 %v1396_v18, %v1389_v20  ;;  %v1452_v16 = vld [vmem:[%s6545_s7 + $0x290] sm:$0xff] }
 0x35f   :  { %3195 = vmatpush1.bf16.msra.mxu0 %v3194_v27  ;;  %3323 = vmatpush1.bf16.msra.mxu1 %v3322_v28  ;;  %v1395_v27 = vld [vmem:[%s6545_s7 + $0xc8] sm:$0xff]  ;;  %v1390_v28 = vld [vmem:[%s6545_s7 + $0xa0] sm:$0xff] }
 0x360   :  { %3197 = vmatprep.subr.bf16.mxu0 %v3196_v31  ;;  %3325 = vmatprep.subr.bf16.mxu1 %v3324_v32  ;;  %v1403_v31 = vld [vmem:[%s6545_s7 + $0x108] sm:$0xff]  ;;  %v1410_v32 = vld [vmem:[%s6545_s7 + $0x140] sm:$0xff]  ;;  %v3342_v36 = vpack.c.bf16 %v1395_v27, %v1388_v26  ;;  %v3470_v37 = vpack.c.bf16 %v1397_v34, %v1390_v28  ;;  %v1453_v26 = vld [vmem:[%s6545_s7 + $0x298] sm:$0xff]  ;;  %v3358_v34 = vpack.c.bf16 %v1451_v22, %v1444_v21 }
 0x361   :  { %v3344_v38 = vpack.c.bf16 %v1410_v32, %v1403_v31  ;;  %v1459_v27 = vld [vmem:[%s6545_s7 + $0x2c8] sm:$0xff]  ;;  %v1466_v28 = vld [vmem:[%s6545_s7 + $0x300] sm:$0xff] }
 0x362   :  { %v3360_v32 = vpack.c.bf16 %v1466_v28, %v1459_v27  ;;  %v1515_v21 = vld [vmem:[%s6545_s7 + $0x488] sm:$0xff]  ;;  %v1522_v22 = vld [vmem:[%s6545_s7 + $0x4c0] sm:$0xff] }
 0x363   :  { %3199 = vmatpush1.bf16.msra.mxu0 %v3198_v42  ;;  %3327 = vmatpush1.bf16.msra.mxu1 %v3326_v43  ;;  %v1409_v42 = vld [vmem:[%s6545_s7 + $0x138] sm:$0xff]  ;;  %v1404_v43 = vld [vmem:[%s6545_s7 + $0x110] sm:$0xff]  ;;  %v3376_v28 = vpack.c.bf16 %v1522_v22, %v1515_v21 }
 0x364   :  { %3201 = vmatprep.subr.bf16.mxu0 %v3200_v46  ;;  %3329 = vmatprep.subr.bf16.mxu1 %v3328_v49  ;;  %v1424_v46 = vld [vmem:[%s6545_s7 + $0x1b0] sm:$0xff]  ;;  %v1530_v49 = vld [vmem:[%s6545_s7 + $0x500] sm:$0xff]  ;;  %v3346_v52 = vpack.c.bf16 %v1409_v42, %v1402_v39  ;;  %v1473_v39 = vld [vmem:[%s6545_s7 + $0x338] sm:$0xff] }
 0x365   :  { %v3348_v54 = vpack.c.bf16 %v1424_v46, %v1417_v45  ;;  %v1480_v42 = vld [vmem:[%s6545_s7 + $0x370] sm:$0xff] }
 0x366   :  { %v3364_v46 = vpack.c.bf16 %v1480_v42, %v1473_v39 }
 0x367   :  { %3203 = vmatpush1.bf16.msra.mxu0 %v3202_v58  ;;  %3331 = vmatpush1.bf16.msra.mxu1 %v3330_v59  ;;  %v1418_v58 = vld [vmem:[%s6545_s7 + $0x180] sm:$0xff]  ;;  %v3476_v59 = vpack.c.bf16 %v1537_v51, %v1530_v49  ;;  %v1472_v49 = vld [vmem:[%s6545_s7 + $0x330] sm:$0xff]  ;;  %v1479_v51 = vld [vmem:[%s6545_s7 + $0x368] sm:$0xff] }
 0x368   :  { %3205 = vmatprep.subr.bf16.mxu0 %v3204_v63  ;;  %3333 = vmatprep.subr.bf16.mxu1 %v3332_v0  ;;  %v1438_v63 = vld [vmem:[%s6545_s7 + $0x220] sm:$0xff]  ;;  %v1544_v0 = vld [vmem:[%s6545_s7 + $0x570] sm:$0xff]  ;;  %v3478_v3 = vpack.c.bf16 %v1425_v60, %v1418_v58  ;;  %v3366_v60 = vpack.c.bf16 %v1479_v51, %v1472_v49  ;;  %v1543_v49 = vld [vmem:[%s6545_s7 + $0x568] sm:$0xff] }
 0x369   :  { %v3352_v4 = vpack.c.bf16 %v1438_v63, %v1431_v62  ;;  %v1712_v58 = vld [vmem:[%s6545_s7 + $0xab0] sm:$0xff]  ;;  %v3368_v63 = vpack.c.bf16 %v1494_v56, %v1487_v55  ;;  %v1550_v51 = vld [vmem:[%s6545_s7 + $0x5a0] sm:$0xff] }
 0x36a   :  { %v3384_v56 = vpack.c.bf16 %v1550_v51, %v1543_v49  ;;  %v1598_v49 = vld [vmem:[%s6545_s7 + $0x720] sm:$0xff]  ;;  %v1605_v51 = vld [vmem:[%s6545_s7 + $0x758] sm:$0xff] }
 0x36b   :  { %3207 = vmatpush1.bf16.msra.mxu0 %v3206_v7  ;;  %3335 = vmatpush1.bf16.msra.mxu1 %v3334_v13  ;;  %v1432_v7 = vld [vmem:[%s6545_s7 + $0x1f0] sm:$0xff]  ;;  %v3480_v13 = vpack.c.bf16 %v1551_v1, %v1544_v0  ;;  %v1486_v0 = vld [vmem:[%s6545_s7 + $0x3a0] sm:$0xff]  ;;  %v1493_v1 = vld [vmem:[%s6545_s7 + $0x3d8] sm:$0xff] }
 0x36c   :  { %3337 = vmatprep.subr.bf16.mxu0 %v3336_v14  ;;  %3465 = vmatprep.subr.bf16.mxu1 %v3464_v15  ;;  %v1439_v14 = vld [vmem:[%s6545_s7 + $0x228] sm:$0xff]  ;;  %v1445_v15 = vld [vmem:[%s6545_s7 + $0x258] sm:$0xff] }
 0x36d   :  { %v3482_v20 = vpack.c.bf16 %v1439_v14, %v1432_v7  ;;  %v3356_v18 = vpack.c.bf16 %v1452_v16, %v1445_v15  ;;  %v1726_v7 = vld [vmem:[%s6545_s7 + $0xb20] sm:$0xff]  ;;  %v3370_v14 = vpack.c.bf16 %v1493_v1, %v1486_v0  ;;  %v1500_v16 = vld [vmem:[%s6545_s7 + $0x410] sm:$0xff]  ;;  %v1557_v0 = vld [vmem:[%s6545_s7 + $0x5d8] sm:$0xff] }
 0x36e   :  { %1991 = vmatmul.mubr.f32.vlgmr.msra.gmra.mrb[2].mxu0 %v5951_v24  ;;  %2133 = vmatmul.mubr.f32.vlgmr.msra.gmra.mrb[6].mxu1 %v5951_v24  ;;  %v1564_v1 = vld [vmem:[%s6545_s7 + $0x610] sm:$0xff] }
 0x36f   :  { %3339 = vmatpush1.bf16.msra.mxu0 %v3338_v23  ;;  %2203 = vmatprep.mubr.f32.mxu0 %v5554_v40  ;;  %v1446_v23 = vld [vmem:[%s6545_s7 + $0x260] sm:$0xff] }
 0x370   :  { %3467 = vmatpush3.bf16.msra.mxu1 %v3466_v25  ;;  %2345 = vmatprep.mubr.f32.mxu1 %v5554_v40  ;;  %v1411_v40 = vld [vmem:[%s6545_s7 + $0x148] sm:$0xff]  ;;  %v3484_v25 = vpack.c.bf16 %v1565_v17, %v1558_v10  ;;  %v3486_v31 = vpack.c.bf16 %v1453_v26, %v1446_v23  ;;  %v1614_v17 = vld [vmem:[%s6545_s7 + $0x7a0] sm:$0xff]  ;;  %v1740_v23 = vld [vmem:[%s6545_s7 + $0xb90] sm:$0xff] }
 0x371   :  { %3341 = vmatprep.subr.bf16.mxu0 %v3340_v29  ;;  %3469 = vmatprep.subr.bf16.mxu1 %v3468_v30  ;;  %v3474_v53 = vpack.c.bf16 %v1411_v40, %v1404_v43  ;;  %v1572_v29 = vld [vmem:[%s6545_s7 + $0x650] sm:$0xff]  ;;  %v1579_v30 = vld [vmem:[%s6545_s7 + $0x688] sm:$0xff]  ;;  %v1586_v43 = vld [vmem:[%s6545_s7 + $0x6c0] sm:$0xff]  ;;  %v3362_v40 = vpack.c.bf16 %v1465_v35, %v1458_v33 }
 0x372   :  { %v1507_v10 = vld [vmem:[%s6545_s7 + $0x448] sm:$0xff]  ;;  %v1529_v33 = vld [vmem:[%s6545_s7 + $0x4f8] sm:$0xff]  ;;  %v1536_v35 = vld [vmem:[%s6545_s7 + $0x530] sm:$0xff] }
 0x373   :  { %3343 = vmatpush1.bf16.msra.mxu0 %v3342_v36  ;;  %v1460_v36 = vld [vmem:[%s6545_s7 + $0x2d0] sm:$0xff]  ;;  %v3374_v26 = vpack.c.bf16 %v1507_v10, %v1500_v16  ;;  %v3380_v42 = vpack.c.bf16 %v1536_v35, %v1529_v33  ;;  %v1677_v16 = vld [vmem:[%s6545_s7 + $0x998] sm:$0xff]  ;;  %v1571_v10 = vld [vmem:[%s6545_s7 + $0x648] sm:$0xff] }
 0x374   :  { %3471 = vmatpush3.bf16.msra.mxu1 %v3470_v37  ;;  %3345 = vmatprep.subr.bf16.mxu0 %v3344_v38  ;;  %v3488_v37 = vpack.c.bf16 %v1579_v30, %v1572_v29  ;;  %v1467_v38 = vld [vmem:[%s6545_s7 + $0x308] sm:$0xff]  ;;  %v1514_v29 = vld [vmem:[%s6545_s7 + $0x480] sm:$0xff]  ;;  %v1521_v30 = vld [vmem:[%s6545_s7 + $0x4b8] sm:$0xff] }
 0x375   :  { %3473 = vmatprep.subr.bf16.mxu1 %v3472_v44  ;;  %v1593_v44 = vld [vmem:[%s6545_s7 + $0x6f8] sm:$0xff]  ;;  %v3490_v45 = vpack.c.bf16 %v1467_v38, %v1460_v36  ;;  %v1754_v36 = vld [vmem:[%s6545_s7 + $0xc00] sm:$0xff]  ;;  %v3378_v38 = vpack.c.bf16 %v1521_v30, %v1514_v29  ;;  %v1592_v30 = vld [vmem:[%s6545_s7 + $0x6f0] sm:$0xff] }
 0x376   :  { %v1585_v29 = vld [vmem:[%s6545_s7 + $0x6b8] sm:$0xff] }
 0x377   :  { %3347 = vmatpush1.bf16.msra.mxu0 %v3346_v52  ;;  %v1474_v52 = vld [vmem:[%s6545_s7 + $0x340] sm:$0xff]  ;;  %v3396_v35 = vpack.c.bf16 %v1592_v30, %v1585_v29  ;;  %v1697_v29 = vld [vmem:[%s6545_s7 + $0xa38] sm:$0xff]  ;;  %v1704_v30 = vld [vmem:[%s6545_s7 + $0xa70] sm:$0xff] }
 0x378   :  { %3475 = vmatpush3.bf16.msra.mxu1 %v3474_v53  ;;  %3349 = vmatprep.subr.bf16.mxu0 %v3348_v54  ;;  %v3492_v53 = vpack.c.bf16 %v1593_v44, %v1586_v43  ;;  %v1481_v54 = vld [vmem:[%s6545_s7 + $0x378] sm:$0xff]  ;;  %v1528_v43 = vld [vmem:[%s6545_s7 + $0x4f0] sm:$0xff]  ;;  %v1535_v44 = vld [vmem:[%s6545_s7 + $0x528] sm:$0xff] }
 0x379   :  { %3477 = vmatprep.subr.bf16.mxu1 %v3476_v59  ;;  %v1719_v59 = vld [vmem:[%s6545_s7 + $0xae8] sm:$0xff]  ;;  %v3494_v62 = vpack.c.bf16 %v1481_v54, %v1474_v52  ;;  %v1768_v52 = vld [vmem:[%s6545_s7 + $0xc70] sm:$0xff]  ;;  %v3382_v54 = vpack.c.bf16 %v1535_v44, %v1528_v43  ;;  %v1606_v44 = vld [vmem:[%s6545_s7 + $0x760] sm:$0xff] }
 0x37a   :  { %v1599_v43 = vld [vmem:[%s6545_s7 + $0x728] sm:$0xff] }
 0x37b   :  { %3351 = vmatpush1.bf16.msra.mxu0 %v3350_v2  ;;  %v3496_v2 = vpack.c.bf16 %v1719_v59, %v1712_v58  ;;  %v1542_v58 = vld [vmem:[%s6545_s7 + $0x560] sm:$0xff]  ;;  %v1549_v59 = vld [vmem:[%s6545_s7 + $0x598] sm:$0xff] }
 0x37c   :  { %3479 = vmatpush3.bf16.msra.mxu1 %v3478_v3  ;;  %3353 = vmatprep.subr.bf16.mxu0 %v3352_v4  ;;  %v1600_v3 = vld [vmem:[%s6545_s7 + $0x730] sm:$0xff]  ;;  %v1607_v4 = vld [vmem:[%s6545_s7 + $0x768] sm:$0xff] }
 0x37d   :  { %3481 = vmatprep.subr.bf16.mxu1 %v3480_v13  ;;  %v1733_v13 = vld [vmem:[%s6545_s7 + $0xb58] sm:$0xff]  ;;  %v3498_v15 = vpack.c.bf16 %v1607_v4, %v1600_v3  ;;  %v3386_v4 = vpack.c.bf16 %v1549_v59, %v1542_v58  ;;  %v1619_v58 = vld [vmem:[%s6545_s7 + $0x7c8] sm:$0xff] }
 0x37e   :  { %v1789_v3 = vld [vmem:[%s6545_s7 + $0xd18] sm:$0xff]  ;;  %v1627_v59 = vld [vmem:[%s6545_s7 + $0x808] sm:$0xff] }
 0x37f   :  { %3355 = vmatpush1.bf16.msra.mxu0 %v3354_v19  ;;  %v3372_v19 = vpack.c.bf16 %v1508_v6, %v1501_v5  ;;  %v3388_v6 = vpack.c.bf16 %v1564_v1, %v1557_v0  ;;  %v1626_v0 = vld [vmem:[%s6545_s7 + $0x800] sm:$0xff]  ;;  %v1633_v1 = vld [vmem:[%s6545_s7 + $0x838] sm:$0xff] }
 0x380   :  { %3483 = vmatpush3.bf16.msra.mxu1 %v3482_v20  ;;  %3357 = vmatprep.subr.bf16.mxu0 %v3356_v18  ;;  %v3500_v20 = vpack.c.bf16 %v1733_v13, %v1726_v7  ;;  %v1621_v18 = vld [vmem:[%s6545_s7 + $0x7d8] sm:$0xff]  ;;  %v1556_v7 = vld [vmem:[%s6545_s7 + $0x5d0] sm:$0xff]  ;;  %v1563_v13 = vld [vmem:[%s6545_s7 + $0x608] sm:$0xff] }
 0x381   :  { %3485 = vmatprep.subr.bf16.mxu1 %v3484_v25  ;;  %v1747_v25 = vld [vmem:[%s6545_s7 + $0xbc8] sm:$0xff]  ;;  %v3502_v27 = vpack.c.bf16 %v1621_v18, %v1614_v17  ;;  %v1578_v17 = vld [vmem:[%s6545_s7 + $0x680] sm:$0xff]  ;;  %v3390_v18 = vpack.c.bf16 %v1563_v13, %v1556_v7 }
 0x382   :  { %v3392_v22 = vpack.c.bf16 %v1578_v17, %v1571_v10  ;;  %v1662_v7 = vld [vmem:[%s6545_s7 + $0x920] sm:$0xff]  ;;  %v1669_v10 = vld [vmem:[%s6545_s7 + $0x958] sm:$0xff]  ;;  %v1676_v17 = vld [vmem:[%s6545_s7 + $0x990] sm:$0xff] }
 0x383   :  { %3359 = vmatpush1.bf16.msra.mxu0 %v3358_v34  ;;  %v1628_v34 = vld [vmem:[%s6545_s7 + $0x810] sm:$0xff] }
 0x384   :  { %3487 = vmatpush3.bf16.msra.mxu1 %v3486_v31  ;;  %3361 = vmatprep.subr.bf16.mxu0 %v3360_v32  ;;  %v3504_v31 = vpack.c.bf16 %v1747_v25, %v1740_v23  ;;  %v1635_v32 = vld [vmem:[%s6545_s7 + $0x848] sm:$0xff]  ;;  %v1570_v23 = vld [vmem:[%s6545_s7 + $0x640] sm:$0xff]  ;;  %v1577_v25 = vld [vmem:[%s6545_s7 + $0x678] sm:$0xff] }
 0x385   :  { %3489 = vmatprep.subr.bf16.mxu1 %v3488_v37  ;;  %v1761_v37 = vld [vmem:[%s6545_s7 + $0xc38] sm:$0xff]  ;;  %v3506_v39 = vpack.c.bf16 %v1635_v32, %v1628_v34  ;;  %v1810_v34 = vld [vmem:[%s6545_s7 + $0xdc0] sm:$0xff]  ;;  %v3394_v32 = vpack.c.bf16 %v1577_v25, %v1570_v23 }
 0x386   :  { %v1690_v23 = vld [vmem:[%s6545_s7 + $0xa00] sm:$0xff] }
 0x387   :  { %3363 = vmatpush1.bf16.msra.mxu0 %v3362_v40  ;;  %v1642_v40 = vld [vmem:[%s6545_s7 + $0x880] sm:$0xff] }
 0x388   :  { %3491 = vmatpush3.bf16.msra.mxu1 %v3490_v45  ;;  %3365 = vmatprep.subr.bf16.mxu0 %v3364_v46  ;;  %v3508_v45 = vpack.c.bf16 %v1761_v37, %v1754_v36  ;;  %v1649_v46 = vld [vmem:[%s6545_s7 + $0x8b8] sm:$0xff]  ;;  %v1584_v36 = vld [vmem:[%s6545_s7 + $0x6b0] sm:$0xff]  ;;  %v1591_v37 = vld [vmem:[%s6545_s7 + $0x6e8] sm:$0xff] }
 0x389   :  { %3493 = vmatprep.subr.bf16.mxu1 %v3492_v53  ;;  %v1775_v53 = vld [vmem:[%s6545_s7 + $0xca8] sm:$0xff]  ;;  %v3510_v55 = vpack.c.bf16 %v1649_v46, %v1642_v40  ;;  %v3398_v40 = vpack.c.bf16 %v1591_v37, %v1584_v36  ;;  %v3400_v46 = vpack.c.bf16 %v1606_v44, %v1599_v43  ;;  %v1718_v36 = vld [vmem:[%s6545_s7 + $0xae0] sm:$0xff]  ;;  %v1725_v43 = vld [vmem:[%s6545_s7 + $0xb18] sm:$0xff] }
 0x38a   :  { %v1732_v44 = vld [vmem:[%s6545_s7 + $0xb50] sm:$0xff] }
 0x38b   :  { %3367 = vmatpush1.bf16.msra.mxu0 %v3366_v60  ;;  %v1656_v60 = vld [vmem:[%s6545_s7 + $0x8f0] sm:$0xff] }
 0x38c   :  { %3495 = vmatpush3.bf16.msra.mxu1 %v3494_v62  ;;  %3369 = vmatprep.subr.bf16.mxu0 %v3368_v63  ;;  %v3512_v62 = vpack.c.bf16 %v1775_v53, %v1768_v52  ;;  %v1663_v63 = vld [vmem:[%s6545_s7 + $0x928] sm:$0xff]  ;;  %v1613_v52 = vld [vmem:[%s6545_s7 + $0x798] sm:$0xff]  ;;  %v1620_v53 = vld [vmem:[%s6545_s7 + $0x7d0] sm:$0xff] }
 0x38d   :  { %3497 = vmatprep.subr.bf16.mxu1 %v3496_v2  ;;  %v1782_v2 = vld [vmem:[%s6545_s7 + $0xce0] sm:$0xff]  ;;  %v3514_v5 = vpack.c.bf16 %v1663_v63, %v1656_v60 }
 0x38e   :  { %v1634_v60 = vld [vmem:[%s6545_s7 + $0x840] sm:$0xff] }
 0x38f   :  { %2346 = vmatmul.mubr.f32.vlgmr.msra.gmra.mrb[8].mxu1 %v5556_v41  ;;  %3371 = vmatpush1.bf16.msra.mxu0 %v3370_v14  ;;  %v1670_v14 = vld [vmem:[%s6545_s7 + $0x960] sm:$0xff]  ;;  %v3408_v63 = vpack.c.bf16 %v1634_v60, %v1627_v59  ;;  %v1760_v59 = vld [vmem:[%s6545_s7 + $0xc30] sm:$0xff] }
 0x390   :  { %3499 = vmatpush3.bf16.msra.mxu1 %v3498_v15  ;;  %2415 = vmatprep.mubr.f32.mxu1 %v5586_v57  ;;  %v3516_v15 = vpack.c.bf16 %v1789_v3, %v1782_v2  ;;  %v3518_v21 = vpack.c.bf16 %v1677_v16, %v1670_v14  ;;  %v1648_v2 = vld [vmem:[%s6545_s7 + $0x8b0] sm:$0xff]  ;;  %v1661_v16 = vld [vmem:[%s6545_s7 + $0x918] sm:$0xff] }
 0x391   :  { %3373 = vmatprep.subr.bf16.mxu0 %v3372_v19  ;;  %3501 = vmatprep.subr.bf16.mxu1 %v3500_v20  ;;  %v1796_v19 = vld [vmem:[%s6545_s7 + $0xd50] sm:$0xff]  ;;  %v1803_v20 = vld [vmem:[%s6545_s7 + $0xd88] sm:$0xff] }
 0x393   :  { %3375 = vmatpush1.bf16.msra.mxu0 %v3374_v26  ;;  %v1684_v26 = vld [vmem:[%s6545_s7 + $0x9d0] sm:$0xff] }
 0x394   :  { %3503 = vmatpush3.bf16.msra.mxu1 %v3502_v27  ;;  %3377 = vmatprep.subr.bf16.mxu0 %v3376_v28  ;;  %v3520_v27 = vpack.c.bf16 %v1803_v20, %v1796_v19  ;;  %v1691_v28 = vld [vmem:[%s6545_s7 + $0xa08] sm:$0xff]  ;;  %v3420_v20 = vpack.c.bf16 %v1676_v17, %v1669_v10  ;;  %v1802_v10 = vld [vmem:[%s6545_s7 + $0xd80] sm:$0xff] }
 0x395   :  { %3505 = vmatprep.subr.bf16.mxu1 %v3504_v31  ;;  %v1817_v31 = vld [vmem:[%s6545_s7 + $0xdf8] sm:$0xff]  ;;  %v3522_v33 = vpack.c.bf16 %v1691_v28, %v1684_v26 }
 0x396   :  { %v1689_v28 = vld [vmem:[%s6545_s7 + $0x9f8] sm:$0xff] }
 0x397   :  { %3379 = vmatpush1.bf16.msra.mxu0 %v3378_v38  ;;  %v1698_v38 = vld [vmem:[%s6545_s7 + $0xa40] sm:$0xff] }
 0x398   :  { %3507 = vmatpush3.bf16.msra.mxu1 %v3506_v39  ;;  %3381 = vmatprep.subr.bf16.mxu0 %v3380_v42  ;;  %v3524_v39 = vpack.c.bf16 %v1817_v31, %v1810_v34  ;;  %v1705_v42 = vld [vmem:[%s6545_s7 + $0xa78] sm:$0xff]  ;;  %v3428_v31 = vpack.c.bf16 %v1704_v30, %v1697_v29  ;;  %v6506_v29 = vld [vmem:[%s6546_s8] sm:$0x7f] }
 0x399   :  { %3509 = vmatprep.subr.bf16.mxu1 %v3508_v45  ;;  %v3526_v45 = vpack.c.bf16 %v1705_v42, %v1698_v38  ;;  %v1717_v42 = vld [vmem:[%s6545_s7 + $0xad8] sm:$0xff]  ;;  %v1823_v30 = vrot.slane %v6506_v29, %v4977_v9 }
 0x39b   :  { %3383 = vmatpush1.bf16.msra.mxu0 %v3382_v54  ;;  %v3402_v54 = vpack.c.bf16 %v1605_v51, %v1598_v49  ;;  %v1731_v49 = vld [vmem:[%s6545_s7 + $0xb48] sm:$0xff] }
 0x39c   :  { %3511 = vmatpush3.bf16.msra.mxu1 %v3510_v55  ;;  %3385 = vmatprep.subr.bf16.mxu0 %v3384_v56  ;;  %v3404_v55 = vpack.c.bf16 %v1620_v53, %v1613_v52  ;;  %v1612_v56 = vld [vmem:[%s6545_s7 + $0x790] sm:$0xff]  ;;  %v1739_v51 = vld [vmem:[%s6545_s7 + $0xb88] sm:$0xff]  ;;  %v1746_v52 = vld [vmem:[%s6545_s7 + $0xbc0] sm:$0xff] }
 0x39d   :  { %3513 = vmatprep.subr.bf16.mxu1 %v3512_v62  ;;  %v3406_v62 = vpack.c.bf16 %v1619_v58, %v1612_v56  ;;  %v1745_v56 = vld [vmem:[%s6545_s7 + $0xbb8] sm:$0xff] }
 0x39e   :  { %v1753_v58 = vld [vmem:[%s6545_s7 + $0xbf8] sm:$0xff] }
 0x39f   :  { %3387 = vmatpush1.bf16.msra.mxu0 %v3386_v4  ;;  %v1640_v4 = vld [vmem:[%s6545_s7 + $0x870] sm:$0xff] }
 0x3a0   :  { %3515 = vmatpush3.bf16.msra.mxu1 %v3514_v5  ;;  %3389 = vmatprep.subr.bf16.mxu0 %v3388_v6  ;;  %v1647_v5 = vld [vmem:[%s6545_s7 + $0x8a8] sm:$0xff] }
 0x3a1   :  { %3517 = vmatprep.subr.bf16.mxu1 %v3516_v15  ;;  %v1655_v6 = vld [vmem:[%s6545_s7 + $0x8e8] sm:$0xff]  ;;  %v3414_v13 = vpack.c.bf16 %v1647_v5, %v1640_v4  ;;  %v1654_v15 = vld [vmem:[%s6545_s7 + $0x8e0] sm:$0xff]  ;;  %v1773_v4 = vld [vmem:[%s6545_s7 + $0xc98] sm:$0xff] }
 0x3a2   :  { %v3416_v14 = vpack.c.bf16 %v1662_v7, %v1655_v6  ;;  %v3418_v19 = vpack.c.bf16 %v1661_v16, %v1654_v15  ;;  %v1781_v5 = vld [vmem:[%s6545_s7 + $0xcd8] sm:$0xff]  ;;  %v1788_v6 = vld [vmem:[%s6545_s7 + $0xd10] sm:$0xff]  ;;  %v1787_v15 = vld [vmem:[%s6545_s7 + $0xd08] sm:$0xff] }
 0x3a3   :  { %3391 = vmatpush1.bf16.msra.mxu0 %v3390_v18  ;;  %v1668_v18 = vld [vmem:[%s6545_s7 + $0x950] sm:$0xff]  ;;  %v1795_v16 = vld [vmem:[%s6545_s7 + $0xd48] sm:$0xff] }
 0x3a4   :  { %3519 = vmatpush3.bf16.msra.mxu1 %v3518_v21  ;;  %3393 = vmatprep.subr.bf16.mxu0 %v3392_v22  ;;  %v1675_v21 = vld [vmem:[%s6545_s7 + $0x988] sm:$0xff] }
 0x3a5   :  { %3521 = vmatprep.subr.bf16.mxu1 %v3520_v27  ;;  %v1683_v22 = vld [vmem:[%s6545_s7 + $0x9c8] sm:$0xff]  ;;  %v3422_v25 = vpack.c.bf16 %v1675_v21, %v1668_v18  ;;  %v1682_v27 = vld [vmem:[%s6545_s7 + $0x9c0] sm:$0xff]  ;;  %v1801_v18 = vld [vmem:[%s6545_s7 + $0xd78] sm:$0xff] }
 0x3a6   :  { %v3424_v26 = vpack.c.bf16 %v1690_v23, %v1683_v22  ;;  %v3426_v34 = vpack.c.bf16 %v1689_v28, %v1682_v27  ;;  %v1809_v21 = vld [vmem:[%s6545_s7 + $0xdb8] sm:$0xff]  ;;  %v1816_v22 = vld [vmem:[%s6545_s7 + $0xdf0] sm:$0xff]  ;;  %v1815_v27 = vld [vmem:[%s6545_s7 + $0xde8] sm:$0xff] }
 0x3a7   :  { %3395 = vmatpush1.bf16.msra.mxu0 %v3394_v32  ;;  %v1696_v32 = vld [vmem:[%s6545_s7 + $0xa30] sm:$0xff] }
 0x3a8   :  { %3523 = vmatpush3.bf16.msra.mxu1 %v3522_v33  ;;  %3397 = vmatprep.subr.bf16.mxu0 %v3396_v35  ;;  %v1703_v33 = vld [vmem:[%s6545_s7 + $0xa68] sm:$0xff] }
 0x3a9   :  { %3525 = vmatprep.subr.bf16.mxu1 %v3524_v39  ;;  %v1711_v35 = vld [vmem:[%s6545_s7 + $0xaa8] sm:$0xff]  ;;  %v3430_v37 = vpack.c.bf16 %v1703_v33, %v1696_v32  ;;  %v1710_v39 = vld [vmem:[%s6545_s7 + $0xaa0] sm:$0xff]  ;;  %v1835_v32 = vrot.slane %v6506_v29, %v4988_v12 }
 0x3aa   :  { %v3432_v38 = vpack.c.bf16 %v1718_v36, %v1711_v35 }
 0x3ab   :  { %3399 = vmatpush1.bf16.msra.mxu0 %v3398_v40  ;;  %v3434_v40 = vpack.c.bf16 %v1717_v42, %v1710_v39 }
 0x3ac   :  { %3527 = vmatpush3.bf16.msra.mxu1 %v3526_v45  ;;  %3401 = vmatprep.subr.bf16.mxu0 %v3400_v46  ;;  %v3436_v45 = vpack.c.bf16 %v1732_v44, %v1725_v43  ;;  %v1724_v46 = vld [vmem:[%s6545_s7 + $0xb10] sm:$0xff] }
 0x3ad   :  { %v3438_v53 = vpack.c.bf16 %v1731_v49, %v1724_v46 }
 0x3ae   :  { %2204 = vmatmul.mubr.f32.vlgmr.msra.gmra.mrb[4].mxu0 %v5556_v41  ;;  %v1641_v41 = vld [vmem:[%s6545_s7 + $0x878] sm:$0xff] }
 0x3af   :  { %2416 = vmatmul.mubr.f32.vlgmr.msra.gmra.mrb[10].mxu1 %v5951_v24  ;;  %3403 = vmatpush1.bf16.msra.mxu0 %v3402_v54  ;;  %v3412_v3 = vpack.c.bf16 %v1648_v2, %v1641_v41  ;;  %v3440_v54 = vpack.c.bf16 %v1746_v52, %v1739_v51  ;;  %v1774_v41 = vld [vmem:[%s6545_s7 + $0xca0] sm:$0xff] }
 0x3b0   :  { %2274 = vmatprep.mubr.f32.mxu0 %v5586_v57  ;;  %3405 = vmatprep.subr.bf16.mxu0 %v3404_v55  ;;  %v3410_v57 = vpack.c.bf16 %v1633_v1, %v1626_v0  ;;  %v1738_v55 = vld [vmem:[%s6545_s7 + $0xb80] sm:$0xff]  ;;  %v1759_v0 = vld [vmem:[%s6545_s7 + $0xc28] sm:$0xff] }
 0x3b1   :  { %v3442_v60 = vpack.c.bf16 %v1745_v56, %v1738_v55  ;;  %v1767_v1 = vld [vmem:[%s6545_s7 + $0xc68] sm:$0xff] }
 0x3b3   :  { %3407 = vmatpush1.bf16.msra.mxu0 %v3406_v62  ;;  %v3444_v62 = vpack.c.bf16 %v1760_v59, %v1753_v58 }
 0x3b4   :  { %3409 = vmatprep.subr.bf16.mxu0 %v3408_v63  ;;  %v1752_v63 = vld [vmem:[%s6545_s7 + $0xbf0] sm:$0xff] }
 0x3b5   :  { %v3446_v2 = vpack.c.bf16 %v1759_v0, %v1752_v63 }
 0x3b7   :  { %3411 = vmatpush1.bf16.msra.mxu0 %v3410_v57  ;;  %v3448_v57 = vpack.c.bf16 %v1774_v41, %v1767_v1  ;;  %v1847_v41 = vrot.slane %v6506_v29, %v1266_v48  ;;  %v1843_v48 = vrot.slane %v6506_v29, %v1306_v50 }
 0x3b8   :  { %3413 = vmatprep.subr.bf16.mxu0 %v3412_v3  ;;  %v1766_v3 = vld [vmem:[%s6545_s7 + $0xc60] sm:$0xff] }
 0x3b9   :  { %v3450_v7 = vpack.c.bf16 %v1773_v4, %v1766_v3 }
 0x3bb   :  { %3415 = vmatpush1.bf16.msra.mxu0 %v3414_v13  ;;  %v3452_v13 = vpack.c.bf16 %v1788_v6, %v1781_v5 }
 0x3bc   :  { %3417 = vmatprep.subr.bf16.mxu0 %v3416_v14  ;;  %v1780_v14 = vld [vmem:[%s6545_s7 + $0xcd0] sm:$0xff] }
 0x3bd   :  { %v3454_v17 = vpack.c.bf16 %v1787_v15, %v1780_v14 }
 0x3bf   :  { %3419 = vmatpush1.bf16.msra.mxu0 %v3418_v19  ;;  %v3456_v19 = vpack.c.bf16 %v1802_v10, %v1795_v16  ;;  %v1839_v16 = vrot.slane %v6506_v29, %v1262_v47 }
 0x3c0   :  { %3421 = vmatprep.subr.bf16.mxu0 %v3420_v20  ;;  %v1794_v20 = vld [vmem:[%s6545_s7 + $0xd40] sm:$0xff] }
 0x3c1   :  { %v3458_v23 = vpack.c.bf16 %v1801_v18, %v1794_v20 }
 0x3c3   :  { %3423 = vmatpush1.bf16.msra.mxu0 %v3422_v25  ;;  %v3460_v25 = vpack.c.bf16 %v1816_v22, %v1809_v21 }
 0x3c4   :  { %3425 = vmatprep.subr.bf16.mxu0 %v3424_v26  ;;  %v1808_v26 = vld [vmem:[%s6545_s7 + $0xdb0] sm:$0xff]  ;;  %s3617_s7 = smov [#allocation2]  }
 0x3c5   :  { %v3462_v28 = vpack.c.bf16 %v1815_v27, %v1808_v26  ;;  %s2469_s8 = sshll.u32 %s3617_s7, 4  ;;  %s2470_s8 = int_to_ptr.vmem [resolvable:$true] %s2469_s8 }
 0x3c6   :  { %s3590_s21 = scalar_lea.vmem %s2470_s8, 896  ;;  %p3595_p1 = scmp.lt.s32.totalorder %s2470_s8, %s2470_s8 }
 0x3c7   :  { %3427 = vmatpush1.bf16.msra.mxu0 %v3426_v34  ;;  %v1831_v34 = vrot.slane %v6506_v29, %v5071_v61  ;;  %p3591_p0 = scmp.ne.s32.totalorder %s2470_s8, %s3590_s21  ;;  %p3596_p2 = scmp.lt.s32.totalorder %s3590_s21, %s3590_s21 }
 0x3c8   :  { %3429 = vmatprep.subr.bf16.mxu0 %v3428_v31  ;;  %v1827_v31 = vrot.slane %v6506_v29, %v4985_v11 }
 0x3c9   :  { %p3597_p3 = por %p3596_p2, %p3595_p1 }
 0x3cb   :  { %3431 = vmatpush1.bf16.msra.mxu0 %v3430_v37  ;;  %p3598_p4 = pnand %p3597_p3, %p3591_p0 }
 0x3cc   :  { %3433 = vmatprep.subr.bf16.mxu0 %v3432_v38 }
 0x3cf   :  { %3435 = vmatpush1.bf16.msra.mxu0 %v3434_v40 }
 0x3d0   :  { %3437 = vmatprep.subr.bf16.mxu0 %v3436_v45 }
 0x3d3   :  { %3439 = vmatpush1.bf16.msra.mxu0 %v3438_v53 }
 0x3d4   :  { %3441 = vmatprep.subr.bf16.mxu0 %v3440_v54 }
 0x3d7   :  { %3443 = vmatpush1.bf16.msra.mxu0 %v3442_v60 }
 0x3d8   :  { %3445 = vmatprep.subr.bf16.mxu0 %v3444_v62 }
 0x3db   :  { %3447 = vmatpush1.bf16.msra.mxu0 %v3446_v2 }
 0x3dc   :  { %3449 = vmatprep.subr.bf16.mxu0 %v3448_v57 }
 0x3df   :  { %3451 = vmatpush1.bf16.msra.mxu0 %v3450_v7 }
 0x3e0   :  { %3453 = vmatprep.subr.bf16.mxu0 %v3452_v13 }
 0x3e3   :  { %3455 = vmatpush1.bf16.msra.mxu0 %v3454_v17 }
 0x3e4   :  { %3457 = vmatprep.subr.bf16.mxu0 %v3456_v19 }
 0x3e7   :  { %3459 = vmatpush1.bf16.msra.mxu0 %v3458_v23 }
 0x3e8   :  { %3461 = vmatprep.subr.bf16.mxu0 %v3460_v25 }
 0x3eb   :  { %3463 = vmatpush1.bf16.msra.mxu0 %v3462_v28 }
 0x3ee   :  { %2275 = vmatmul.mubr.f32.vlgmr.msra.gmra.mrb[4].mxu0 %v5951_v24 }
 0x441   :  { %v1992_v33 = vpop.f32.mrb[2].mxu0  ;;  %v2134_v35 = vpop.f32.mrb[6].mxu1 }
 0x442   :  { %v3532_v24 = vadd.f32 %v1992_v33, %v1823_v30  ;;  %v3534_v36 = vadd.f32 %v2134_v35, %v1831_v34  ;;  %v1994_v37 = vpop.f32.mrb[3].mxu0  ;;  %v2136_v38 = vpop.f32.mrb[7].mxu1 }
 0x443   :  { %v3533_v39 = vadd.f32 %v1994_v37, %v1827_v31  ;;  %v3535_v42 = vadd.f32 %v2136_v38, %v1835_v32 }
 0x444   :  { %v2421_v43 = vsub.f32 0.0, %v3532_v24  ;;  %v2423_v44 = vsub.f32 0.0, %v3534_v36 }
 0x445   :  { %v2422_v9 = vsub.f32 0.0, %v3533_v39  ;;  %v2424_v40 = vsub.f32 0.0, %v3535_v42 }
 0x446   :  { %v2428_v45 = vmul.f32 1.442695, %v2421_v43  ;;  %v2432_v61 = vmul.f32 1.442695, %v2423_v44 }
 0x447   :  { %v2430_v46 = vmul.f32 1.442695, %v2422_v9  ;;  %v2434_v49 = vmul.f32 1.442695, %v2424_v40 }
 0x448   :  { %3562 = vpow2.f32 %v2428_v45 }
 0x449   :  { %3564 = vpow2.f32 %v2432_v61 }
 0x44a   :  { %3566 = vpow2.f32 %v2430_v46 }
 0x44b   :  { %3568 = vpow2.f32 %v2434_v49 }
 0x452   :  { %v3563_v11 = vpop.eup %3562 }
 0x453   :  { %v3565_v12 = vpop.eup %3564  ;;  %v2442_v51 = vadd.f32 1.0, %v3563_v11 }
 0x454   :  { %v3567_v52 = vpop.eup %3566  ;;  %v2444_v53 = vadd.f32 1.0, %v3565_v12 }
 0x455   :  { %v3569_v54 = vpop.eup %3568  ;;  %3570 = vrcp.f32 %v2442_v51  ;;  %v2443_v55 = vadd.f32 1.0, %v3567_v52 }
 0x456   :  { %3572 = vrcp.f32 %v2444_v53  ;;  %v2445_v56 = vadd.f32 1.0, %v3569_v54 }
 0x457   :  { %3574 = vrcp.f32 %v2443_v55 }
 0x458   :  { %3576 = vrcp.f32 %v2445_v56 }
 0x45f   :  { %v3571_v58 = vpop.eup %3570 }
 0x460   :  { %v3573_v59 = vpop.eup %3572  ;;  %2456 = vst [vmem:[#allocation2] sm:$0xff] %v3571_v58 }
 0x461   :  { %v3575_v60 = vpop.eup %3574  ;;  %2458 = vst [vmem:[#allocation2 + $0x10] sm:$0xff] %v3573_v59 }
 0x462   :  { %v3577_v62 = vpop.eup %3576  ;;  %2457 = vst [vmem:[#allocation2 + $0x8] sm:$0xff] %v3575_v60  ;;  %v2586_v63 = vpop.f32.mrb[8].mxu1 }
 0x463   :  { %2459 = vst [vmem:[#allocation2 + $0x18] sm:$0xff] %v3577_v62  ;;  %v2587_v0 = vpop.f32.mrb[9].mxu1 }
 0x464   :  { %v2588_v1 = vadd.f32 %v2587_v0, %v2586_v63 }
 0x466   :  { %v2348_v3 = vadd.f32 %v2588_v1, %v1847_v41 }
 0x482   :  { %v2621_v2 = vpop.f32.mrb[10].mxu1 }
 0x483   :  { %v2622_v57 = vpop.f32.mrb[11].mxu1 }
 0x484   :  { %v2623_v4 = vadd.f32 %v2622_v57, %v2621_v2 }
 0x486   :  { %v2418_v5 = vadd.f32 %v2623_v4, %v2348_v3 }
 0x488   :  { %v2427_v6 = vsub.f32 0.0, %v2418_v5 }
 0x48a   :  { %v2440_v7 = vmul.f32 1.442695, %v2427_v6 }
 0x48c   :  { %3578 = vpow2.f32 %v2440_v7 }
 0x496   :  { %v3579_v13 = vpop.eup %3578 }
 0x497   :  { %v2448_v14 = vadd.f32 1.0, %v3579_v13 }
 0x499   :  { %3580 = vrcp.f32 %v2448_v14 }
 0x4a3   :  { %v3581_v15 = vpop.eup %3580 }
 0x4a4   :  { %2462 = vst.msk [vmem:[#allocation2 + $0x30] sm:$0xff] %vm456_vm0, %v3581_v15 }
 0x4c1   :  { %v2276_v10 = vpop.f32.mrb[4].mxu0 }
 0x4c2   :  { %v3536_v17 = vadd.f32 %v2276_v10, %v1839_v16  ;;  %v2278_v19 = vpop.f32.mrb[5].mxu0 }
 0x4c3   :  { %v3537_v20 = vadd.f32 %v2278_v19, %v1843_v48 }
 0x4c4   :  { %v2425_v18 = vsub.f32 0.0, %v3536_v17 }
 0x4c5   :  { %v2426_v21 = vsub.f32 0.0, %v3537_v20 }
 0x4c6   :  { %v2436_v22 = vmul.f32 1.442695, %v2425_v18 }
 0x4c7   :  { %v2438_v23 = vmul.f32 1.442695, %v2426_v21 }
 0x4c8   :  { %3582 = vpow2.f32 %v2436_v22 }
 0x4c9   :  { %3584 = vpow2.f32 %v2438_v23 }
 0x4d2   :  { %v3583_v25 = vpop.eup %3582 }
 0x4d3   :  { %v3585_v26 = vpop.eup %3584  ;;  %v2446_v27 = vadd.f32 1.0, %v3583_v25 }
 0x4d4   :  { %v2447_v28 = vadd.f32 1.0, %v3585_v26 }
 0x4d5   :  { %3586 = vrcp.f32 %v2446_v27 }
 0x4d6   :  { %3588 = vrcp.f32 %v2447_v28 }
 0x4df   :  { %v3587_v8 = vpop.eup %3586 }
 0x4e0   :  { %v3589_v47 = vpop.eup %3588  ;;  %2460 = vst [vmem:[#allocation2 + $0x20] sm:$0xff] %v3587_v8 }
 0x4e1   :  { %2461 = vst [vmem:[#allocation2 + $0x28] sm:$0xff] %v3589_v47 }
 0x4e2   :  { %3601 = shalt.err (!%p3598_p4)
}
 0x4e3   :  { %s3602_s24 = scalar_lea.hbm %s6547_s9, 896 }
 0x4e4   :  { %p3603_p5 = scmp.ne.s32.totalorder %s6547_s9, %s3602_s24  ;;  %p3606_p6 = scmp.lt.u32.totalorder %s3602_s24, %s6547_s9 }
 0x4e6   :  { %p3608_p7 = pnand %p3606_p6, %p3603_p5 }
 0x4e8   :  { %3611 = shalt.err (!%p3608_p7)
}
 0x4e9   :  { %2472 = dma.vmem_to_hbm [thread:$0]  %s2470_s8, 896, %s6547_s9, [#allocation3]  }
 0x4ea   :  { %3612 = dma.done.wait [#allocation3], 896  }
 0x4eb   :  { %3613 = vsyncadd [#allocation3], 4294966400 }
 0x4ec   :  { %2480 = vsyncpa [#allocation3], 1 }

</bundles_post_ra>
